<compile_context>
chip_gen: v5e
topology: v5e:2x2
jax: 0.10.0
libtpu: 0.0.40
codegen_flags: <defaults>
</compile_context>

<pallas_src>
import functools
import numpy as np

import jax
import jax.numpy as jnp
from jax.experimental import pallas as pl
from jax.experimental.pallas import tpu as pltpu  # noqa: F401  (kept per harness instructions)


# --------------------------------------------------------------------------
# helpers
# --------------------------------------------------------------------------
def _full_spec(shape):
    # single-block spec covering the whole array (grid = (1,))
    return pl.BlockSpec(shape, lambda *_: (0,) * len(shape))


def flat_edges(edges, batch_size, n_nodes):
    edge_num = edges.shape[-1]
    source_idx = np.arange(batch_size) * n_nodes
    offset = source_idx.reshape(-1, 1)
    edges = edges.reshape(batch_size, 2 * edge_num) + offset.repeat(2 * edge_num, axis=-1)
    edges = edges.reshape(batch_size, 2, edge_num)
    edges = np.hstack([b_edges for b_edges in edges])
    return edges, source_idx


def im2col_3x3(x):
    # x: [B, C, H, W] NCHW, stride=1, padding=1 -> [B*H*W, C*9]
    B, C, H, W = x.shape
    xp = jnp.pad(x, ((0, 0), (0, 0), (1, 1), (1, 1)))
    cols = []
    for ki in range(3):
        for kj in range(3):
            cols.append(xp[:, :, ki:ki + H, kj:kj + W])
    p = jnp.stack(cols, axis=2)                 # [B, C, 9, H, W]
    p = p.transpose(0, 3, 4, 1, 2)              # [B, H, W, C, 9]
    return p.reshape(B * H * W, C * 9)


# --------------------------------------------------------------------------
# Pallas kernel 1: fused graph path
#   nbrs MLP -> GRU -> GATv2 (lin_l/lin_r, attention, softmax, aggregate)
#   -> source-node selection, plus the im2col conv first layer.
# --------------------------------------------------------------------------
def _graph_kernel(x_ref, nw_ref, nb_ref,
                  wih_ref, bih_ref, whh_ref, bhh_ref,
                  wl_ref, bl_ref, wr_ref, br_ref,
                  attbd_ref, gbias_ref,
                  gsrc_ref, gdst_ref, sel_ref,
                  patT_ref, cwT_ref, cbT_ref,
                  gat_o_ref, att_o_ref, conv_o_ref,
                  *, T, Mp, H, heads):
    f32 = jnp.float32
    bf16 = jnp.bfloat16

    # ---- nbrs MLP on all (t, node) rows at once ----
    emb = jnp.dot(x_ref[...].astype(bf16), nw_ref[...],
                  preferred_element_type=f32) + nb_ref[...]
    emb = jnp.maximum(emb, 0.0)                                       # [T*Mp, H]

    # ---- GRU: input->hidden projection hoisted out of the recurrent loop ----
    gi = jnp.dot(emb.astype(bf16), wih_ref[...],
                 preferred_element_type=f32) + bih_ref[...]           # [T*Mp, 3H]

    whh = whh_ref[...]
    bhh = bhh_ref[...]
    h = jnp.zeros((Mp, H), f32)
    for t in range(T):                                 # static unroll (T small, fixed)
        gi_t = gi[t * Mp:(t + 1) * Mp, :]              # sublane-aligned static slice
        gh = jnp.dot(h.astype(bf16), whh, preferred_element_type=f32) + bhh
        r = jax.nn.sigmoid(gi_t[:, 0:H] + gh[:, 0:H])
        z = jax.nn.sigmoid(gi_t[:, H:2 * H] + gh[:, H:2 * H])
        n = jnp.tanh(gi_t[:, 2 * H:3 * H] + r * gh[:, 2 * H:3 * H])
        h = (1.0 - z) * n + z * h                                     # [Mp, H]

    # ---- GATv2 lin_l / lin_r (values never leave VMEM/vregs) ----
    hb = h.astype(bf16)
    x_l = jnp.dot(hb, wl_ref[...], preferred_element_type=f32) + bl_ref[...]   # [Mp, heads*H]
    x_r = jnp.dot(hb, wr_ref[...], preferred_element_type=f32) + br_ref[...]   # [Mp, heads*H]

    # ---- gathers as exact one-hot matmuls (f32) ----
    gsrc = gsrc_ref[...]                               # [E, Mp] 0/1
    gdst = gdst_ref[...]                               # [E, Mp] 0/1
    xls = jnp.dot(gsrc, x_l, preferred_element_type=f32)              # [E, heads*H]
    xrd = jnp.dot(gdst, x_r, preferred_element_type=f32)              # [E, heads*H]

    s = xls + xrd
    s = jnp.where(s > 0, s, 0.2 * s)                   # LeakyReLU(0.2)
    logits = jnp.dot(s.astype(bf16), attbd_ref[...],
                     preferred_element_type=f32)       # [E, heads] (block-diag att)

    # ---- per-destination-node edge softmax + weighted messages (head loop) ----
    E = gdst.shape[0]
    msg = jnp.zeros((E, H), f32)
    for hh in range(heads):
        lh = logits[:, hh:hh + 1]                                      # [E, 1]
        masked = jnp.where(gdst > 0.5, lh, -1e30)                      # [E, Mp]
        segmax = jnp.max(masked, axis=0, keepdims=True)                # [1, Mp]
        e_max = jnp.sum(gdst * segmax, axis=1, keepdims=True)          # [E, 1]
        ex = jnp.exp(lh - e_max)                                       # [E, 1]
        denom = jnp.sum(gdst * ex, axis=0, keepdims=True)              # [1, Mp]
        rec = 1.0 / jnp.where(denom > 0, denom, 1.0)                   # [1, Mp]
        e_rec = jnp.sum(gdst * rec, axis=1, keepdims=True)             # [E, 1]
        a_h = ex * e_rec                                               # [E, 1]
        att_o_ref[:, hh:hh + 1] = a_h
        msg = msg + a_h * xls[:, hh * H:(hh + 1) * H]                  # [E, H]
    msg = msg * (1.0 / heads)                          # concat=False -> head mean

    # ---- aggregate onto the per-intersection source nodes + bias ----
    gat_o_ref[...] = jnp.dot(sel_ref[...], msg,
                             preferred_element_type=f32) + gbias_ref[...]      # [B, H]

    # ---- CNN first layer (im2col conv as matmul), transposed => lane-dense ----
    conv_o_ref[...] = jnp.maximum(
        jnp.dot(cwT_ref[...], patT_ref[...].astype(bf16),
                preferred_element_type=f32) + cbT_ref[...], 0.0)                # [C_out, B*HW]


def pallas_graph(x, nw, nb, wih, bih, whh, bhh, wl, bl, wr, br,
                 attbd, gbias, gsrc, gdst, sel, patT, cwT, cbT,
                 *, T, Mp, H, heads):
    B = sel.shape[0]
    E = gsrc.shape[0]
    C_out = cwT.shape[0]
    BHW = patT.shape[1]
    args = (x, nw, nb, wih, bih, whh, bhh, wl, bl, wr, br,
            attbd, gbias, gsrc, gdst, sel, patT, cwT, cbT)
    out_shape = (jax.ShapeDtypeStruct((B, H), jnp.float32),
                 jax.ShapeDtypeStruct((E, heads), jnp.float32),
                 jax.ShapeDtypeStruct((C_out, BHW), jnp.float32))
    kern = functools.partial(_graph_kernel, T=T, Mp=Mp, H=H, heads=heads)
    return pl.pallas_call(
        kern,
        grid=(1,),
        in_specs=[_full_spec(a.shape) for a in args],
        out_specs=tuple(_full_spec(s.shape) for s in out_shape),
        out_shape=out_shape,
    )(*args)


# --------------------------------------------------------------------------
# Pallas kernel 2: fused tail (cnn_fc + phase MLP + hidden MLP + dueling head)
# --------------------------------------------------------------------------
def _tail_kernel(cf_ref, g_ref, ph_ref,
                 wc_ref, bc_ref, wp_ref, bp_ref,
                 whg_ref, wht_ref, whp_ref, bh_ref,
                 wv_ref, bv_ref, wa_ref, ba_ref,
                 o_ref):
    f32 = jnp.float32
    bf16 = jnp.bfloat16
    # cnn fc (conv_flat already in torch NCHW flatten order)
    t_emb = jnp.maximum(jnp.dot(cf_ref[...].astype(bf16), wc_ref[...],
                                preferred_element_type=f32) + bc_ref[...], 0.0)
    # phase MLP
    p_emb = jnp.maximum(jnp.dot(ph_ref[...].astype(bf16), wp_ref[...],
                                preferred_element_type=f32) + bp_ref[...], 0.0)
    # hidden MLP on concat(obs_gat, target_emb, phase_emb) via pre-split weights
    hs = (jnp.dot(g_ref[...].astype(bf16), whg_ref[...], preferred_element_type=f32)
          + jnp.dot(t_emb.astype(bf16), wht_ref[...], preferred_element_type=f32)
          + jnp.dot(p_emb.astype(bf16), whp_ref[...], preferred_element_type=f32)
          + bh_ref[...])
    hs = jnp.maximum(hs, 0.0)
    # dueling head
    hsb = hs.astype(bf16)
    v = jnp.dot(hsb, wv_ref[...], preferred_element_type=f32) + bv_ref[...]   # [B, 1]
    a = jnp.dot(hsb, wa_ref[...], preferred_element_type=f32) + ba_ref[...]   # [B, A]
    o_ref[...] = v + (a - jnp.mean(a, axis=-1, keepdims=True))


def pallas_tail(conv_flat, obs_gat, phase, wc, bc, wp, bp,
                whg, wht, whp, bh, wv, bv, wa, ba):
    B = conv_flat.shape[0]
    A = wa.shape[1]
    args = (conv_flat, obs_gat, phase, wc, bc, wp, bp, whg, wht, whp, bh, wv, bv, wa, ba)
    return pl.pallas_call(
        _tail_kernel,
        grid=(1,),
        in_specs=[_full_spec(a.shape) for a in args],
        out_specs=_full_spec((B, A)),
        out_shape=jax.ShapeDtypeStruct((B, A), jnp.float32),
    )(*args)


# --------------------------------------------------------------------------
# parameters
# --------------------------------------------------------------------------
def init_params(key, hidden, obs_feat, phase_shape, map_shape, action_space, heads):
    C, Hm, Wm = map_shape
    conv_out = 8

    def lin(k, fin, fout):
        kw, kb = jax.random.split(k)
        lim = 1.0 / np.sqrt(fin)
        w = jax.random.uniform(kw, (fin, fout), jnp.float32, -lim, lim)
        b = jax.random.uniform(kb, (fout,), jnp.float32, -lim, lim)
        return w, b

    ks = jax.random.split(key, 16)
    p = {}
    p['nbrs_w'], p['nbrs_b'] = lin(ks[0], obs_feat, hidden)
    lim = 1.0 / np.sqrt(hidden)
    kih, khh, kb1, kb2 = jax.random.split(ks[1], 4)
    # gate-concatenated GRU weights, gate order (r | z | n), stored [in, 3H]
    p['gru_wih'] = jax.random.uniform(kih, (hidden, 3 * hidden), jnp.float32, -lim, lim)
    p['gru_whh'] = jax.random.uniform(khh, (hidden, 3 * hidden), jnp.float32, -lim, lim)
    p['gru_bih'] = jax.random.uniform(kb1, (3 * hidden,), jnp.float32, -lim, lim)
    p['gru_bhh'] = jax.random.uniform(kb2, (3 * hidden,), jnp.float32, -lim, lim)
    p['gat_wl'], p['gat_bl'] = lin(ks[3], hidden, heads * hidden)
    p['gat_wr'], p['gat_br'] = lin(ks[4], hidden, heads * hidden)
    p['gat_att'] = jax.random.uniform(ks[5], (heads, hidden), jnp.float32, -lim, lim)
    p['gat_bias'] = jax.random.uniform(ks[6], (hidden,), jnp.float32, -lim, lim)
    p['conv_w'], p['conv_b'] = lin(ks[7], C * 9, conv_out)
    p['cnn_fc_w'], p['cnn_fc_b'] = lin(ks[8], conv_out * Hm * Wm, hidden)  # torch NCHW rows
    p['phase_w'], p['phase_b'] = lin(ks[9], phase_shape, phase_shape)
    p['hid_w'], p['hid_b'] = lin(ks[10], 2 * hidden + phase_shape, hidden)
    p['out_w'], p['out_b'] = lin(ks[11], hidden, 1)
    p['adv_w'], p['adv_b'] = lin(ks[12], hidden, action_space)
    return p


def prepare_params(p):
    """One-time weight preprocessing (review item: hoist out of the jitted forward)."""
    bf = jnp.bfloat16
    heads, H = p['gat_att'].shape
    # block-diagonal per-head attention reduce matrix: [heads*H, heads]
    att_bd = (jnp.eye(heads, dtype=jnp.float32)[:, None, :]
              * p['gat_att'][:, :, None]).reshape(heads * H, heads)
    hid_w = p['hid_w']
    dp = dict(
        nbrs_w=p['nbrs_w'].astype(bf), nbrs_b=p['nbrs_b'].reshape(1, -1),
        gru_wih=p['gru_wih'].astype(bf), gru_bih=p['gru_bih'].reshape(1, -1),
        gru_whh=p['gru_whh'].astype(bf), gru_bhh=p['gru_bhh'].reshape(1, -1),
        gat_wl=p['gat_wl'].astype(bf), gat_bl=p['gat_bl'].reshape(1, -1),
        gat_wr=p['gat_wr'].astype(bf), gat_br=p['gat_br'].reshape(1, -1),
        gat_att_bd=att_bd.astype(bf), gat_bias=p['gat_bias'].reshape(1, -1),
        conv_wT=p['conv_w'].T.astype(bf), conv_bT=p['conv_b'].reshape(-1, 1),
        cnn_fc_w=p['cnn_fc_w'].astype(bf), cnn_fc_b=p['cnn_fc_b'].reshape(1, -1),
        phase_w=p['phase_w'].astype(bf), phase_b=p['phase_b'].reshape(1, -1),
        # torch.cat order: (obs_gat | target_emb | phase_emb)
        hid_wg=hid_w[:H].astype(bf), hid_wt=hid_w[H:2 * H].astype(bf),
        hid_wp=hid_w[2 * H:].astype(bf), hid_b=p['hid_b'].reshape(1, -1),
        out_w=p['out_w'].astype(bf), out_b=p['out_b'].reshape(1, -1),
        adv_w=p['adv_w'].astype(bf), adv_b=p['adv_b'].reshape(1, -1),
    )
    return dp


# --------------------------------------------------------------------------
# forward
# --------------------------------------------------------------------------
@functools.partial(jax.jit, static_argnames=('hidden', 'heads'))
def _forward_core(dp, obs, phase, obs_map, gsrc, gdst, sel_s, *, hidden, heads):
    B, N, T, F = obs.shape
    BN = B * N
    H = hidden
    Mp = gsrc.shape[1]                 # node rows padded to a sublane multiple

    # ---- time-major, node-padded GRU input [T*Mp, F] ----
    x = obs.reshape(BN, T, F)
    x = jnp.pad(x, ((0, Mp - BN), (0, 0), (0, 0)))
    x = x.transpose(1, 0, 2).reshape(T * Mp, F)

    # ---- im2col for the 3x3/pad1 conv, transposed so kernel 1's conv out is lane-dense ----
    patT = im2col_3x3(obs_map).T                       # [C*9, B*HW]

    # ---- kernel 1: fused graph path + conv first layer ----
    obs_gat, att_w, convT = pallas_graph(
        x, dp['nbrs_w'], dp['nbrs_b'], dp['gru_wih'], dp['gru_bih'],
        dp['gru_whh'], dp['gru_bhh'], dp['gat_wl'], dp['gat_bl'],
        dp['gat_wr'], dp['gat_br'], dp['gat_att_bd'], dp['gat_bias'],
        gsrc, gdst, sel_s, patT, dp['conv_wT'], dp['conv_bT'],
        T=T, Mp=Mp, H=H, heads=heads)

    # ---- tiny XLA relayout into torch's NCHW flatten order (c*HW + hw) ----
    C_out = convT.shape[0]
    HW = obs_map.shape[2] * obs_map.shape[3]
    conv_flat = convT.reshape(C_out, B, HW).transpose(1, 0, 2).reshape(B, C_out * HW)

    # ---- kernel 2: fused tail ----
    q = pallas_tail(
        conv_flat, obs_gat, phase,
        dp['cnn_fc_w'], dp['cnn_fc_b'], dp['phase_w'], dp['phase_b'],
        dp['hid_wg'], dp['hid_wt'], dp['hid_wp'], dp['hid_b'],
        dp['out_w'], dp['out_b'], dp['adv_w'], dp['adv_b'])
    return q, att_w


def tlc_dqn_forward(dparams, obs, phase, obs_map, edges, edges_feature, *, hidden, heads):
    # edges_feature is converted but unused in the reference forward (GAT built
    # without edge_dim), so it is ignored here as well.
    # TODO(synk): torch_geometric's GATv2Conv default add_self_loops=True is not applied
    # (same assumption as the previously validated version); att weights are per input edge.
    B, N = obs.shape[0], obs.shape[1]
    flatten_edges, source_idx = flat_edges(np.asarray(edges), B, N)   # host-side, like torch ref
    src = flatten_edges[0].astype(np.int64)
    dst = flatten_edges[1].astype(np.int64)
    E = src.shape[0]
    BN = B * N
    Mp = -(-BN // 8) * 8
    # dense one-hot gather/scatter/select matrices (host-built, like flat_edges)
    gsrc = np.zeros((E, Mp), np.float32); gsrc[np.arange(E), src] = 1.0
    gdst = np.zeros((E, Mp), np.float32); gdst[np.arange(E), dst] = 1.0
    sel_s = (dst[None, :] == source_idx[:, None]).astype(np.float32)  # [B, E]
    return _forward_core(dparams, jnp.asarray(obs, jnp.float32),
                         jnp.asarray(phase, jnp.float32),
                         jnp.asarray(obs_map, jnp.float32),
                         jnp.asarray(gsrc), jnp.asarray(gdst), jnp.asarray(sel_s),
                         hidden=hidden, heads=heads)


if __name__ == "__main__":
    key = jax.random.PRNGKey(0)
    B, N, T = 2, 5, 8
    obs_length = 12            # obs feature dim = obs_length + 4 = 16
    hidden = 32
    phase_shape = 8
    action_space = 4
    map_shape = (4, 8, 8)      # (C, H, W) for CNNBase
    heads = 5

    kp, kd = jax.random.split(key)
    params = init_params(kp, hidden, obs_length + 4, phase_shape, map_shape,
                         action_space, heads)
    dparams = prepare_params(params)            # one-time weight preprocessing

    k1, k2, k3 = jax.random.split(kd, 3)
    obs = jax.random.normal(k1, (B, N, T, obs_length + 4), jnp.float32)
    phase = jax.random.normal(k2, (B, phase_shape), jnp.float32)
    obs_map = jax.random.normal(k3, (B,) + map_shape, jnp.float32)

    # per-intersection graph: neighbours feed node 0, plus a few extra edges
    e_src = np.array([1, 2, 3, 4, 0, 1, 2, 3], dtype=np.int64)
    e_dst = np.array([0, 0, 0, 0, 0, 2, 3, 4], dtype=np.int64)
    edges = np.stack([np.stack([e_src, e_dst]) for _ in range(B)])       # [B, 2, E]
    edges_feature = np.zeros((B, edges.shape[-1], 4), dtype=np.float32)  # unused (as in reference)

    q, att = tlc_dqn_forward(dparams, obs, phase, obs_map, edges, edges_feature,
                             hidden=hidden, heads=heads)
    jax.block_until_ready((q, att))
    assert q.shape == (B, action_space)
    assert att.shape == (B * edges.shape[-1], heads)

    # sanity: attention weights form a softmax per destination node
    fe, _ = flat_edges(edges, B, N)
    dst_np = fe[1]
    att_np = np.asarray(att, np.float64)
    sums = np.zeros((B * N, heads))
    np.add.at(sums, dst_np, att_np)
    indeg = np.bincount(dst_np, minlength=B * N) > 0
    assert np.allclose(sums[indeg], 1.0, atol=1e-2)
    print("KERNEL_OK")
</pallas_src>

<mosaic_0001>
module attributes {stable_mosaic.version = 11 : i64} {
  func.func @_graph_kernel(%arg0: i32, %arg1: memref<128x16xf32, #tpu.memory_space<vmem>>, %arg2: memref<16x32xbf16, #tpu.memory_space<vmem>>, %arg3: memref<1x32xf32, #tpu.memory_space<vmem>>, %arg4: memref<32x96xbf16, #tpu.memory_space<vmem>>, %arg5: memref<1x96xf32, #tpu.memory_space<vmem>>, %arg6: memref<32x96xbf16, #tpu.memory_space<vmem>>, %arg7: memref<1x96xf32, #tpu.memory_space<vmem>>, %arg8: memref<32x160xbf16, #tpu.memory_space<vmem>>, %arg9: memref<1x160xf32, #tpu.memory_space<vmem>>, %arg10: memref<32x160xbf16, #tpu.memory_space<vmem>>, %arg11: memref<1x160xf32, #tpu.memory_space<vmem>>, %arg12: memref<160x5xbf16, #tpu.memory_space<vmem>>, %arg13: memref<1x32xf32, #tpu.memory_space<vmem>>, %arg14: memref<16x16xf32, #tpu.memory_space<vmem>>, %arg15: memref<16x16xf32, #tpu.memory_space<vmem>>, %arg16: memref<2x16xf32, #tpu.memory_space<vmem>>, %arg17: memref<36x128xf32, #tpu.memory_space<vmem>>, %arg18: memref<8x36xbf16, #tpu.memory_space<vmem>>, %arg19: memref<8x1xf32, #tpu.memory_space<vmem>>, %arg20: memref<2x32xf32, #tpu.memory_space<vmem>>, %arg21: memref<16x5xf32, #tpu.memory_space<vmem>>, %arg22: memref<8x128xf32, #tpu.memory_space<vmem>>) attributes {dimension_semantics = [#tpu.dimension_semantics<arbitrary>], iteration_bounds = array<i64: 1>, scalar_prefetch = 0 : i64, scratch_operands = 0 : i64, tpu.core_type = #tpu.core_type<tc>, window_params = [{pipeline_mode = #tpu.pipeline_mode<synchronous>, transform_indices = @transform_0, window_bounds = array<i64: 128, 16>}, {pipeline_mode = #tpu.pipeline_mode<synchronous>, transform_indices = @transform_1, window_bounds = array<i64: 16, 32>}, {pipeline_mode = #tpu.pipeline_mode<synchronous>, transform_indices = @transform_2, window_bounds = array<i64: 1, 32>}, {pipeline_mode = #tpu.pipeline_mode<synchronous>, transform_indices = @transform_3, window_bounds = array<i64: 32, 96>}, {pipeline_mode = #tpu.pipeline_mode<synchronous>, transform_indices = @transform_4, window_bounds = array<i64: 1, 96>}, {pipeline_mode = #tpu.pipeline_mode<synchronous>, transform_indices = @transform_5, window_bounds = array<i64: 32, 96>}, {pipeline_mode = #tpu.pipeline_mode<synchronous>, transform_indices = @transform_6, window_bounds = array<i64: 1, 96>}, {pipeline_mode = #tpu.pipeline_mode<synchronous>, transform_indices = @transform_7, window_bounds = array<i64: 32, 160>}, {pipeline_mode = #tpu.pipeline_mode<synchronous>, transform_indices = @transform_8, window_bounds = array<i64: 1, 160>}, {pipeline_mode = #tpu.pipeline_mode<synchronous>, transform_indices = @transform_9, window_bounds = array<i64: 32, 160>}, {pipeline_mode = #tpu.pipeline_mode<synchronous>, transform_indices = @transform_10, window_bounds = array<i64: 1, 160>}, {pipeline_mode = #tpu.pipeline_mode<synchronous>, transform_indices = @transform_11, window_bounds = array<i64: 160, 5>}, {pipeline_mode = #tpu.pipeline_mode<synchronous>, transform_indices = @transform_12, window_bounds = array<i64: 1, 32>}, {pipeline_mode = #tpu.pipeline_mode<synchronous>, transform_indices = @transform_13, window_bounds = array<i64: 16, 16>}, {pipeline_mode = #tpu.pipeline_mode<synchronous>, transform_indices = @transform_14, window_bounds = array<i64: 16, 16>}, {pipeline_mode = #tpu.pipeline_mode<synchronous>, transform_indices = @transform_15, window_bounds = array<i64: 2, 16>}, {pipeline_mode = #tpu.pipeline_mode<synchronous>, transform_indices = @transform_16, window_bounds = array<i64: 36, 128>}, {pipeline_mode = #tpu.pipeline_mode<synchronous>, transform_indices = @transform_17, window_bounds = array<i64: 8, 36>}, {pipeline_mode = #tpu.pipeline_mode<synchronous>, transform_indices = @transform_18, window_bounds = array<i64: 8, 1>}, {pipeline_mode = #tpu.pipeline_mode<synchronous>, transform_indices = @transform_19, window_bounds = array<i64: 2, 32>}, {pipeline_mode = #tpu.pipeline_mode<synchronous>, transform_indices = @transform_20, window_bounds = array<i64: 16, 5>}, {pipeline_mode = #tpu.pipeline_mode<synchronous>, transform_indices = @transform_21, window_bounds = array<i64: 8, 128>}]} {
    %c0 = arith.constant 0 : index
    %c0_0 = arith.constant 0 : index
    %0 = vector.load %arg1[%c0, %c0_0] : memref<128x16xf32, #tpu.memory_space<vmem>>, vector<128x16xf32>
    %1 = arith.truncf %0 : vector<128x16xf32> to vector<128x16xbf16>
    %c0_1 = arith.constant 0 : index
    %c0_2 = arith.constant 0 : index
    %2 = vector.load %arg2[%c0_1, %c0_2] : memref<16x32xbf16, #tpu.memory_space<vmem>>, vector<16x32xbf16>
    %cst = arith.constant dense<0.000000e+00> : vector<128x32xf32>
    %3 = tpu.matmul %1, %2, %cst {dimension_numbers = #tpu.dot_dimension_numbers<[1], [0], [0], [1], [0, 0, 1, 1], [], []>} : vector<128x16xbf16>, vector<16x32xbf16>, vector<128x32xf32> -> vector<128x32xf32>
    %c0_3 = arith.constant 0 : index
    %c0_4 = arith.constant 0 : index
    %4 = vector.load %arg3[%c0_3, %c0_4] : memref<1x32xf32, #tpu.memory_space<vmem>>, vector<1x32xf32>
    %5 = vector.broadcast %4 : vector<1x32xf32> to vector<128x32xf32>
    %6 = arith.addf %3, %5 : vector<128x32xf32>
    %cst_5 = arith.constant 0.000000e+00 : f32
    %7 = vector.broadcast %cst_5 : f32 to vector<128x32xf32>
    %8 = arith.maximumf %6, %7 : vector<128x32xf32>
    %9 = arith.truncf %8 : vector<128x32xf32> to vector<128x32xbf16>
    %c0_6 = arith.constant 0 : index
    %c0_7 = arith.constant 0 : index
    %10 = vector.load %arg4[%c0_6, %c0_7] : memref<32x96xbf16, #tpu.memory_space<vmem>>, vector<32x96xbf16>
    %cst_8 = arith.constant dense<0.000000e+00> : vector<128x96xf32>
    %11 = tpu.matmul %9, %10, %cst_8 {dimension_numbers = #tpu.dot_dimension_numbers<[1], [0], [0], [1], [0, 0, 1, 1], [], []>} : vector<128x32xbf16>, vector<32x96xbf16>, vector<128x96xf32> -> vector<128x96xf32>
    %c0_9 = arith.constant 0 : index
    %c0_10 = arith.constant 0 : index
    %12 = vector.load %arg5[%c0_9, %c0_10] : memref<1x96xf32, #tpu.memory_space<vmem>>, vector<1x96xf32>
    %13 = vector.broadcast %12 : vector<1x96xf32> to vector<128x96xf32>
    %14 = arith.addf %11, %13 : vector<128x96xf32>
    %c0_11 = arith.constant 0 : index
    %c0_12 = arith.constant 0 : index
    %15 = vector.load %arg6[%c0_11, %c0_12] : memref<32x96xbf16, #tpu.memory_space<vmem>>, vector<32x96xbf16>
    %c0_13 = arith.constant 0 : index
    %c0_14 = arith.constant 0 : index
    %16 = vector.load %arg7[%c0_13, %c0_14] : memref<1x96xf32, #tpu.memory_space<vmem>>, vector<1x96xf32>
    %cst_15 = arith.constant 0.000000e+00 : f32
    %17 = vector.broadcast %cst_15 : f32 to vector<16x32xf32>
    %18 = vector.extract_strided_slice %14 {offsets = [0, 0], sizes = [16, 96], strides = [1, 1]} : vector<128x96xf32> to vector<16x96xf32>
    %19 = arith.truncf %17 : vector<16x32xf32> to vector<16x32xbf16>
    %cst_16 = arith.constant dense<0.000000e+00> : vector<16x96xf32>
    %20 = tpu.matmul %19, %15, %cst_16 {dimension_numbers = #tpu.dot_dimension_numbers<[1], [0], [0], [1], [0, 0, 1, 1], [], []>} : vector<16x32xbf16>, vector<32x96xbf16>, vector<16x96xf32> -> vector<16x96xf32>
    %21 = vector.broadcast %16 : vector<1x96xf32> to vector<16x96xf32>
    %22 = arith.addf %20, %21 : vector<16x96xf32>
    %23 = vector.extract_strided_slice %18 {offsets = [0, 0], sizes = [16, 32], strides = [1, 1]} : vector<16x96xf32> to vector<16x32xf32>
    %24 = vector.extract_strided_slice %22 {offsets = [0, 0], sizes = [16, 32], strides = [1, 1]} : vector<16x96xf32> to vector<16x32xf32>
    %25 = arith.addf %23, %24 : vector<16x32xf32>
    %26 = arith.negf %25 : vector<16x32xf32>
    %27 = math.exp %26 : vector<16x32xf32>
    %cst_17 = arith.constant 1.000000e+00 : f32
    %28 = vector.broadcast %cst_17 : f32 to vector<16x32xf32>
    %29 = arith.addf %28, %27 : vector<16x32xf32>
    %30 = arith.divf %28, %29 : vector<16x32xf32>
    %31 = vector.extract_strided_slice %18 {offsets = [0, 32], sizes = [16, 32], strides = [1, 1]} : vector<16x96xf32> to vector<16x32xf32>
    %32 = vector.extract_strided_slice %22 {offsets = [0, 32], sizes = [16, 32], strides = [1, 1]} : vector<16x96xf32> to vector<16x32xf32>
    %33 = arith.addf %31, %32 : vector<16x32xf32>
    %34 = arith.negf %33 : vector<16x32xf32>
    %35 = math.exp %34 : vector<16x32xf32>
    %cst_18 = arith.constant 1.000000e+00 : f32
    %36 = vector.broadcast %cst_18 : f32 to vector<16x32xf32>
    %37 = arith.addf %36, %35 : vector<16x32xf32>
    %38 = arith.divf %36, %37 : vector<16x32xf32>
    %39 = vector.extract_strided_slice %18 {offsets = [0, 64], sizes = [16, 32], strides = [1, 1]} : vector<16x96xf32> to vector<16x32xf32>
    %40 = vector.extract_strided_slice %22 {offsets = [0, 64], sizes = [16, 32], strides = [1, 1]} : vector<16x96xf32> to vector<16x32xf32>
    %41 = arith.mulf %30, %40 : vector<16x32xf32>
    %42 = arith.addf %39, %41 : vector<16x32xf32>
    %43 = math.tanh %42 : vector<16x32xf32>
    %cst_19 = arith.constant 1.000000e+00 : f32
    %44 = vector.broadcast %cst_19 : f32 to vector<16x32xf32>
    %45 = arith.subf %44, %38 : vector<16x32xf32>
    %46 = arith.mulf %45, %43 : vector<16x32xf32>
    %47 = arith.mulf %38, %17 : vector<16x32xf32>
    %48 = arith.addf %46, %47 : vector<16x32xf32>
    %49 = vector.extract_strided_slice %14 {offsets = [16, 0], sizes = [16, 96], strides = [1, 1]} : vector<128x96xf32> to vector<16x96xf32>
    %50 = arith.truncf %48 : vector<16x32xf32> to vector<16x32xbf16>
    %cst_20 = arith.constant dense<0.000000e+00> : vector<16x96xf32>
    %51 = tpu.matmul %50, %15, %cst_20 {dimension_numbers = #tpu.dot_dimension_numbers<[1], [0], [0], [1], [0, 0, 1, 1], [], []>} : vector<16x32xbf16>, vector<32x96xbf16>, vector<16x96xf32> -> vector<16x96xf32>
    %52 = vector.broadcast %16 : vector<1x96xf32> to vector<16x96xf32>
    %53 = arith.addf %51, %52 : vector<16x96xf32>
    %54 = vector.extract_strided_slice %49 {offsets = [0, 0], sizes = [16, 32], strides = [1, 1]} : vector<16x96xf32> to vector<16x32xf32>
    %55 = vector.extract_strided_slice %53 {offsets = [0, 0], sizes = [16, 32], strides = [1, 1]} : vector<16x96xf32> to vector<16x32xf32>
    %56 = arith.addf %54, %55 : vector<16x32xf32>
    %57 = arith.negf %56 : vector<16x32xf32>
    %58 = math.exp %57 : vector<16x32xf32>
    %cst_21 = arith.constant 1.000000e+00 : f32
    %59 = vector.broadcast %cst_21 : f32 to vector<16x32xf32>
    %60 = arith.addf %59, %58 : vector<16x32xf32>
    %61 = arith.divf %59, %60 : vector<16x32xf32>
    %62 = vector.extract_strided_slice %49 {offsets = [0, 32], sizes = [16, 32], strides = [1, 1]} : vector<16x96xf32> to vector<16x32xf32>
    %63 = vector.extract_strided_slice %53 {offsets = [0, 32], sizes = [16, 32], strides = [1, 1]} : vector<16x96xf32> to vector<16x32xf32>
    %64 = arith.addf %62, %63 : vector<16x32xf32>
    %65 = arith.negf %64 : vector<16x32xf32>
    %66 = math.exp %65 : vector<16x32xf32>
    %cst_22 = arith.constant 1.000000e+00 : f32
    %67 = vector.broadcast %cst_22 : f32 to vector<16x32xf32>
    %68 = arith.addf %67, %66 : vector<16x32xf32>
    %69 = arith.divf %67, %68 : vector<16x32xf32>
    %70 = vector.extract_strided_slice %49 {offsets = [0, 64], sizes = [16, 32], strides = [1, 1]} : vector<16x96xf32> to vector<16x32xf32>
    %71 = vector.extract_strided_slice %53 {offsets = [0, 64], sizes = [16, 32], strides = [1, 1]} : vector<16x96xf32> to vector<16x32xf32>
    %72 = arith.mulf %61, %71 : vector<16x32xf32>
    %73 = arith.addf %70, %72 : vector<16x32xf32>
    %74 = math.tanh %73 : vector<16x32xf32>
    %cst_23 = arith.constant 1.000000e+00 : f32
    %75 = vector.broadcast %cst_23 : f32 to vector<16x32xf32>
    %76 = arith.subf %75, %69 : vector<16x32xf32>
    %77 = arith.mulf %76, %74 : vector<16x32xf32>
    %78 = arith.mulf %69, %48 : vector<16x32xf32>
    %79 = arith.addf %77, %78 : vector<16x32xf32>
    %80 = vector.extract_strided_slice %14 {offsets = [32, 0], sizes = [16, 96], strides = [1, 1]} : vector<128x96xf32> to vector<16x96xf32>
    %81 = arith.truncf %79 : vector<16x32xf32> to vector<16x32xbf16>
    %cst_24 = arith.constant dense<0.000000e+00> : vector<16x96xf32>
    %82 = tpu.matmul %81, %15, %cst_24 {dimension_numbers = #tpu.dot_dimension_numbers<[1], [0], [0], [1], [0, 0, 1, 1], [], []>} : vector<16x32xbf16>, vector<32x96xbf16>, vector<16x96xf32> -> vector<16x96xf32>
    %83 = vector.broadcast %16 : vector<1x96xf32> to vector<16x96xf32>
    %84 = arith.addf %82, %83 : vector<16x96xf32>
    %85 = vector.extract_strided_slice %80 {offsets = [0, 0], sizes = [16, 32], strides = [1, 1]} : vector<16x96xf32> to vector<16x32xf32>
    %86 = vector.extract_strided_slice %84 {offsets = [0, 0], sizes = [16, 32], strides = [1, 1]} : vector<16x96xf32> to vector<16x32xf32>
    %87 = arith.addf %85, %86 : vector<16x32xf32>
    %88 = arith.negf %87 : vector<16x32xf32>
    %89 = math.exp %88 : vector<16x32xf32>
    %cst_25 = arith.constant 1.000000e+00 : f32
    %90 = vector.broadcast %cst_25 : f32 to vector<16x32xf32>
    %91 = arith.addf %90, %89 : vector<16x32xf32>
    %92 = arith.divf %90, %91 : vector<16x32xf32>
    %93 = vector.extract_strided_slice %80 {offsets = [0, 32], sizes = [16, 32], strides = [1, 1]} : vector<16x96xf32> to vector<16x32xf32>
    %94 = vector.extract_strided_slice %84 {offsets = [0, 32], sizes = [16, 32], strides = [1, 1]} : vector<16x96xf32> to vector<16x32xf32>
    %95 = arith.addf %93, %94 : vector<16x32xf32>
    %96 = arith.negf %95 : vector<16x32xf32>
    %97 = math.exp %96 : vector<16x32xf32>
    %cst_26 = arith.constant 1.000000e+00 : f32
    %98 = vector.broadcast %cst_26 : f32 to vector<16x32xf32>
    %99 = arith.addf %98, %97 : vector<16x32xf32>
    %100 = arith.divf %98, %99 : vector<16x32xf32>
    %101 = vector.extract_strided_slice %80 {offsets = [0, 64], sizes = [16, 32], strides = [1, 1]} : vector<16x96xf32> to vector<16x32xf32>
    %102 = vector.extract_strided_slice %84 {offsets = [0, 64], sizes = [16, 32], strides = [1, 1]} : vector<16x96xf32> to vector<16x32xf32>
    %103 = arith.mulf %92, %102 : vector<16x32xf32>
    %104 = arith.addf %101, %103 : vector<16x32xf32>
    %105 = math.tanh %104 : vector<16x32xf32>
    %cst_27 = arith.constant 1.000000e+00 : f32
    %106 = vector.broadcast %cst_27 : f32 to vector<16x32xf32>
    %107 = arith.subf %106, %100 : vector<16x32xf32>
    %108 = arith.mulf %107, %105 : vector<16x32xf32>
    %109 = arith.mulf %100, %79 : vector<16x32xf32>
    %110 = arith.addf %108, %109 : vector<16x32xf32>
    %111 = vector.extract_strided_slice %14 {offsets = [48, 0], sizes = [16, 96], strides = [1, 1]} : vector<128x96xf32> to vector<16x96xf32>
    %112 = arith.truncf %110 : vector<16x32xf32> to vector<16x32xbf16>
    %cst_28 = arith.constant dense<0.000000e+00> : vector<16x96xf32>
    %113 = tpu.matmul %112, %15, %cst_28 {dimension_numbers = #tpu.dot_dimension_numbers<[1], [0], [0], [1], [0, 0, 1, 1], [], []>} : vector<16x32xbf16>, vector<32x96xbf16>, vector<16x96xf32> -> vector<16x96xf32>
    %114 = vector.broadcast %16 : vector<1x96xf32> to vector<16x96xf32>
    %115 = arith.addf %113, %114 : vector<16x96xf32>
    %116 = vector.extract_strided_slice %111 {offsets = [0, 0], sizes = [16, 32], strides = [1, 1]} : vector<16x96xf32> to vector<16x32xf32>
    %117 = vector.extract_strided_slice %115 {offsets = [0, 0], sizes = [16, 32], strides = [1, 1]} : vector<16x96xf32> to vector<16x32xf32>
    %118 = arith.addf %116, %117 : vector<16x32xf32>
    %119 = arith.negf %118 : vector<16x32xf32>
    %120 = math.exp %119 : vector<16x32xf32>
    %cst_29 = arith.constant 1.000000e+00 : f32
    %121 = vector.broadcast %cst_29 : f32 to vector<16x32xf32>
    %122 = arith.addf %121, %120 : vector<16x32xf32>
    %123 = arith.divf %121, %122 : vector<16x32xf32>
    %124 = vector.extract_strided_slice %111 {offsets = [0, 32], sizes = [16, 32], strides = [1, 1]} : vector<16x96xf32> to vector<16x32xf32>
    %125 = vector.extract_strided_slice %115 {offsets = [0, 32], sizes = [16, 32], strides = [1, 1]} : vector<16x96xf32> to vector<16x32xf32>
    %126 = arith.addf %124, %125 : vector<16x32xf32>
    %127 = arith.negf %126 : vector<16x32xf32>
    %128 = math.exp %127 : vector<16x32xf32>
    %cst_30 = arith.constant 1.000000e+00 : f32
    %129 = vector.broadcast %cst_30 : f32 to vector<16x32xf32>
    %130 = arith.addf %129, %128 : vector<16x32xf32>
    %131 = arith.divf %129, %130 : vector<16x32xf32>
    %132 = vector.extract_strided_slice %111 {offsets = [0, 64], sizes = [16, 32], strides = [1, 1]} : vector<16x96xf32> to vector<16x32xf32>
    %133 = vector.extract_strided_slice %115 {offsets = [0, 64], sizes = [16, 32], strides = [1, 1]} : vector<16x96xf32> to vector<16x32xf32>
    %134 = arith.mulf %123, %133 : vector<16x32xf32>
    %135 = arith.addf %132, %134 : vector<16x32xf32>
    %136 = math.tanh %135 : vector<16x32xf32>
    %cst_31 = arith.constant 1.000000e+00 : f32
    %137 = vector.broadcast %cst_31 : f32 to vector<16x32xf32>
    %138 = arith.subf %137, %131 : vector<16x32xf32>
    %139 = arith.mulf %138, %136 : vector<16x32xf32>
    %140 = arith.mulf %131, %110 : vector<16x32xf32>
    %141 = arith.addf %139, %140 : vector<16x32xf32>
    %142 = vector.extract_strided_slice %14 {offsets = [64, 0], sizes = [16, 96], strides = [1, 1]} : vector<128x96xf32> to vector<16x96xf32>
    %143 = arith.truncf %141 : vector<16x32xf32> to vector<16x32xbf16>
    %cst_32 = arith.constant dense<0.000000e+00> : vector<16x96xf32>
    %144 = tpu.matmul %143, %15, %cst_32 {dimension_numbers = #tpu.dot_dimension_numbers<[1], [0], [0], [1], [0, 0, 1, 1], [], []>} : vector<16x32xbf16>, vector<32x96xbf16>, vector<16x96xf32> -> vector<16x96xf32>
    %145 = vector.broadcast %16 : vector<1x96xf32> to vector<16x96xf32>
    %146 = arith.addf %144, %145 : vector<16x96xf32>
    %147 = vector.extract_strided_slice %142 {offsets = [0, 0], sizes = [16, 32], strides = [1, 1]} : vector<16x96xf32> to vector<16x32xf32>
    %148 = vector.extract_strided_slice %146 {offsets = [0, 0], sizes = [16, 32], strides = [1, 1]} : vector<16x96xf32> to vector<16x32xf32>
    %149 = arith.addf %147, %148 : vector<16x32xf32>
    %150 = arith.negf %149 : vector<16x32xf32>
    %151 = math.exp %150 : vector<16x32xf32>
    %cst_33 = arith.constant 1.000000e+00 : f32
    %152 = vector.broadcast %cst_33 : f32 to vector<16x32xf32>
    %153 = arith.addf %152, %151 : vector<16x32xf32>
    %154 = arith.divf %152, %153 : vector<16x32xf32>
    %155 = vector.extract_strided_slice %142 {offsets = [0, 32], sizes = [16, 32], strides = [1, 1]} : vector<16x96xf32> to vector<16x32xf32>
    %156 = vector.extract_strided_slice %146 {offsets = [0, 32], sizes = [16, 32], strides = [1, 1]} : vector<16x96xf32> to vector<16x32xf32>
    %157 = arith.addf %155, %156 : vector<16x32xf32>
    %158 = arith.negf %157 : vector<16x32xf32>
    %159 = math.exp %158 : vector<16x32xf32>
    %cst_34 = arith.constant 1.000000e+00 : f32
    %160 = vector.broadcast %cst_34 : f32 to vector<16x32xf32>
    %161 = arith.addf %160, %159 : vector<16x32xf32>
    %162 = arith.divf %160, %161 : vector<16x32xf32>
    %163 = vector.extract_strided_slice %142 {offsets = [0, 64], sizes = [16, 32], strides = [1, 1]} : vector<16x96xf32> to vector<16x32xf32>
    %164 = vector.extract_strided_slice %146 {offsets = [0, 64], sizes = [16, 32], strides = [1, 1]} : vector<16x96xf32> to vector<16x32xf32>
    %165 = arith.mulf %154, %164 : vector<16x32xf32>
    %166 = arith.addf %163, %165 : vector<16x32xf32>
    %167 = math.tanh %166 : vector<16x32xf32>
    %cst_35 = arith.constant 1.000000e+00 : f32
    %168 = vector.broadcast %cst_35 : f32 to vector<16x32xf32>
    %169 = arith.subf %168, %162 : vector<16x32xf32>
    %170 = arith.mulf %169, %167 : vector<16x32xf32>
    %171 = arith.mulf %162, %141 : vector<16x32xf32>
    %172 = arith.addf %170, %171 : vector<16x32xf32>
    %173 = vector.extract_strided_slice %14 {offsets = [80, 0], sizes = [16, 96], strides = [1, 1]} : vector<128x96xf32> to vector<16x96xf32>
    %174 = arith.truncf %172 : vector<16x32xf32> to vector<16x32xbf16>
    %cst_36 = arith.constant dense<0.000000e+00> : vector<16x96xf32>
    %175 = tpu.matmul %174, %15, %cst_36 {dimension_numbers = #tpu.dot_dimension_numbers<[1], [0], [0], [1], [0, 0, 1, 1], [], []>} : vector<16x32xbf16>, vector<32x96xbf16>, vector<16x96xf32> -> vector<16x96xf32>
    %176 = vector.broadcast %16 : vector<1x96xf32> to vector<16x96xf32>
    %177 = arith.addf %175, %176 : vector<16x96xf32>
    %178 = vector.extract_strided_slice %173 {offsets = [0, 0], sizes = [16, 32], strides = [1, 1]} : vector<16x96xf32> to vector<16x32xf32>
    %179 = vector.extract_strided_slice %177 {offsets = [0, 0], sizes = [16, 32], strides = [1, 1]} : vector<16x96xf32> to vector<16x32xf32>
    %180 = arith.addf %178, %179 : vector<16x32xf32>
    %181 = arith.negf %180 : vector<16x32xf32>
    %182 = math.exp %181 : vector<16x32xf32>
    %cst_37 = arith.constant 1.000000e+00 : f32
    %183 = vector.broadcast %cst_37 : f32 to vector<16x32xf32>
    %184 = arith.addf %183, %182 : vector<16x32xf32>
    %185 = arith.divf %183, %184 : vector<16x32xf32>
    %186 = vector.extract_strided_slice %173 {offsets = [0, 32], sizes = [16, 32], strides = [1, 1]} : vector<16x96xf32> to vector<16x32xf32>
    %187 = vector.extract_strided_slice %177 {offsets = [0, 32], sizes = [16, 32], strides = [1, 1]} : vector<16x96xf32> to vector<16x32xf32>
    %188 = arith.addf %186, %187 : vector<16x32xf32>
    %189 = arith.negf %188 : vector<16x32xf32>
    %190 = math.exp %189 : vector<16x32xf32>
    %cst_38 = arith.constant 1.000000e+00 : f32
    %191 = vector.broadcast %cst_38 : f32 to vector<16x32xf32>
    %192 = arith.addf %191, %190 : vector<16x32xf32>
    %193 = arith.divf %191, %192 : vector<16x32xf32>
    %194 = vector.extract_strided_slice %173 {offsets = [0, 64], sizes = [16, 32], strides = [1, 1]} : vector<16x96xf32> to vector<16x32xf32>
    %195 = vector.extract_strided_slice %177 {offsets = [0, 64], sizes = [16, 32], strides = [1, 1]} : vector<16x96xf32> to vector<16x32xf32>
    %196 = arith.mulf %185, %195 : vector<16x32xf32>
    %197 = arith.addf %194, %196 : vector<16x32xf32>
    %198 = math.tanh %197 : vector<16x32xf32>
    %cst_39 = arith.constant 1.000000e+00 : f32
    %199 = vector.broadcast %cst_39 : f32 to vector<16x32xf32>
    %200 = arith.subf %199, %193 : vector<16x32xf32>
    %201 = arith.mulf %200, %198 : vector<16x32xf32>
    %202 = arith.mulf %193, %172 : vector<16x32xf32>
    %203 = arith.addf %201, %202 : vector<16x32xf32>
    %204 = vector.extract_strided_slice %14 {offsets = [96, 0], sizes = [16, 96], strides = [1, 1]} : vector<128x96xf32> to vector<16x96xf32>
    %205 = arith.truncf %203 : vector<16x32xf32> to vector<16x32xbf16>
    %cst_40 = arith.constant dense<0.000000e+00> : vector<16x96xf32>
    %206 = tpu.matmul %205, %15, %cst_40 {dimension_numbers = #tpu.dot_dimension_numbers<[1], [0], [0], [1], [0, 0, 1, 1], [], []>} : vector<16x32xbf16>, vector<32x96xbf16>, vector<16x96xf32> -> vector<16x96xf32>
    %207 = vector.broadcast %16 : vector<1x96xf32> to vector<16x96xf32>
    %208 = arith.addf %206, %207 : vector<16x96xf32>
    %209 = vector.extract_strided_slice %204 {offsets = [0, 0], sizes = [16, 32], strides = [1, 1]} : vector<16x96xf32> to vector<16x32xf32>
    %210 = vector.extract_strided_slice %208 {offsets = [0, 0], sizes = [16, 32], strides = [1, 1]} : vector<16x96xf32> to vector<16x32xf32>
    %211 = arith.addf %209, %210 : vector<16x32xf32>
    %212 = arith.negf %211 : vector<16x32xf32>
    %213 = math.exp %212 : vector<16x32xf32>
    %cst_41 = arith.constant 1.000000e+00 : f32
    %214 = vector.broadcast %cst_41 : f32 to vector<16x32xf32>
    %215 = arith.addf %214, %213 : vector<16x32xf32>
    %216 = arith.divf %214, %215 : vector<16x32xf32>
    %217 = vector.extract_strided_slice %204 {offsets = [0, 32], sizes = [16, 32], strides = [1, 1]} : vector<16x96xf32> to vector<16x32xf32>
    %218 = vector.extract_strided_slice %208 {offsets = [0, 32], sizes = [16, 32], strides = [1, 1]} : vector<16x96xf32> to vector<16x32xf32>
    %219 = arith.addf %217, %218 : vector<16x32xf32>
    %220 = arith.negf %219 : vector<16x32xf32>
    %221 = math.exp %220 : vector<16x32xf32>
    %cst_42 = arith.constant 1.000000e+00 : f32
    %222 = vector.broadcast %cst_42 : f32 to vector<16x32xf32>
    %223 = arith.addf %222, %221 : vector<16x32xf32>
    %224 = arith.divf %222, %223 : vector<16x32xf32>
    %225 = vector.extract_strided_slice %204 {offsets = [0, 64], sizes = [16, 32], strides = [1, 1]} : vector<16x96xf32> to vector<16x32xf32>
    %226 = vector.extract_strided_slice %208 {offsets = [0, 64], sizes = [16, 32], strides = [1, 1]} : vector<16x96xf32> to vector<16x32xf32>
    %227 = arith.mulf %216, %226 : vector<16x32xf32>
    %228 = arith.addf %225, %227 : vector<16x32xf32>
    %229 = math.tanh %228 : vector<16x32xf32>
    %cst_43 = arith.constant 1.000000e+00 : f32
    %230 = vector.broadcast %cst_43 : f32 to vector<16x32xf32>
    %231 = arith.subf %230, %224 : vector<16x32xf32>
    %232 = arith.mulf %231, %229 : vector<16x32xf32>
    %233 = arith.mulf %224, %203 : vector<16x32xf32>
    %234 = arith.addf %232, %233 : vector<16x32xf32>
    %235 = vector.extract_strided_slice %14 {offsets = [112, 0], sizes = [16, 96], strides = [1, 1]} : vector<128x96xf32> to vector<16x96xf32>
    %236 = arith.truncf %234 : vector<16x32xf32> to vector<16x32xbf16>
    %cst_44 = arith.constant dense<0.000000e+00> : vector<16x96xf32>
    %237 = tpu.matmul %236, %15, %cst_44 {dimension_numbers = #tpu.dot_dimension_numbers<[1], [0], [0], [1], [0, 0, 1, 1], [], []>} : vector<16x32xbf16>, vector<32x96xbf16>, vector<16x96xf32> -> vector<16x96xf32>
    %238 = vector.broadcast %16 : vector<1x96xf32> to vector<16x96xf32>
    %239 = arith.addf %237, %238 : vector<16x96xf32>
    %240 = vector.extract_strided_slice %235 {offsets = [0, 0], sizes = [16, 32], strides = [1, 1]} : vector<16x96xf32> to vector<16x32xf32>
    %241 = vector.extract_strided_slice %239 {offsets = [0, 0], sizes = [16, 32], strides = [1, 1]} : vector<16x96xf32> to vector<16x32xf32>
    %242 = arith.addf %240, %241 : vector<16x32xf32>
    %243 = arith.negf %242 : vector<16x32xf32>
    %244 = math.exp %243 : vector<16x32xf32>
    %cst_45 = arith.constant 1.000000e+00 : f32
    %245 = vector.broadcast %cst_45 : f32 to vector<16x32xf32>
    %246 = arith.addf %245, %244 : vector<16x32xf32>
    %247 = arith.divf %245, %246 : vector<16x32xf32>
    %248 = vector.extract_strided_slice %235 {offsets = [0, 32], sizes = [16, 32], strides = [1, 1]} : vector<16x96xf32> to vector<16x32xf32>
    %249 = vector.extract_strided_slice %239 {offsets = [0, 32], sizes = [16, 32], strides = [1, 1]} : vector<16x96xf32> to vector<16x32xf32>
    %250 = arith.addf %248, %249 : vector<16x32xf32>
    %251 = arith.negf %250 : vector<16x32xf32>
    %252 = math.exp %251 : vector<16x32xf32>
    %cst_46 = arith.constant 1.000000e+00 : f32
    %253 = vector.broadcast %cst_46 : f32 to vector<16x32xf32>
    %254 = arith.addf %253, %252 : vector<16x32xf32>
    %255 = arith.divf %253, %254 : vector<16x32xf32>
    %256 = vector.extract_strided_slice %235 {offsets = [0, 64], sizes = [16, 32], strides = [1, 1]} : vector<16x96xf32> to vector<16x32xf32>
    %257 = vector.extract_strided_slice %239 {offsets = [0, 64], sizes = [16, 32], strides = [1, 1]} : vector<16x96xf32> to vector<16x32xf32>
    %258 = arith.mulf %247, %257 : vector<16x32xf32>
    %259 = arith.addf %256, %258 : vector<16x32xf32>
    %260 = math.tanh %259 : vector<16x32xf32>
    %cst_47 = arith.constant 1.000000e+00 : f32
    %261 = vector.broadcast %cst_47 : f32 to vector<16x32xf32>
    %262 = arith.subf %261, %255 : vector<16x32xf32>
    %263 = arith.mulf %262, %260 : vector<16x32xf32>
    %264 = arith.mulf %255, %234 : vector<16x32xf32>
    %265 = arith.addf %263, %264 : vector<16x32xf32>
    %266 = arith.truncf %265 : vector<16x32xf32> to vector<16x32xbf16>
    %c0_48 = arith.constant 0 : index
    %c0_49 = arith.constant 0 : index
    %267 = vector.load %arg8[%c0_48, %c0_49] : memref<32x160xbf16, #tpu.memory_space<vmem>>, vector<32x160xbf16>
    %cst_50 = arith.constant dense<0.000000e+00> : vector<16x160xf32>
    %268 = tpu.matmul %266, %267, %cst_50 {dimension_numbers = #tpu.dot_dimension_numbers<[1], [0], [0], [1], [0, 0, 1, 1], [], []>} : vector<16x32xbf16>, vector<32x160xbf16>, vector<16x160xf32> -> vector<16x160xf32>
    %c0_51 = arith.constant 0 : index
    %c0_52 = arith.constant 0 : index
    %269 = vector.load %arg9[%c0_51, %c0_52] : memref<1x160xf32, #tpu.memory_space<vmem>>, vector<1x160xf32>
    %270 = vector.broadcast %269 : vector<1x160xf32> to vector<16x160xf32>
    %271 = arith.addf %268, %270 : vector<16x160xf32>
    %c0_53 = arith.constant 0 : index
    %c0_54 = arith.constant 0 : index
    %272 = vector.load %arg10[%c0_53, %c0_54] : memref<32x160xbf16, #tpu.memory_space<vmem>>, vector<32x160xbf16>
    %cst_55 = arith.constant dense<0.000000e+00> : vector<16x160xf32>
    %273 = tpu.matmul %266, %272, %cst_55 {dimension_numbers = #tpu.dot_dimension_numbers<[1], [0], [0], [1], [0, 0, 1, 1], [], []>} : vector<16x32xbf16>, vector<32x160xbf16>, vector<16x160xf32> -> vector<16x160xf32>
    %c0_56 = arith.constant 0 : index
    %c0_57 = arith.constant 0 : index
    %274 = vector.load %arg11[%c0_56, %c0_57] : memref<1x160xf32, #tpu.memory_space<vmem>>, vector<1x160xf32>
    %275 = vector.broadcast %274 : vector<1x160xf32> to vector<16x160xf32>
    %276 = arith.addf %273, %275 : vector<16x160xf32>
    %c0_58 = arith.constant 0 : index
    %c0_59 = arith.constant 0 : index
    %277 = vector.load %arg14[%c0_58, %c0_59] : memref<16x16xf32, #tpu.memory_space<vmem>>, vector<16x16xf32>
    %c0_60 = arith.constant 0 : index
    %c0_61 = arith.constant 0 : index
    %278 = vector.load %arg15[%c0_60, %c0_61] : memref<16x16xf32, #tpu.memory_space<vmem>>, vector<16x16xf32>
    %cst_62 = arith.constant dense<0.000000e+00> : vector<16x160xf32>
    %279 = tpu.matmul %277, %271, %cst_62 {dimension_numbers = #tpu.dot_dimension_numbers<[1], [0], [0], [1], [0, 0, 1, 1], [], []>} : vector<16x16xf32>, vector<16x160xf32>, vector<16x160xf32> -> vector<16x160xf32>
    %cst_63 = arith.constant dense<0.000000e+00> : vector<16x160xf32>
    %280 = tpu.matmul %278, %276, %cst_63 {dimension_numbers = #tpu.dot_dimension_numbers<[1], [0], [0], [1], [0, 0, 1, 1], [], []>} : vector<16x16xf32>, vector<16x160xf32>, vector<16x160xf32> -> vector<16x160xf32>
    %281 = arith.addf %279, %280 : vector<16x160xf32>
    %cst_64 = arith.constant 0.000000e+00 : f32
    %282 = vector.broadcast %cst_64 : f32 to vector<16x160xf32>
    %283 = arith.cmpf ogt, %281, %282 : vector<16x160xf32>
    %cst_65 = arith.constant 2.000000e-01 : f32
    %284 = vector.broadcast %cst_65 : f32 to vector<16x160xf32>
    %285 = arith.mulf %284, %281 : vector<16x160xf32>
    %286 = arith.select %283, %281, %285 : vector<16x160xi1>, vector<16x160xf32>
    %287 = arith.truncf %286 : vector<16x160xf32> to vector<16x160xbf16>
    %c0_66 = arith.constant 0 : index
    %c0_67 = arith.constant 0 : index
    %288 = vector.load %arg12[%c0_66, %c0_67] : memref<160x5xbf16, #tpu.memory_space<vmem>>, vector<160x5xbf16>
    %cst_68 = arith.constant dense<0.000000e+00> : vector<16x5xf32>
    %289 = tpu.matmul %287, %288, %cst_68 {dimension_numbers = #tpu.dot_dimension_numbers<[1], [0], [0], [1], [0, 0, 1, 1], [], []>} : vector<16x160xbf16>, vector<160x5xbf16>, vector<16x5xf32> -> vector<16x5xf32>
    %cst_69 = arith.constant 0.000000e+00 : f32
    %290 = vector.broadcast %cst_69 : f32 to vector<16x32xf32>
    %291 = vector.extract_strided_slice %289 {offsets = [0, 0], sizes = [16, 1], strides = [1, 1]} : vector<16x5xf32> to vector<16x1xf32>
    %cst_70 = arith.constant 5.000000e-01 : f32
    %292 = vector.broadcast %cst_70 : f32 to vector<16x16xf32>
    %293 = arith.cmpf ogt, %278, %292 : vector<16x16xf32>
    %cst_71 = arith.constant -1.000000e+30 : f32
    %294 = vector.shape_cast %291 : vector<16x1xf32> to vector<16x1xf32>
    %295 = vector.broadcast %294 : vector<16x1xf32> to vector<16x16xf32>
    %296 = vector.broadcast %cst_71 : f32 to vector<16x16xf32>
    %297 = arith.select %293, %295, %296 : vector<16x16xi1>, vector<16x16xf32>
    %cst_72 = arith.constant dense<0xFF800000> : vector<16xf32>
    %298 = vector.multi_reduction <maximumf>, %297, %cst_72 [0] : vector<16x16xf32> to vector<16xf32>
    %299 = vector.shape_cast %298 : vector<16xf32> to vector<1x16xf32>
    %300 = vector.broadcast %299 : vector<1x16xf32> to vector<16x16xf32>
    %301 = arith.mulf %278, %300 : vector<16x16xf32>
    %cst_73 = arith.constant dense<0.000000e+00> : vector<16xf32>
    %302 = vector.multi_reduction <add>, %301, %cst_73 [1] : vector<16x16xf32> to vector<16xf32>
    %303 = vector.shape_cast %302 : vector<16xf32> to vector<16x1xf32>
    %304 = arith.subf %291, %303 : vector<16x1xf32>
    %305 = math.exp %304 : vector<16x1xf32>
    %306 = vector.broadcast %305 : vector<16x1xf32> to vector<16x16xf32>
    %307 = arith.mulf %278, %306 : vector<16x16xf32>
    %cst_74 = arith.constant dense<0.000000e+00> : vector<16xf32>
    %308 = vector.multi_reduction <add>, %307, %cst_74 [0] : vector<16x16xf32> to vector<16xf32>
    %309 = vector.shape_cast %308 : vector<16xf32> to vector<1x16xf32>
    %cst_75 = arith.constant 0.000000e+00 : f32
    %310 = vector.broadcast %cst_75 : f32 to vector<1x16xf32>
    %311 = arith.cmpf ogt, %309, %310 : vector<1x16xf32>
    %cst_76 = arith.constant 1.000000e+00 : f32
    %312 = vector.broadcast %cst_76 : f32 to vector<1x16xf32>
    %313 = arith.select %311, %309, %312 : vector<1x16xi1>, vector<1x16xf32>
    %cst_77 = arith.constant 1.000000e+00 : f32
    %314 = vector.broadcast %cst_77 : f32 to vector<1x16xf32>
    %315 = arith.divf %314, %313 : vector<1x16xf32>
    %316 = vector.broadcast %315 : vector<1x16xf32> to vector<16x16xf32>
    %317 = arith.mulf %278, %316 : vector<16x16xf32>
    %cst_78 = arith.constant dense<0.000000e+00> : vector<16xf32>
    %318 = vector.multi_reduction <add>, %317, %cst_78 [1] : vector<16x16xf32> to vector<16xf32>
    %319 = vector.shape_cast %318 : vector<16xf32> to vector<16x1xf32>
    %320 = arith.mulf %305, %319 : vector<16x1xf32>
    %c0_79 = arith.constant 0 : index
    %c0_80 = arith.constant 0 : index
    %321 = vector.load %arg21[%c0_79, %c0_80] : memref<16x5xf32, #tpu.memory_space<vmem>>, vector<16x1xf32>
    tpu.vector_store %arg21[%c0_79, %c0_80], %320 {strides = array<i32>} : memref<16x5xf32, #tpu.memory_space<vmem>>, vector<16x1xf32>,
    %322 = vector.extract_strided_slice %279 {offsets = [0, 0], sizes = [16, 32], strides = [1, 1]} : vector<16x160xf32> to vector<16x32xf32>
    %323 = vector.broadcast %320 : vector<16x1xf32> to vector<16x32xf32>
    %324 = arith.mulf %323, %322 : vector<16x32xf32>
    %325 = arith.addf %290, %324 : vector<16x32xf32>
    %326 = vector.extract_strided_slice %289 {offsets = [0, 1], sizes = [16, 1], strides = [1, 1]} : vector<16x5xf32> to vector<16x1xf32>
    %cst_81 = arith.constant 5.000000e-01 : f32
    %327 = vector.broadcast %cst_81 : f32 to vector<16x16xf32>
    %328 = arith.cmpf ogt, %278, %327 : vector<16x16xf32>
    %cst_82 = arith.constant -1.000000e+30 : f32
    %329 = vector.shape_cast %326 : vector<16x1xf32> to vector<16x1xf32>
    %330 = vector.broadcast %329 : vector<16x1xf32> to vector<16x16xf32>
    %331 = vector.broadcast %cst_82 : f32 to vector<16x16xf32>
    %332 = arith.select %328, %330, %331 : vector<16x16xi1>, vector<16x16xf32>
    %cst_83 = arith.constant dense<0xFF800000> : vector<16xf32>
    %333 = vector.multi_reduction <maximumf>, %332, %cst_83 [0] : vector<16x16xf32> to vector<16xf32>
    %334 = vector.shape_cast %333 : vector<16xf32> to vector<1x16xf32>
    %335 = vector.broadcast %334 : vector<1x16xf32> to vector<16x16xf32>
    %336 = arith.mulf %278, %335 : vector<16x16xf32>
    %cst_84 = arith.constant dense<0.000000e+00> : vector<16xf32>
    %337 = vector.multi_reduction <add>, %336, %cst_84 [1] : vector<16x16xf32> to vector<16xf32>
    %338 = vector.shape_cast %337 : vector<16xf32> to vector<16x1xf32>
    %339 = arith.subf %326, %338 : vector<16x1xf32>
    %340 = math.exp %339 : vector<16x1xf32>
    %341 = vector.broadcast %340 : vector<16x1xf32> to vector<16x16xf32>
    %342 = arith.mulf %278, %341 : vector<16x16xf32>
    %cst_85 = arith.constant dense<0.000000e+00> : vector<16xf32>
    %343 = vector.multi_reduction <add>, %342, %cst_85 [0] : vector<16x16xf32> to vector<16xf32>
    %344 = vector.shape_cast %343 : vector<16xf32> to vector<1x16xf32>
    %cst_86 = arith.constant 0.000000e+00 : f32
    %345 = vector.broadcast %cst_86 : f32 to vector<1x16xf32>
    %346 = arith.cmpf ogt, %344, %345 : vector<1x16xf32>
    %cst_87 = arith.constant 1.000000e+00 : f32
    %347 = vector.broadcast %cst_87 : f32 to vector<1x16xf32>
    %348 = arith.select %346, %344, %347 : vector<1x16xi1>, vector<1x16xf32>
    %cst_88 = arith.constant 1.000000e+00 : f32
    %349 = vector.broadcast %cst_88 : f32 to vector<1x16xf32>
    %350 = arith.divf %349, %348 : vector<1x16xf32>
    %351 = vector.broadcast %350 : vector<1x16xf32> to vector<16x16xf32>
    %352 = arith.mulf %278, %351 : vector<16x16xf32>
    %cst_89 = arith.constant dense<0.000000e+00> : vector<16xf32>
    %353 = vector.multi_reduction <add>, %352, %cst_89 [1] : vector<16x16xf32> to vector<16xf32>
    %354 = vector.shape_cast %353 : vector<16xf32> to vector<16x1xf32>
    %355 = arith.mulf %340, %354 : vector<16x1xf32>
    %c0_90 = arith.constant 0 : index
    %c1 = arith.constant 1 : index
    %356 = vector.load %arg21[%c0_90, %c1] : memref<16x5xf32, #tpu.memory_space<vmem>>, vector<16x1xf32>
    tpu.vector_store %arg21[%c0_90, %c1], %355 {strides = array<i32>} : memref<16x5xf32, #tpu.memory_space<vmem>>, vector<16x1xf32>,
    %357 = vector.extract_strided_slice %279 {offsets = [0, 32], sizes = [16, 32], strides = [1, 1]} : vector<16x160xf32> to vector<16x32xf32>
    %358 = vector.broadcast %355 : vector<16x1xf32> to vector<16x32xf32>
    %359 = arith.mulf %358, %357 : vector<16x32xf32>
    %360 = arith.addf %325, %359 : vector<16x32xf32>
    %361 = vector.extract_strided_slice %289 {offsets = [0, 2], sizes = [16, 1], strides = [1, 1]} : vector<16x5xf32> to vector<16x1xf32>
    %cst_91 = arith.constant 5.000000e-01 : f32
    %362 = vector.broadcast %cst_91 : f32 to vector<16x16xf32>
    %363 = arith.cmpf ogt, %278, %362 : vector<16x16xf32>
    %cst_92 = arith.constant -1.000000e+30 : f32
    %364 = vector.shape_cast %361 : vector<16x1xf32> to vector<16x1xf32>
    %365 = vector.broadcast %364 : vector<16x1xf32> to vector<16x16xf32>
    %366 = vector.broadcast %cst_92 : f32 to vector<16x16xf32>
    %367 = arith.select %363, %365, %366 : vector<16x16xi1>, vector<16x16xf32>
    %cst_93 = arith.constant dense<0xFF800000> : vector<16xf32>
    %368 = vector.multi_reduction <maximumf>, %367, %cst_93 [0] : vector<16x16xf32> to vector<16xf32>
    %369 = vector.shape_cast %368 : vector<16xf32> to vector<1x16xf32>
    %370 = vector.broadcast %369 : vector<1x16xf32> to vector<16x16xf32>
    %371 = arith.mulf %278, %370 : vector<16x16xf32>
    %cst_94 = arith.constant dense<0.000000e+00> : vector<16xf32>
    %372 = vector.multi_reduction <add>, %371, %cst_94 [1] : vector<16x16xf32> to vector<16xf32>
    %373 = vector.shape_cast %372 : vector<16xf32> to vector<16x1xf32>
    %374 = arith.subf %361, %373 : vector<16x1xf32>
    %375 = math.exp %374 : vector<16x1xf32>
    %376 = vector.broadcast %375 : vector<16x1xf32> to vector<16x16xf32>
    %377 = arith.mulf %278, %376 : vector<16x16xf32>
    %cst_95 = arith.constant dense<0.000000e+00> : vector<16xf32>
    %378 = vector.multi_reduction <add>, %377, %cst_95 [0] : vector<16x16xf32> to vector<16xf32>
    %379 = vector.shape_cast %378 : vector<16xf32> to vector<1x16xf32>
    %cst_96 = arith.constant 0.000000e+00 : f32
    %380 = vector.broadcast %cst_96 : f32 to vector<1x16xf32>
    %381 = arith.cmpf ogt, %379, %380 : vector<1x16xf32>
    %cst_97 = arith.constant 1.000000e+00 : f32
    %382 = vector.broadcast %cst_97 : f32 to vector<1x16xf32>
    %383 = arith.select %381, %379, %382 : vector<1x16xi1>, vector<1x16xf32>
    %cst_98 = arith.constant 1.000000e+00 : f32
    %384 = vector.broadcast %cst_98 : f32 to vector<1x16xf32>
    %385 = arith.divf %384, %383 : vector<1x16xf32>
    %386 = vector.broadcast %385 : vector<1x16xf32> to vector<16x16xf32>
    %387 = arith.mulf %278, %386 : vector<16x16xf32>
    %cst_99 = arith.constant dense<0.000000e+00> : vector<16xf32>
    %388 = vector.multi_reduction <add>, %387, %cst_99 [1] : vector<16x16xf32> to vector<16xf32>
    %389 = vector.shape_cast %388 : vector<16xf32> to vector<16x1xf32>
    %390 = arith.mulf %375, %389 : vector<16x1xf32>
    %c0_100 = arith.constant 0 : index
    %c2 = arith.constant 2 : index
    %391 = vector.load %arg21[%c0_100, %c2] : memref<16x5xf32, #tpu.memory_space<vmem>>, vector<16x1xf32>
    tpu.vector_store %arg21[%c0_100, %c2], %390 {strides = array<i32>} : memref<16x5xf32, #tpu.memory_space<vmem>>, vector<16x1xf32>,
    %392 = vector.extract_strided_slice %279 {offsets = [0, 64], sizes = [16, 32], strides = [1, 1]} : vector<16x160xf32> to vector<16x32xf32>
    %393 = vector.broadcast %390 : vector<16x1xf32> to vector<16x32xf32>
    %394 = arith.mulf %393, %392 : vector<16x32xf32>
    %395 = arith.addf %360, %394 : vector<16x32xf32>
    %396 = vector.extract_strided_slice %289 {offsets = [0, 3], sizes = [16, 1], strides = [1, 1]} : vector<16x5xf32> to vector<16x1xf32>
    %cst_101 = arith.constant 5.000000e-01 : f32
    %397 = vector.broadcast %cst_101 : f32 to vector<16x16xf32>
    %398 = arith.cmpf ogt, %278, %397 : vector<16x16xf32>
    %cst_102 = arith.constant -1.000000e+30 : f32
    %399 = vector.shape_cast %396 : vector<16x1xf32> to vector<16x1xf32>
    %400 = vector.broadcast %399 : vector<16x1xf32> to vector<16x16xf32>
    %401 = vector.broadcast %cst_102 : f32 to vector<16x16xf32>
    %402 = arith.select %398, %400, %401 : vector<16x16xi1>, vector<16x16xf32>
    %cst_103 = arith.constant dense<0xFF800000> : vector<16xf32>
    %403 = vector.multi_reduction <maximumf>, %402, %cst_103 [0] : vector<16x16xf32> to vector<16xf32>
    %404 = vector.shape_cast %403 : vector<16xf32> to vector<1x16xf32>
    %405 = vector.broadcast %404 : vector<1x16xf32> to vector<16x16xf32>
    %406 = arith.mulf %278, %405 : vector<16x16xf32>
    %cst_104 = arith.constant dense<0.000000e+00> : vector<16xf32>
    %407 = vector.multi_reduction <add>, %406, %cst_104 [1] : vector<16x16xf32> to vector<16xf32>
    %408 = vector.shape_cast %407 : vector<16xf32> to vector<16x1xf32>
    %409 = arith.subf %396, %408 : vector<16x1xf32>
    %410 = math.exp %409 : vector<16x1xf32>
    %411 = vector.broadcast %410 : vector<16x1xf32> to vector<16x16xf32>
    %412 = arith.mulf %278, %411 : vector<16x16xf32>
    %cst_105 = arith.constant dense<0.000000e+00> : vector<16xf32>
    %413 = vector.multi_reduction <add>, %412, %cst_105 [0] : vector<16x16xf32> to vector<16xf32>
    %414 = vector.shape_cast %413 : vector<16xf32> to vector<1x16xf32>
    %cst_106 = arith.constant 0.000000e+00 : f32
    %415 = vector.broadcast %cst_106 : f32 to vector<1x16xf32>
    %416 = arith.cmpf ogt, %414, %415 : vector<1x16xf32>
    %cst_107 = arith.constant 1.000000e+00 : f32
    %417 = vector.broadcast %cst_107 : f32 to vector<1x16xf32>
    %418 = arith.select %416, %414, %417 : vector<1x16xi1>, vector<1x16xf32>
    %cst_108 = arith.constant 1.000000e+00 : f32
    %419 = vector.broadcast %cst_108 : f32 to vector<1x16xf32>
    %420 = arith.divf %419, %418 : vector<1x16xf32>
    %421 = vector.broadcast %420 : vector<1x16xf32> to vector<16x16xf32>
    %422 = arith.mulf %278, %421 : vector<16x16xf32>
    %cst_109 = arith.constant dense<0.000000e+00> : vector<16xf32>
    %423 = vector.multi_reduction <add>, %422, %cst_109 [1] : vector<16x16xf32> to vector<16xf32>
    %424 = vector.shape_cast %423 : vector<16xf32> to vector<16x1xf32>
    %425 = arith.mulf %410, %424 : vector<16x1xf32>
    %c0_110 = arith.constant 0 : index
    %c3 = arith.constant 3 : index
    %426 = vector.load %arg21[%c0_110, %c3] : memref<16x5xf32, #tpu.memory_space<vmem>>, vector<16x1xf32>
    tpu.vector_store %arg21[%c0_110, %c3], %425 {strides = array<i32>} : memref<16x5xf32, #tpu.memory_space<vmem>>, vector<16x1xf32>,
    %427 = vector.extract_strided_slice %279 {offsets = [0, 96], sizes = [16, 32], strides = [1, 1]} : vector<16x160xf32> to vector<16x32xf32>
    %428 = vector.broadcast %425 : vector<16x1xf32> to vector<16x32xf32>
    %429 = arith.mulf %428, %427 : vector<16x32xf32>
    %430 = arith.addf %395, %429 : vector<16x32xf32>
    %431 = vector.extract_strided_slice %289 {offsets = [0, 4], sizes = [16, 1], strides = [1, 1]} : vector<16x5xf32> to vector<16x1xf32>
    %cst_111 = arith.constant 5.000000e-01 : f32
    %432 = vector.broadcast %cst_111 : f32 to vector<16x16xf32>
    %433 = arith.cmpf ogt, %278, %432 : vector<16x16xf32>
    %cst_112 = arith.constant -1.000000e+30 : f32
    %434 = vector.shape_cast %431 : vector<16x1xf32> to vector<16x1xf32>
    %435 = vector.broadcast %434 : vector<16x1xf32> to vector<16x16xf32>
    %436 = vector.broadcast %cst_112 : f32 to vector<16x16xf32>
    %437 = arith.select %433, %435, %436 : vector<16x16xi1>, vector<16x16xf32>
    %cst_113 = arith.constant dense<0xFF800000> : vector<16xf32>
    %438 = vector.multi_reduction <maximumf>, %437, %cst_113 [0] : vector<16x16xf32> to vector<16xf32>
    %439 = vector.shape_cast %438 : vector<16xf32> to vector<1x16xf32>
    %440 = vector.broadcast %439 : vector<1x16xf32> to vector<16x16xf32>
    %441 = arith.mulf %278, %440 : vector<16x16xf32>
    %cst_114 = arith.constant dense<0.000000e+00> : vector<16xf32>
    %442 = vector.multi_reduction <add>, %441, %cst_114 [1] : vector<16x16xf32> to vector<16xf32>
    %443 = vector.shape_cast %442 : vector<16xf32> to vector<16x1xf32>
    %444 = arith.subf %431, %443 : vector<16x1xf32>
    %445 = math.exp %444 : vector<16x1xf32>
    %446 = vector.broadcast %445 : vector<16x1xf32> to vector<16x16xf32>
    %447 = arith.mulf %278, %446 : vector<16x16xf32>
    %cst_115 = arith.constant dense<0.000000e+00> : vector<16xf32>
    %448 = vector.multi_reduction <add>, %447, %cst_115 [0] : vector<16x16xf32> to vector<16xf32>
    %449 = vector.shape_cast %448 : vector<16xf32> to vector<1x16xf32>
    %cst_116 = arith.constant 0.000000e+00 : f32
    %450 = vector.broadcast %cst_116 : f32 to vector<1x16xf32>
    %451 = arith.cmpf ogt, %449, %450 : vector<1x16xf32>
    %cst_117 = arith.constant 1.000000e+00 : f32
    %452 = vector.broadcast %cst_117 : f32 to vector<1x16xf32>
    %453 = arith.select %451, %449, %452 : vector<1x16xi1>, vector<1x16xf32>
    %cst_118 = arith.constant 1.000000e+00 : f32
    %454 = vector.broadcast %cst_118 : f32 to vector<1x16xf32>
    %455 = arith.divf %454, %453 : vector<1x16xf32>
    %456 = vector.broadcast %455 : vector<1x16xf32> to vector<16x16xf32>
    %457 = arith.mulf %278, %456 : vector<16x16xf32>
    %cst_119 = arith.constant dense<0.000000e+00> : vector<16xf32>
    %458 = vector.multi_reduction <add>, %457, %cst_119 [1] : vector<16x16xf32> to vector<16xf32>
    %459 = vector.shape_cast %458 : vector<16xf32> to vector<16x1xf32>
    %460 = arith.mulf %445, %459 : vector<16x1xf32>
    %c0_120 = arith.constant 0 : index
    %c4 = arith.constant 4 : index
    %461 = vector.load %arg21[%c0_120, %c4] : memref<16x5xf32, #tpu.memory_space<vmem>>, vector<16x1xf32>
    tpu.vector_store %arg21[%c0_120, %c4], %460 {strides = array<i32>} : memref<16x5xf32, #tpu.memory_space<vmem>>, vector<16x1xf32>,
    %462 = vector.extract_strided_slice %279 {offsets = [0, 128], sizes = [16, 32], strides = [1, 1]} : vector<16x160xf32> to vector<16x32xf32>
    %463 = vector.broadcast %460 : vector<16x1xf32> to vector<16x32xf32>
    %464 = arith.mulf %463, %462 : vector<16x32xf32>
    %465 = arith.addf %430, %464 : vector<16x32xf32>
    %cst_121 = arith.constant 2.000000e-01 : f32
    %466 = vector.broadcast %cst_121 : f32 to vector<16x32xf32>
    %467 = arith.mulf %465, %466 : vector<16x32xf32>
    %c0_122 = arith.constant 0 : index
    %c0_123 = arith.constant 0 : index
    %468 = vector.load %arg16[%c0_122, %c0_123] : memref<2x16xf32, #tpu.memory_space<vmem>>, vector<2x16xf32>
    %cst_124 = arith.constant dense<0.000000e+00> : vector<2x32xf32>
    %469 = tpu.matmul %468, %467, %cst_124 {dimension_numbers = #tpu.dot_dimension_numbers<[1], [0], [0], [1], [0, 0, 1, 1], [], []>} : vector<2x16xf32>, vector<16x32xf32>, vector<2x32xf32> -> vector<2x32xf32>
    %c0_125 = arith.constant 0 : index
    %c0_126 = arith.constant 0 : index
    %470 = vector.load %arg13[%c0_125, %c0_126] : memref<1x32xf32, #tpu.memory_space<vmem>>, vector<1x32xf32>
    %471 = vector.broadcast %470 : vector<1x32xf32> to vector<2x32xf32>
    %472 = arith.addf %469, %471 : vector<2x32xf32>
    %c0_127 = arith.constant 0 : index
    %c0_128 = arith.constant 0 : index
    %473 = vector.load %arg20[%c0_127, %c0_128] : memref<2x32xf32, #tpu.memory_space<vmem>>, vector<2x32xf32>
    tpu.vector_store %arg20[%c0_127, %c0_128], %472 {strides = array<i32>} : memref<2x32xf32, #tpu.memory_space<vmem>>, vector<2x32xf32>,
    %c0_129 = arith.constant 0 : index
    %c0_130 = arith.constant 0 : index
    %474 = vector.load %arg18[%c0_129, %c0_130] : memref<8x36xbf16, #tpu.memory_space<vmem>>, vector<8x36xbf16>
    %c0_131 = arith.constant 0 : index
    %c0_132 = arith.constant 0 : index
    %475 = vector.load %arg17[%c0_131, %c0_132] : memref<36x128xf32, #tpu.memory_space<vmem>>, vector<36x128xf32>
    %476 = arith.truncf %475 : vector<36x128xf32> to vector<36x128xbf16>
    %cst_133 = arith.constant dense<0.000000e+00> : vector<8x128xf32>
    %477 = tpu.matmul %474, %476, %cst_133 {dimension_numbers = #tpu.dot_dimension_numbers<[1], [0], [0], [1], [0, 0, 1, 1], [], []>} : vector<8x36xbf16>, vector<36x128xbf16>, vector<8x128xf32> -> vector<8x128xf32>
    %c0_134 = arith.constant 0 : index
    %c0_135 = arith.constant 0 : index
    %478 = vector.load %arg19[%c0_134, %c0_135] : memref<8x1xf32, #tpu.memory_space<vmem>>, vector<8x1xf32>
    %479 = vector.broadcast %478 : vector<8x1xf32> to vector<8x128xf32>
    %480 = arith.addf %477, %479 : vector<8x128xf32>
    %cst_136 = arith.constant 0.000000e+00 : f32
    %481 = vector.broadcast %cst_136 : f32 to vector<8x128xf32>
    %482 = arith.maximumf %480, %481 : vector<8x128xf32>
    %c0_137 = arith.constant 0 : index
    %c0_138 = arith.constant 0 : index
    %483 = vector.load %arg22[%c0_137, %c0_138] : memref<8x128xf32, #tpu.memory_space<vmem>>, vector<8x128xf32>
    tpu.vector_store %arg22[%c0_137, %c0_138], %482 {strides = array<i32>} : memref<8x128xf32, #tpu.memory_space<vmem>>, vector<8x128xf32>,
    return
  }
  func.func @transform_0(%arg0: i32) -> (i32, i32) {
    %c0_i32 = arith.constant 0 : i32
    %c0_i32_0 = arith.constant 0 : i32
    %c0_i32_1 = arith.constant 0 : i32
    return %c0_i32, %c0_i32_0 : i32, i32
  }
  func.func @transform_1(%arg0: i32) -> (i32, i32) {
    %c0_i32 = arith.constant 0 : i32
    %c0_i32_0 = arith.constant 0 : i32
    %c0_i32_1 = arith.constant 0 : i32
    return %c0_i32, %c0_i32_0 : i32, i32
  }
  func.func @transform_2(%arg0: i32) -> (i32, i32) {
    %c0_i32 = arith.constant 0 : i32
    %c0_i32_0 = arith.constant 0 : i32
    %c0_i32_1 = arith.constant 0 : i32
    return %c0_i32, %c0_i32_0 : i32, i32
  }
  func.func @transform_3(%arg0: i32) -> (i32, i32) {
    %c0_i32 = arith.constant 0 : i32
    %c0_i32_0 = arith.constant 0 : i32
    %c0_i32_1 = arith.constant 0 : i32
    return %c0_i32, %c0_i32_0 : i32, i32
  }
  func.func @transform_4(%arg0: i32) -> (i32, i32) {
    %c0_i32 = arith.constant 0 : i32
    %c0_i32_0 = arith.constant 0 : i32
    %c0_i32_1 = arith.constant 0 : i32
    return %c0_i32, %c0_i32_0 : i32, i32
  }
  func.func @transform_5(%arg0: i32) -> (i32, i32) {
    %c0_i32 = arith.constant 0 : i32
    %c0_i32_0 = arith.constant 0 : i32
    %c0_i32_1 = arith.constant 0 : i32
    return %c0_i32, %c0_i32_0 : i32, i32
  }
  func.func @transform_6(%arg0: i32) -> (i32, i32) {
    %c0_i32 = arith.constant 0 : i32
    %c0_i32_0 = arith.constant 0 : i32
    %c0_i32_1 = arith.constant 0 : i32
    return %c0_i32, %c0_i32_0 : i32, i32
  }
  func.func @transform_7(%arg0: i32) -> (i32, i32) {
    %c0_i32 = arith.constant 0 : i32
    %c0_i32_0 = arith.constant 0 : i32
    %c0_i32_1 = arith.constant 0 : i32
    return %c0_i32, %c0_i32_0 : i32, i32
  }
  func.func @transform_8(%arg0: i32) -> (i32, i32) {
    %c0_i32 = arith.constant 0 : i32
    %c0_i32_0 = arith.constant 0 : i32
    %c0_i32_1 = arith.constant 0 : i32
    return %c0_i32, %c0_i32_0 : i32, i32
  }
  func.func @transform_9(%arg0: i32) -> (i32, i32) {
    %c0_i32 = arith.constant 0 : i32
    %c0_i32_0 = arith.constant 0 : i32
    %c0_i32_1 = arith.constant 0 : i32
    return %c0_i32, %c0_i32_0 : i32, i32
  }
  func.func @transform_10(%arg0: i32) -> (i32, i32) {
    %c0_i32 = arith.constant 0 : i32
    %c0_i32_0 = arith.constant 0 : i32
    %c0_i32_1 = arith.constant 0 : i32
    return %c0_i32, %c0_i32_0 : i32, i32
  }
  func.func @transform_11(%arg0: i32) -> (i32, i32) {
    %c0_i32 = arith.constant 0 : i32
    %c0_i32_0 = arith.constant 0 : i32
    %c0_i32_1 = arith.constant 0 : i32
    return %c0_i32, %c0_i32_0 : i32, i32
  }
  func.func @transform_12(%arg0: i32) -> (i32, i32) {
    %c0_i32 = arith.constant 0 : i32
    %c0_i32_0 = arith.constant 0 : i32
    %c0_i32_1 = arith.constant 0 : i32
    return %c0_i32, %c0_i32_0 : i32, i32
  }
  func.func @transform_13(%arg0: i32) -> (i32, i32) {
    %c0_i32 = arith.constant 0 : i32
    %c0_i32_0 = arith.constant 0 : i32
    %c0_i32_1 = arith.constant 0 : i32
    return %c0_i32, %c0_i32_0 : i32, i32
  }
  func.func @transform_14(%arg0: i32) -> (i32, i32) {
    %c0_i32 = arith.constant 0 : i32
    %c0_i32_0 = arith.constant 0 : i32
    %c0_i32_1 = arith.constant 0 : i32
    return %c0_i32, %c0_i32_0 : i32, i32
  }
  func.func @transform_15(%arg0: i32) -> (i32, i32) {
    %c0_i32 = arith.constant 0 : i32
    %c0_i32_0 = arith.constant 0 : i32
    %c0_i32_1 = arith.constant 0 : i32
    return %c0_i32, %c0_i32_0 : i32, i32
  }
  func.func @transform_16(%arg0: i32) -> (i32, i32) {
    %c0_i32 = arith.constant 0 : i32
    %c0_i32_0 = arith.constant 0 : i32
    %c0_i32_1 = arith.constant 0 : i32
    return %c0_i32, %c0_i32_0 : i32, i32
  }
  func.func @transform_17(%arg0: i32) -> (i32, i32) {
    %c0_i32 = arith.constant 0 : i32
    %c0_i32_0 = arith.constant 0 : i32
    %c0_i32_1 = arith.constant 0 : i32
    return %c0_i32, %c0_i32_0 : i32, i32
  }
  func.func @transform_18(%arg0: i32) -> (i32, i32) {
    %c0_i32 = arith.constant 0 : i32
    %c0_i32_0 = arith.constant 0 : i32
    %c0_i32_1 = arith.constant 0 : i32
    return %c0_i32, %c0_i32_0 : i32, i32
  }
  func.func @transform_19(%arg0: i32) -> (i32, i32) {
    %c0_i32 = arith.constant 0 : i32
    %c0_i32_0 = arith.constant 0 : i32
    %c0_i32_1 = arith.constant 0 : i32
    return %c0_i32, %c0_i32_0 : i32, i32
  }
  func.func @transform_20(%arg0: i32) -> (i32, i32) {
    %c0_i32 = arith.constant 0 : i32
    %c0_i32_0 = arith.constant 0 : i32
    %c0_i32_1 = arith.constant 0 : i32
    return %c0_i32, %c0_i32_0 : i32, i32
  }
  func.func @transform_21(%arg0: i32) -> (i32, i32) {
    %c0_i32 = arith.constant 0 : i32
    %c0_i32_0 = arith.constant 0 : i32
    %c0_i32_1 = arith.constant 0 : i32
    return %c0_i32, %c0_i32_0 : i32, i32
  }
}

module attributes {stable_mosaic.version = 11 : i64} {
  func.func @_tail_kernel(%arg0: i32, %arg1: memref<2x512xf32, #tpu.memory_space<vmem>>, %arg2: memref<2x32xf32, #tpu.memory_space<vmem>>, %arg3: memref<2x8xf32, #tpu.memory_space<vmem>>, %arg4: memref<512x32xbf16, #tpu.memory_space<vmem>>, %arg5: memref<1x32xf32, #tpu.memory_space<vmem>>, %arg6: memref<8x8xbf16, #tpu.memory_space<vmem>>, %arg7: memref<1x8xf32, #tpu.memory_space<vmem>>, %arg8: memref<32x32xbf16, #tpu.memory_space<vmem>>, %arg9: memref<32x32xbf16, #tpu.memory_space<vmem>>, %arg10: memref<8x32xbf16, #tpu.memory_space<vmem>>, %arg11: memref<1x32xf32, #tpu.memory_space<vmem>>, %arg12: memref<32x1xbf16, #tpu.memory_space<vmem>>, %arg13: memref<1x1xf32, #tpu.memory_space<vmem>>, %arg14: memref<32x4xbf16, #tpu.memory_space<vmem>>, %arg15: memref<1x4xf32, #tpu.memory_space<vmem>>, %arg16: memref<2x4xf32, #tpu.memory_space<vmem>>) attributes {dimension_semantics = [#tpu.dimension_semantics<arbitrary>], iteration_bounds = array<i64: 1>, scalar_prefetch = 0 : i64, scratch_operands = 0 : i64, tpu.core_type = #tpu.core_type<tc>, window_params = [{pipeline_mode = #tpu.pipeline_mode<synchronous>, transform_indices = @transform_0, window_bounds = array<i64: 2, 512>}, {pipeline_mode = #tpu.pipeline_mode<synchronous>, transform_indices = @transform_1, window_bounds = array<i64: 2, 32>}, {pipeline_mode = #tpu.pipeline_mode<synchronous>, transform_indices = @transform_2, window_bounds = array<i64: 2, 8>}, {pipeline_mode = #tpu.pipeline_mode<synchronous>, transform_indices = @transform_3, window_bounds = array<i64: 512, 32>}, {pipeline_mode = #tpu.pipeline_mode<synchronous>, transform_indices = @transform_4, window_bounds = array<i64: 1, 32>}, {pipeline_mode = #tpu.pipeline_mode<synchronous>, transform_indices = @transform_5, window_bounds = array<i64: 8, 8>}, {pipeline_mode = #tpu.pipeline_mode<synchronous>, transform_indices = @transform_6, window_bounds = array<i64: 1, 8>}, {pipeline_mode = #tpu.pipeline_mode<synchronous>, transform_indices = @transform_7, window_bounds = array<i64: 32, 32>}, {pipeline_mode = #tpu.pipeline_mode<synchronous>, transform_indices = @transform_8, window_bounds = array<i64: 32, 32>}, {pipeline_mode = #tpu.pipeline_mode<synchronous>, transform_indices = @transform_9, window_bounds = array<i64: 8, 32>}, {pipeline_mode = #tpu.pipeline_mode<synchronous>, transform_indices = @transform_10, window_bounds = array<i64: 1, 32>}, {pipeline_mode = #tpu.pipeline_mode<synchronous>, transform_indices = @transform_11, window_bounds = array<i64: 32, 1>}, {pipeline_mode = #tpu.pipeline_mode<synchronous>, transform_indices = @transform_12, window_bounds = array<i64: 1, 1>}, {pipeline_mode = #tpu.pipeline_mode<synchronous>, transform_indices = @transform_13, window_bounds = array<i64: 32, 4>}, {pipeline_mode = #tpu.pipeline_mode<synchronous>, transform_indices = @transform_14, window_bounds = array<i64: 1, 4>}, {pipeline_mode = #tpu.pipeline_mode<synchronous>, transform_indices = @transform_15, window_bounds = array<i64: 2, 4>}]} {
    %c0 = arith.constant 0 : index
    %c0_0 = arith.constant 0 : index
    %0 = vector.load %arg1[%c0, %c0_0] : memref<2x512xf32, #tpu.memory_space<vmem>>, vector<2x512xf32>
    %1 = arith.truncf %0 : vector<2x512xf32> to vector<2x512xbf16>
    %c0_1 = arith.constant 0 : index
    %c0_2 = arith.constant 0 : index
    %2 = vector.load %arg4[%c0_1, %c0_2] : memref<512x32xbf16, #tpu.memory_space<vmem>>, vector<512x32xbf16>
    %cst = arith.constant dense<0.000000e+00> : vector<2x32xf32>
    %3 = tpu.matmul %1, %2, %cst {dimension_numbers = #tpu.dot_dimension_numbers<[1], [0], [0], [1], [0, 0, 1, 1], [], []>} : vector<2x512xbf16>, vector<512x32xbf16>, vector<2x32xf32> -> vector<2x32xf32>
    %c0_3 = arith.constant 0 : index
    %c0_4 = arith.constant 0 : index
    %4 = vector.load %arg5[%c0_3, %c0_4] : memref<1x32xf32, #tpu.memory_space<vmem>>, vector<1x32xf32>
    %5 = vector.broadcast %4 : vector<1x32xf32> to vector<2x32xf32>
    %6 = arith.addf %3, %5 : vector<2x32xf32>
    %cst_5 = arith.constant 0.000000e+00 : f32
    %7 = vector.broadcast %cst_5 : f32 to vector<2x32xf32>
    %8 = arith.maximumf %6, %7 : vector<2x32xf32>
    %c0_6 = arith.constant 0 : index
    %c0_7 = arith.constant 0 : index
    %9 = vector.load %arg3[%c0_6, %c0_7] : memref<2x8xf32, #tpu.memory_space<vmem>>, vector<2x8xf32>
    %10 = arith.truncf %9 : vector<2x8xf32> to vector<2x8xbf16>
    %c0_8 = arith.constant 0 : index
    %c0_9 = arith.constant 0 : index
    %11 = vector.load %arg6[%c0_8, %c0_9] : memref<8x8xbf16, #tpu.memory_space<vmem>>, vector<8x8xbf16>
    %cst_10 = arith.constant dense<0.000000e+00> : vector<2x8xf32>
    %12 = tpu.matmul %10, %11, %cst_10 {dimension_numbers = #tpu.dot_dimension_numbers<[1], [0], [0], [1], [0, 0, 1, 1], [], []>} : vector<2x8xbf16>, vector<8x8xbf16>, vector<2x8xf32> -> vector<2x8xf32>
    %c0_11 = arith.constant 0 : index
    %c0_12 = arith.constant 0 : index
    %13 = vector.load %arg7[%c0_11, %c0_12] : memref<1x8xf32, #tpu.memory_space<vmem>>, vector<1x8xf32>
    %14 = vector.broadcast %13 : vector<1x8xf32> to vector<2x8xf32>
    %15 = arith.addf %12, %14 : vector<2x8xf32>
    %cst_13 = arith.constant 0.000000e+00 : f32
    %16 = vector.broadcast %cst_13 : f32 to vector<2x8xf32>
    %17 = arith.maximumf %15, %16 : vector<2x8xf32>
    %c0_14 = arith.constant 0 : index
    %c0_15 = arith.constant 0 : index
    %18 = vector.load %arg2[%c0_14, %c0_15] : memref<2x32xf32, #tpu.memory_space<vmem>>, vector<2x32xf32>
    %19 = arith.truncf %18 : vector<2x32xf32> to vector<2x32xbf16>
    %c0_16 = arith.constant 0 : index
    %c0_17 = arith.constant 0 : index
    %20 = vector.load %arg8[%c0_16, %c0_17] : memref<32x32xbf16, #tpu.memory_space<vmem>>, vector<32x32xbf16>
    %cst_18 = arith.constant dense<0.000000e+00> : vector<2x32xf32>
    %21 = tpu.matmul %19, %20, %cst_18 {dimension_numbers = #tpu.dot_dimension_numbers<[1], [0], [0], [1], [0, 0, 1, 1], [], []>} : vector<2x32xbf16>, vector<32x32xbf16>, vector<2x32xf32> -> vector<2x32xf32>
    %22 = arith.truncf %8 : vector<2x32xf32> to vector<2x32xbf16>
    %c0_19 = arith.constant 0 : index
    %c0_20 = arith.constant 0 : index
    %23 = vector.load %arg9[%c0_19, %c0_20] : memref<32x32xbf16, #tpu.memory_space<vmem>>, vector<32x32xbf16>
    %cst_21 = arith.constant dense<0.000000e+00> : vector<2x32xf32>
    %24 = tpu.matmul %22, %23, %cst_21 {dimension_numbers = #tpu.dot_dimension_numbers<[1], [0], [0], [1], [0, 0, 1, 1], [], []>} : vector<2x32xbf16>, vector<32x32xbf16>, vector<2x32xf32> -> vector<2x32xf32>
    %25 = arith.addf %21, %24 : vector<2x32xf32>
    %26 = arith.truncf %17 : vector<2x8xf32> to vector<2x8xbf16>
    %c0_22 = arith.constant 0 : index
    %c0_23 = arith.constant 0 : index
    %27 = vector.load %arg10[%c0_22, %c0_23] : memref<8x32xbf16, #tpu.memory_space<vmem>>, vector<8x32xbf16>
    %cst_24 = arith.constant dense<0.000000e+00> : vector<2x32xf32>
    %28 = tpu.matmul %26, %27, %cst_24 {dimension_numbers = #tpu.dot_dimension_numbers<[1], [0], [0], [1], [0, 0, 1, 1], [], []>} : vector<2x8xbf16>, vector<8x32xbf16>, vector<2x32xf32> -> vector<2x32xf32>
    %29 = arith.addf %25, %28 : vector<2x32xf32>
    %c0_25 = arith.constant 0 : index
    %c0_26 = arith.constant 0 : index
    %30 = vector.load %arg11[%c0_25, %c0_26] : memref<1x32xf32, #tpu.memory_space<vmem>>, vector<1x32xf32>
    %31 = vector.broadcast %30 : vector<1x32xf32> to vector<2x32xf32>
    %32 = arith.addf %29, %31 : vector<2x32xf32>
    %cst_27 = arith.constant 0.000000e+00 : f32
    %33 = vector.broadcast %cst_27 : f32 to vector<2x32xf32>
    %34 = arith.maximumf %32, %33 : vector<2x32xf32>
    %35 = arith.truncf %34 : vector<2x32xf32> to vector<2x32xbf16>
    %c0_28 = arith.constant 0 : index
    %c0_29 = arith.constant 0 : index
    %36 = vector.load %arg12[%c0_28, %c0_29] : memref<32x1xbf16, #tpu.memory_space<vmem>>, vector<32x1xbf16>
    %cst_30 = arith.constant dense<0.000000e+00> : vector<2x1xf32>
    %37 = tpu.matmul %35, %36, %cst_30 {dimension_numbers = #tpu.dot_dimension_numbers<[1], [0], [0], [1], [0, 0, 1, 1], [], []>} : vector<2x32xbf16>, vector<32x1xbf16>, vector<2x1xf32> -> vector<2x1xf32>
    %c0_31 = arith.constant 0 : index
    %c0_32 = arith.constant 0 : index
    %38 = vector.load %arg13[%c0_31, %c0_32] : memref<1x1xf32, #tpu.memory_space<vmem>>, vector<1x1xf32>
    %39 = vector.broadcast %38 : vector<1x1xf32> to vector<2x1xf32>
    %40 = arith.addf %37, %39 : vector<2x1xf32>
    %c0_33 = arith.constant 0 : index
    %c0_34 = arith.constant 0 : index
    %41 = vector.load %arg14[%c0_33, %c0_34] : memref<32x4xbf16, #tpu.memory_space<vmem>>, vector<32x4xbf16>
    %cst_35 = arith.constant dense<0.000000e+00> : vector<2x4xf32>
    %42 = tpu.matmul %35, %41, %cst_35 {dimension_numbers = #tpu.dot_dimension_numbers<[1], [0], [0], [1], [0, 0, 1, 1], [], []>} : vector<2x32xbf16>, vector<32x4xbf16>, vector<2x4xf32> -> vector<2x4xf32>
    %c0_36 = arith.constant 0 : index
    %c0_37 = arith.constant 0 : index
    %43 = vector.load %arg15[%c0_36, %c0_37] : memref<1x4xf32, #tpu.memory_space<vmem>>, vector<1x4xf32>
    %44 = vector.broadcast %43 : vector<1x4xf32> to vector<2x4xf32>
    %45 = arith.addf %42, %44 : vector<2x4xf32>
    %cst_38 = arith.constant dense<0.000000e+00> : vector<2xf32>
    %46 = vector.multi_reduction <add>, %45, %cst_38 [1] : vector<2x4xf32> to vector<2xf32>
    %47 = vector.shape_cast %46 : vector<2xf32> to vector<2x1xf32>
    %cst_39 = arith.constant 4.000000e+00 : f32
    %48 = vector.broadcast %cst_39 : f32 to vector<2x1xf32>
    %49 = arith.divf %47, %48 : vector<2x1xf32>
    %50 = vector.broadcast %49 : vector<2x1xf32> to vector<2x4xf32>
    %51 = arith.subf %45, %50 : vector<2x4xf32>
    %52 = vector.broadcast %40 : vector<2x1xf32> to vector<2x4xf32>
    %53 = arith.addf %52, %51 : vector<2x4xf32>
    %c0_40 = arith.constant 0 : index
    %c0_41 = arith.constant 0 : index
    %54 = vector.load %arg16[%c0_40, %c0_41] : memref<2x4xf32, #tpu.memory_space<vmem>>, vector<2x4xf32>
    tpu.vector_store %arg16[%c0_40, %c0_41], %53 {strides = array<i32>} : memref<2x4xf32, #tpu.memory_space<vmem>>, vector<2x4xf32>,
    return
  }
  func.func @transform_0(%arg0: i32) -> (i32, i32) {
    %c0_i32 = arith.constant 0 : i32
    %c0_i32_0 = arith.constant 0 : i32
    %c0_i32_1 = arith.constant 0 : i32
    return %c0_i32, %c0_i32_0 : i32, i32
  }
  func.func @transform_1(%arg0: i32) -> (i32, i32) {
    %c0_i32 = arith.constant 0 : i32
    %c0_i32_0 = arith.constant 0 : i32
    %c0_i32_1 = arith.constant 0 : i32
    return %c0_i32, %c0_i32_0 : i32, i32
  }
  func.func @transform_2(%arg0: i32) -> (i32, i32) {
    %c0_i32 = arith.constant 0 : i32
    %c0_i32_0 = arith.constant 0 : i32
    %c0_i32_1 = arith.constant 0 : i32
    return %c0_i32, %c0_i32_0 : i32, i32
  }
  func.func @transform_3(%arg0: i32) -> (i32, i32) {
    %c0_i32 = arith.constant 0 : i32
    %c0_i32_0 = arith.constant 0 : i32
    %c0_i32_1 = arith.constant 0 : i32
    return %c0_i32, %c0_i32_0 : i32, i32
  }
  func.func @transform_4(%arg0: i32) -> (i32, i32) {
    %c0_i32 = arith.constant 0 : i32
    %c0_i32_0 = arith.constant 0 : i32
    %c0_i32_1 = arith.constant 0 : i32
    return %c0_i32, %c0_i32_0 : i32, i32
  }
  func.func @transform_5(%arg0: i32) -> (i32, i32) {
    %c0_i32 = arith.constant 0 : i32
    %c0_i32_0 = arith.constant 0 : i32
    %c0_i32_1 = arith.constant 0 : i32
    return %c0_i32, %c0_i32_0 : i32, i32
  }
  func.func @transform_6(%arg0: i32) -> (i32, i32) {
    %c0_i32 = arith.constant 0 : i32
    %c0_i32_0 = arith.constant 0 : i32
    %c0_i32_1 = arith.constant 0 : i32
    return %c0_i32, %c0_i32_0 : i32, i32
  }
  func.func @transform_7(%arg0: i32) -> (i32, i32) {
    %c0_i32 = arith.constant 0 : i32
    %c0_i32_0 = arith.constant 0 : i32
    %c0_i32_1 = arith.constant 0 : i32
    return %c0_i32, %c0_i32_0 : i32, i32
  }
  func.func @transform_8(%arg0: i32) -> (i32, i32) {
    %c0_i32 = arith.constant 0 : i32
    %c0_i32_0 = arith.constant 0 : i32
    %c0_i32_1 = arith.constant 0 : i32
    return %c0_i32, %c0_i32_0 : i32, i32
  }
  func.func @transform_9(%arg0: i32) -> (i32, i32) {
    %c0_i32 = arith.constant 0 : i32
    %c0_i32_0 = arith.constant 0 : i32
    %c0_i32_1 = arith.constant 0 : i32
    return %c0_i32, %c0_i32_0 : i32, i32
  }
  func.func @transform_10(%arg0: i32) -> (i32, i32) {
    %c0_i32 = arith.constant 0 : i32
    %c0_i32_0 = arith.constant 0 : i32
    %c0_i32_1 = arith.constant 0 : i32
    return %c0_i32, %c0_i32_0 : i32, i32
  }
  func.func @transform_11(%arg0: i32) -> (i32, i32) {
    %c0_i32 = arith.constant 0 : i32
    %c0_i32_0 = arith.constant 0 : i32
    %c0_i32_1 = arith.constant 0 : i32
    return %c0_i32, %c0_i32_0 : i32, i32
  }
  func.func @transform_12(%arg0: i32) -> (i32, i32) {
    %c0_i32 = arith.constant 0 : i32
    %c0_i32_0 = arith.constant 0 : i32
    %c0_i32_1 = arith.constant 0 : i32
    return %c0_i32, %c0_i32_0 : i32, i32
  }
  func.func @transform_13(%arg0: i32) -> (i32, i32) {
    %c0_i32 = arith.constant 0 : i32
    %c0_i32_0 = arith.constant 0 : i32
    %c0_i32_1 = arith.constant 0 : i32
    return %c0_i32, %c0_i32_0 : i32, i32
  }
  func.func @transform_14(%arg0: i32) -> (i32, i32) {
    %c0_i32 = arith.constant 0 : i32
    %c0_i32_0 = arith.constant 0 : i32
    %c0_i32_1 = arith.constant 0 : i32
    return %c0_i32, %c0_i32_0 : i32, i32
  }
  func.func @transform_15(%arg0: i32) -> (i32, i32) {
    %c0_i32 = arith.constant 0 : i32
    %c0_i32_0 = arith.constant 0 : i32
    %c0_i32_1 = arith.constant 0 : i32
    return %c0_i32, %c0_i32_0 : i32, i32
  }
}

</mosaic_0001>

<bundles_post_ra>
// kernel: _forward_core.3
= control target key start
LH: loop header
LB: loop body
LE: loop exit
PB: predicated region body
PF: predicated region fallthrough
CT: control target
= control target key end

     0   :  { %s1102_s0 = inlined_call_operand.vmem [shape: f32[2,512], index: 0, kind: input, shape index: {}]   ;;  %s1103_s1 = inlined_call_operand.vmem [shape: f32[2,32], index: 1, kind: input, shape index: {}]   ;;  %s1104_s2 = inlined_call_operand.vmem [shape: f32[2,8], index: 2, kind: input, shape index: {}]   ;;  %s1105_s3 = inlined_call_operand.vmem [shape: bf16[512,32], index: 3, kind: input, shape index: {}]   ;;  %s1106_s4 = inlined_call_operand.vmem [shape: f32[1,32], index: 4, kind: input, shape index: {}]   ;;  %s1107_s5 = inlined_call_operand.vmem [shape: bf16[8,8], index: 5, kind: input, shape index: {}]   ;;  %s1108_s6 = inlined_call_operand.vmem [shape: f32[1,8], index: 6, kind: input, shape index: {}]   ;;  %s1109_s7 = inlined_call_operand.vmem [shape: bf16[32,32], index: 7, kind: input, shape index: {}]   ;;  %s1110_s8 = inlined_call_operand.vmem [shape: bf16[32,32], index: 8, kind: input, shape index: {}]   ;;  %s1111_s9 = inlined_call_operand.vmem [shape: bf16[8,32], index: 9, kind: input, shape index: {}]   ;;  %s1112_s10 = inlined_call_operand.vmem [shape: f32[1,32], index: 10, kind: input, shape index: {}]   ;;  %s1113_s11 = inlined_call_operand.vmem [shape: bf16[32,1], index: 11, kind: input, shape index: {}]   ;;  %s1114_s12 = inlined_call_operand.<no memory space> [shape: f32[1,1], index: 12, kind: input, shape index: {}]   ;;  %s1115_s13 = inlined_call_operand.vmem [shape: bf16[32,4], index: 13, kind: input, shape index: {}]   ;;  %s1116_s14 = inlined_call_operand.vmem [shape: f32[1,4], index: 14, kind: input, shape index: {}]   ;;  %s1117_s15 = inlined_call_operand.hbm [shape: f32[2,4], index: 15, kind: output, shape index: {}]  }
   0x1   :  { %v20_v0 = vstv %s1114_s12 }
   0x2   :  { %21 = vst [vmem:[#allocation2] sm:$0x1] %v20_v0 }
   0x3   :  { %v786_v1 = vld [vmem:[%s1105_s3 + $0x38] sm:$0xff]  ;;  %v785_v5 = vld [vmem:[%s1105_s3 + $0x30] sm:$0xff]  ;;  %v784_v9 = vld [vmem:[%s1105_s3 + $0x28] sm:$0xff] }
   0x4   :  { %v802_v2 = vld [vmem:[%s1105_s3 + $0xb8] sm:$0xff]  ;;  %329 = vmatpush.bf16.msra.mxu0 %v786_v1  ;;  %v801_v6 = vld [vmem:[%s1105_s3 + $0xb0] sm:$0xff]  ;;  %v800_v10 = vld [vmem:[%s1105_s3 + $0xa8] sm:$0xff] }
   0x5   :  { %v794_v3 = vld [vmem:[%s1105_s3 + $0x78] sm:$0xff]  ;;  %355 = vmatpush.bf16.msra.mxu2 %v802_v2  ;;  %v793_v7 = vld [vmem:[%s1105_s3 + $0x70] sm:$0xff]  ;;  %v792_v11 = vld [vmem:[%s1105_s3 + $0x68] sm:$0xff] }
   0x6   :  { %v810_v4 = vld [vmem:[%s1105_s3 + $0xf8] sm:$0xff]  ;;  %342 = vmatpush.bf16.msra.mxu1 %v794_v3  ;;  %v809_v8 = vld [vmem:[%s1105_s3 + $0xf0] sm:$0xff]  ;;  %v808_v12 = vld [vmem:[%s1105_s3 + $0xe8] sm:$0xff] }
   0x7   :  { %368 = vmatpush.bf16.msra.mxu3 %v810_v4  ;;  %v783_v13 = vld [vmem:[%s1105_s3 + $0x20] sm:$0xff]  ;;  %v782_v18 = vld [vmem:[%s1105_s3 + $0x18] sm:$0xff] }
   0x8   :  { %330 = vmatpush.bf16.msra.mxu0 %v785_v5  ;;  %v799_v14 = vld [vmem:[%s1105_s3 + $0xa0] sm:$0xff]  ;;  %v798_v19 = vld [vmem:[%s1105_s3 + $0x98] sm:$0xff] }
   0x9   :  { %356 = vmatpush.bf16.msra.mxu2 %v801_v6  ;;  %v54_v15 = vld [vmem:[%s1102_s0] sm:$0xff] }
   0xa   :  { %343 = vmatpush.bf16.msra.mxu1 %v793_v7  ;;  %v791_v16 = vld [vmem:[%s1105_s3 + $0x60] sm:$0xff]  ;;  %56 = vst [vmem:[#allocation1] ss:$4 sm:$0xff] %v54_v15 }
   0xb   :  { %369 = vmatpush.bf16.msra.mxu3 %v809_v8  ;;  %v807_v17 = vld [vmem:[%s1105_s3 + $0xe0] sm:$0xff] }
   0xc   :  { %331 = vmatpush.bf16.msra.mxu0 %v784_v9 }
   0xd   :  { %357 = vmatpush.bf16.msra.mxu2 %v800_v10 }
   0xe   :  { %344 = vmatpush.bf16.msra.mxu1 %v792_v11 }
   0xf   :  { %370 = vmatpush.bf16.msra.mxu3 %v808_v12 }
  0x10   :  { %332 = vmatpush.bf16.msra.mxu0 %v783_v13 }
  0x11   :  { %358 = vmatpush.bf16.msra.mxu2 %v799_v14 }
  0x12   :  { %22 = vsyncpa [#allocation4], 0  ;;  %345 = vmatpush.bf16.msra.mxu1 %v791_v16  ;;  %v790_v20 = vld [vmem:[%s1105_s3 + $0x58] sm:$0xff]  ;;  %v781_v22 = vld [vmem:[%s1105_s3 + $0x10] sm:$0xff]  ;;  %vm393_vm0 = vcmask 1043456   ;;  %vm389_vm1 = vcmask 64512  }
  0x13   :  { %371 = vmatpush.bf16.msra.mxu3 %v807_v17  ;;  %v806_v21 = vld [vmem:[%s1105_s3 + $0xd8] sm:$0xff]  ;;  %v797_v23 = vld [vmem:[%s1105_s3 + $0x90] sm:$0xff]  ;;  %v780_v26 = vld [vmem:[%s1105_s3 + $0x8] sm:$0xff]  ;;  %vm434_vm2 = vcmask 261120   ;;  %vm577_vm3 = vcmask 25600   ;;  %s604_s24 = sshll.u32 %s1117_s15, 4  ;;  %s605_s24 = int_to_ptr.hbm [resolvable:$true] %s604_s24 }
  0x14   :  { %333 = vmatpush.bf16.msra.mxu0 %v782_v18  ;;  %v789_v24 = vld [vmem:[%s1105_s3 + $0x50] sm:$0xff]  ;;  %v796_v27 = vld [vmem:[%s1105_s3 + $0x88] sm:$0xff]  ;;  %v779_v30 = vld [vmem:[%s1105_s3] sm:$0xff] }
  0x15   :  { %359 = vmatpush.bf16.msra.mxu2 %v798_v19  ;;  %v805_v25 = vld [vmem:[%s1105_s3 + $0xd0] sm:$0xff]  ;;  %v788_v28 = vld [vmem:[%s1105_s3 + $0x48] sm:$0xff]  ;;  %v795_v31 = vld [vmem:[%s1105_s3 + $0x80] sm:$0xff] }
  0x16   :  { %346 = vmatpush.bf16.msra.mxu1 %v790_v20  ;;  %v804_v29 = vld [vmem:[%s1105_s3 + $0xc8] sm:$0xff]  ;;  %v787_v32 = vld [vmem:[%s1105_s3 + $0x40] sm:$0xff]  ;;  %v59_v36 = vld.sshfl [vmem:[#allocation1 + $0x10] sm:$0xff pattern:$0x73625140] }
  0x17   :  { %372 = vmatpush.bf16.msra.mxu3 %v806_v21  ;;  %v803_v33 = vld [vmem:[%s1105_s3 + $0xc0] sm:$0xff]  ;;  %v58_v37 = vld.sshfl [vmem:[#allocation1 + $0x8] sm:$0xff pattern:$0x73625140]  ;;  %v67_v40 = vpack.c.bf16 %v59_v36, %v59_v36 }
  0x18   :  { %334 = vmatpush.bf16.msra.mxu0 %v781_v22  ;;  %v384_v34 = vld [vmem:[%s1107_s5] sm:$0xf]  ;;  %v60_v38 = vld.sshfl [vmem:[#allocation1 + $0x18] sm:$0xff pattern:$0x73625140]  ;;  %v66_v42 = vpack.c.bf16 %v58_v37, %v58_v37  ;;  %v812_v46 = vld [vmem:[%s1109_s7 + $0x8] sm:$0xff] }
  0x19   :  { %360 = vmatpush.bf16.msra.mxu2 %v797_v23  ;;  %v57_v35 = vld.sshfl [vmem:[#allocation1] sm:$0xff pattern:$0x73625140]  ;;  %v395_v41 = vsel %vm393_vm0, %v384_v34, 0  ;;  %v68_v43 = vpack.c.bf16 %v60_v38, %v60_v38  ;;  %v814_v48 = vld [vmem:[%s1110_s8 + $0x8] sm:$0xff]  ;;  %v857_v37 = vmov 4.0  }
  0x1a   :  { %347 = vmatpush.bf16.msra.mxu1 %v789_v24  ;;  %v65_v39 = vpack.c.bf16 %v57_v35, %v57_v35  ;;  %v382_v44 = vld [vmem:[%s1104_s2] sm:$0x3]  ;;  %v818_v12 = vld [vmem:[%s1115_s13 + $0x8] sm:$0xff]  ;;  %828 = vrcp.f32 %v857_v37 }
  0x1b   :  { %373 = vmatpush.bf16.msra.mxu3 %v805_v25  ;;  %v383_v45 = vpack.c.bf16 %v382_v44, %v382_v44  ;;  %v811_v47 = vld [vmem:[%s1109_s7] sm:$0xff]  ;;  %v816_v14 = vld [vmem:[%s1113_s11 + $0x8] sm:$0xff] }
  0x1c   :  { %335 = vmatpush.bf16.msra.mxu0 %v780_v26  ;;  %v411_v49 = vld [vmem:[%s1103_s1] sm:$0x3]  ;;  %v826_v35 = vld [vmem:[#allocation2] ss:$0 sm:$0xff] }
  0x1d   :  { %361 = vmatpush.bf16.msra.mxu2 %v796_v27  ;;  %v480_v50 = vld [vmem:[%s1111_s9] sm:$0xf]  ;;  %v412_v51 = vpack.c.bf16 %v411_v49, %v411_v49  ;;  %v856_v27 = vmov 0  }
  0x1e   :  { %348 = vmatpush.bf16.msra.mxu1 %v788_v28  ;;  %v485_v52 = vsel %vm393_vm0, %v480_v50, 0  ;;  %v813_v53 = vld [vmem:[%s1110_s8] sm:$0xff]  ;;  %822 = vset.pattern.permute.xlu0 %v856_v27 }
  0x1f   :  { %374 = vmatpush.bf16.msra.mxu3 %v804_v29  ;;  %v823_v54 = vld [vmem:[%s1106_s4] ss:$0 sm:$0xff] }
  0x20   :  { %336 = vmatpush.bf16.msra.mxu0 %v779_v30  ;;  %v824_v3 = vld [vmem:[%s1108_s6] ss:$0 sm:$0xff]  ;;  %v829_v38 = vpop.eup %828 }
  0x21   :  { %362 = vmatpush.bf16.msra.mxu2 %v795_v31  ;;  %v817_v15 = vld [vmem:[%s1115_s13] sm:$0xff]  ;;  %vm586_vm4 = vweird.f32 %v829_v38 }
  0x22   :  { %349 = vmatpush.bf16.msra.mxu1 %v787_v32  ;;  %v815_v16 = vld [vmem:[%s1113_s11] sm:$0xff] }
  0x23   :  { %375 = vmatpush.bf16.msra.mxu3 %v803_v33  ;;  %337 = vmatmul.bf16.vlgmr.msra.gmra.mxu0 %v65_v39  ;;  %v825_v20 = vld [vmem:[%s1112_s10] ss:$0 sm:$0xff]  ;;  %v582_v39 = vmul.f32 4.0, %v829_v38  ;;  %s858_s10 = smov [#allocation3]  }
  0x24   :  { %404 = vmatpush.bf16.msrb.mxu0 %v395_v41  ;;  %363 = vmatmul.bf16.vlgmr.msra.gmra.mxu2 %v67_v40  ;;  %v827_v28 = vld [vmem:[%s1116_s14] ss:$0 sm:$0xff]  ;;  %s602_s14 = sshll.u32 %s858_s10, 4  ;;  %s603_s14 = int_to_ptr.vmem [resolvable:$true] %s602_s14 }
  0x25   :  { %350 = vmatmul.bf16.vlgmr.msra.gmra.mxu1 %v66_v42  ;;  %472 = vmatpush.bf16.msrb.mxu2 %v812_v46  ;;  %v583_v40 = vsub.f32 1.0, %v582_v39 }
  0x26   :  { %376 = vmatmul.bf16.vlgmr.msra.gmra.mxu3 %v68_v43  ;;  %444 = vmatpush.bf16.msrb.mxu1 %v814_v48 }
  0x27   :  { %494 = vmatpush.bf16.msrb.mxu3 %v485_v52  ;;  %v584_v41 = vmul.f32 %v829_v38, %v583_v40 }
  0x28   :  { %537 = vmatpush.bf16.msra.mxu0 %v816_v14 }
  0x29   :  { %473 = vmatpush.bf16.msrb.mxu2 %v811_v47  ;;  %v585_v42 = vadd.f32 %v829_v38, %v584_v41 }
  0x2a   :  { %445 = vmatpush.bf16.msrb.mxu1 %v813_v53 }
  0x2b   :  { %v587_v43 = vsel %vm586_vm4, %v829_v38, %v585_v42 }
  0x2c   :  { %538 = vmatpush.bf16.msra.mxu0 %v815_v16 }
  0x2e   :  { %570 = vmatpush.bf16.msra.mxu1 %v818_v12 }
  0x32   :  { %571 = vmatpush.bf16.msra.mxu1 %v817_v15 }
  0x33   :  { %741 = vmatmul.msk.bf16.vlgmr.msrb.gmra.mxu0 %vm389_vm1, %v383_v45 }
  0x34   :  { %759 = vmatmul.msk.bf16.vlgmr.msrb.gmra.mxu2 %vm434_vm2, %v412_v51 }
  0xa0   :  { %v338_v55 = vpop.f32.mrf.mxu0 }
  0xa1   :  { %v339_v56 = vadd.f32 %v823_v54, %v338_v55 }
  0xa2   :  { %v351_v57 = vpop.f32.mrf.mxu1 }
  0xa3   :  { %v352_v58 = vadd.f32 %v351_v57, %v339_v56 }
  0xa7   :  { %v364_v59 = vpop.f32.mrf.mxu2 }
  0xa8   :  { %v365_v60 = vadd.f32 %v364_v59, %v352_v58  ;;  %v340_v62 = vpop.f32.mrf.mxu0 }
  0xa9   :  { %v377_v61 = vpop.f32.mrf.mxu3 }
  0xaa   :  { %v378_v63 = vadd.f32 %v377_v61, %v365_v60  ;;  %v353_v0 = vpop.f32.mrf.mxu1 }
  0xac   :  { %v381_v1 = vmax.f32 %v378_v63, 0.0 }
  0xae   :  { %v417_v2 = vpack.c.bf16 %v381_v1, %v381_v1 }
  0xaf   :  { %v366_v4 = vpop.f32.mrf.mxu2 }
  0xb0   :  { %750 = vmatmul.msk.bf16.vlgmr.msrb.gmra.mxu1 %vm434_vm2, %v417_v2  ;;  %v406_v6 = vpop.f32.mrf.mxu0 }
  0xb1   :  { %v379_v5 = vpop.f32.mrf.mxu3  ;;  %v407_v7 = vadd.f32 %v824_v3, %v406_v6 }
  0xb3   :  { %v410_v8 = vmax.f32 %v407_v7, 0.0 }
  0xb5   :  { %v479_v9 = vpack.c.bf16 %v410_v8, %v410_v8 }
  0xb7   :  { %760 = vmatmul.msk.bf16.vlgmr.msrb.gmra.mxu3 %vm389_vm1, %v479_v9  ;;  %v475_v11 = vpop.f32.mrf.mxu2 }
  0xb8   :  { %v408_v10 = vpop.f32.mrf.mxu0 }
  0xbf   :  { %v477_v13 = vpop.f32.mrf.mxu2 }
 0x12d   :  { %v447_v17 = vpop.f32.mrf.mxu1 }
 0x12e   :  { %v476_v19 = vadd.f32 %v475_v11, %v447_v17 }
 0x135   :  { %v449_v18 = vpop.f32.mrf.mxu1 }
 0x13a   :  { %v496_v21 = vpop.f32.mrf.mxu3 }
 0x13b   :  { %v500_v22 = vadd.f32 %v496_v21, %v476_v19 }
 0x13d   :  { %v505_v23 = vadd.f32 %v825_v20, %v500_v22 }
 0x13f   :  { %v506_v24 = vmax.f32 %v505_v23, 0.0 }
 0x141   :  { %v507_v25 = vpack.c.bf16 %v506_v24, %v506_v24 }
 0x142   :  { %v498_v26 = vpop.f32.mrf.mxu3 }
 0x143   :  { %769 = vmatmul.msk.bf16.vlgmr.msra.gmra.mxu0 %vm434_vm2, %v507_v25  ;;  %778 = vmatmul.msk.bf16.vlgmr.msra.gmra.mxu1 %vm434_vm2, %v507_v25 }
 0x1c0   :  { %v540_v29 = vpop.f32.mrf.mxu0  ;;  %v573_v30 = vpop.f32.mrf.mxu1 }
 0x1c1   :  { %v574_v31 = vadd.f32 %v827_v28, %v573_v30  ;;  %v541_v36 = vadd.f32 %v826_v35, %v540_v29 }
 0x1c3   :  { %v578_v32 = vsel %vm577_vm3, %v574_v31, 0.0 }
 0x1c4   :  { %579 = vadd.xlane.f32.xlu0 %v578_v32 }
 0x1c8   :  { %v542_v33 = vpop.f32.mrf.mxu0  ;;  %v575_v34 = vpop.f32.mrf.mxu1 }
 0x1d8   :  { %592 = vperm.xlu0 %822, %v541_v36  }
 0x237   :  { %v580_v44 = vpop.xlane.xlu0 %579 }
 0x238   :  { %v588_v45 = vmul.f32 %v587_v43, %v580_v44 }
 0x23a   :  { %v589_v46 = vsub.f32 %v574_v31, %v588_v45 }
 0x24a   :  { %v593_v47 = vpop.permute.xlu0 %592 }
 0x24b   :  { %v595_v48 = vadd.f32 %v593_v47, %v589_v46 }
 0x24d   :  { %596 = vst.msk [vmem:[#allocation3] sm:$0x3] %vm577_vm3, %v595_v48 }
 0x24e   :  { %607 = dma.vmem_to_hbm [thread:$0]  %s603_s14, 32, %s605_s24, [#allocation4]  }
 0x24f   :  { %854 = dma.done.wait [#allocation4], 32  }
 0x250   :  { %855 = vsyncadd [#allocation4], 4294967264 }
 0x251   :  { %612 = vsyncpa [#allocation4], 1 }

// kernel: _forward_core.2
= control target key start
LH: loop header
LB: loop body
LE: loop exit
PB: predicated region body
PF: predicated region fallthrough
CT: control target
= control target key end

     0   :  { %v2401_v3 = vmov 0   ;;  %vm102_vm0 = vcmask 130048   ;;  %vm220_vm1 = vcmask 261120   ;;  %s2403_s24 = smov 96   ;;  %s3216_s1 = inlined_call_operand.vmem [shape: bf16[16,32], index: 1, kind: input, shape index: {}]   ;;  %s3217_s0 = inlined_call_operand.vmem [shape: f32[128,16], index: 0, kind: input, shape index: {}]   ;;  %s3218_s5 = inlined_call_operand.vmem [shape: bf16[32,96], index: 5, kind: input, shape index: {}]   ;;  %s3219_s2 = inlined_call_operand.vmem [shape: f32[1,32], index: 2, kind: input, shape index: {}]   ;;  %s3220_s6 = inlined_call_operand.vmem [shape: f32[1,96], index: 6, kind: input, shape index: {}]   ;;  %s3221_s4 = inlined_call_operand.vmem [shape: f32[1,96], index: 4, kind: input, shape index: {}]   ;;  %s3222_s3 = inlined_call_operand.vmem [shape: bf16[32,96], index: 3, kind: input, shape index: {}]   ;;  %s3223_s7 = inlined_call_operand.vmem [shape: bf16[32,160], index: 7, kind: input, shape index: {}]   ;;  %s3224_s9 = inlined_call_operand.vmem [shape: bf16[32,160], index: 9, kind: input, shape index: {}]   ;;  %s3225_s8 = inlined_call_operand.vmem [shape: f32[1,160], index: 8, kind: input, shape index: {}]   ;;  %s3226_s11 = inlined_call_operand.vmem [shape: bf16[160,5], index: 11, kind: input, shape index: {}]   ;;  %s3227_s13 = inlined_call_operand.vmem [shape: f32[16,16], index: 13, kind: input, shape index: {}]   ;;  %s3228_s10 = inlined_call_operand.vmem [shape: f32[1,160], index: 10, kind: input, shape index: {}]   ;;  %s3229_s14 = inlined_call_operand.vmem [shape: f32[16,16], index: 14, kind: input, shape index: {}]   ;;  %s3230_s20 = inlined_call_operand.vmem [shape: f32[16,5], index: 20, kind: output, shape index: {1}]   ;;  %s3231_s16 = inlined_call_operand.vmem [shape: f32[36,128], index: 16, kind: input, shape index: {}]   ;;  %s3232_s17 = inlined_call_operand.vmem [shape: bf16[8,36], index: 17, kind: input, shape index: {}]   ;;  %s3233_s18 = inlined_call_operand.vmem [shape: f32[8,1], index: 18, kind: input, shape index: {}]   ;;  %s3234_s12 = inlined_call_operand.vmem [shape: f32[1,32], index: 12, kind: input, shape index: {}]   ;;  %s3235_s15 = inlined_call_operand.vmem [shape: f32[2,16], index: 15, kind: input, shape index: {}]   ;;  %s3236_s21 = inlined_call_operand.vmem [shape: f32[8,128], index: 21, kind: output, shape index: {2}]   ;;  %s3237_s19 = inlined_call_operand.vmem [shape: f32[2,32], index: 19, kind: output, shape index: {0}]  }
   0x1   :  { %3243 = sst [smem:[#allocation2_spill]] %s3216_s1  ;;  %2242 = vset.pattern.permute.xlu0 %v2401_v3  ;;  %v2210_v7 = vld [vmem:[%s3222_s3 + $0x8] sm:$0xff]  ;;  %v2209_v8 = vld [vmem:[%s3222_s3] sm:$0xff]  ;;  %s2402_s3 = smov 64  }
   0x2   :  { %3244 = sst [smem:[#allocation3_spill]] %s3217_s0  ;;  %251 = vmatpush.bf16.msra.mxu1 %v2210_v7 }
   0x3   :  { %3245 = sst [smem:[#allocation4_spill]] %s3218_s5 }
   0x4   :  { %3246 = sst [smem:[#allocation5_spill]] %s3219_s2 }
   0x5   :  { %3247 = sst [smem:[#allocation6_spill]] %s3220_s6 }
   0x6   :  { %3248 = sst [smem:[#allocation7_spill]] %s3221_s4  ;;  %252 = vmatpush.bf16.msra.mxu1 %v2209_v8 }
   0x7   :  { %3249 = sst [smem:[#allocation8_spill]] %s3232_s17 }
   0x8   :  { %s3250_s26 = sld [smem:[#allocation2_spill]] }
   0x9   :  { %s3251_s17 = sld [smem:[#allocation3_spill]] }
   0xa   :  { %s3252_s30 = sld [smem:[#allocation4_spill]] }
   0xb   :  { %s3253_s27 = sld [smem:[#allocation5_spill]] }
   0xc   :  { %s3254_s29 = sld [smem:[#allocation6_spill]] }
   0xe   :  { %v2208_v0 = vld [vmem:[%s3250_s26] sm:$0xff] }
   0xf   :  { %v66_v1 = vld [vmem:[%s3251_s17] sm:$0xff]  ;;  %v67_v2 = vld [vmem:[%s3251_s17 + $0x8] sm:$0xff]  ;;  %134 = vmatpush.bf16.msra.mxu0 %v2208_v0  ;;  %v68_v59 = vld [vmem:[%s3251_s17 + $0x10] sm:$0xff] }
  0x10   :  { %v82_v4 = vpack.c.bf16 %v67_v2, %v66_v1  ;;  %v2532_v5 = vld [vmem:[%s3252_s30 + $0x8] sm:$0xff]  ;;  %v2538_v6 = vld [vmem:[%s3252_s30] sm:$0xff]  ;;  %s3255_s30 = sld [smem:[#allocation7_spill]]  ;;  %v69_v60 = vld [vmem:[%s3251_s17 + $0x18] sm:$0xff] }
  0x11   :  { %323 = vmatpush.bf16.msra.mxu2 %v2532_v5  ;;  %422 = vmatpush.bf16.msra.mxu3 %v2532_v5  ;;  %v2560_v10 = vld [vmem:[%s3253_s27] ss:$0 sm:$0xff]  ;;  %v83_v61 = vpack.c.bf16 %v69_v60, %v68_v59 }
  0x12   :  { %2066 = vmatmul.msk.bf16.vlgmr.msra.gmra.mxu0 %vm102_vm0, %v82_v4  ;;  %v2566_v13 = vld [vmem:[%s3254_s29] ss:$0 sm:$0xff] }
  0x15   :  { %324 = vmatpush.bf16.msra.mxu2 %v2538_v6  ;;  %423 = vmatpush.bf16.msra.mxu3 %v2538_v6 }
  0x16   :  { %v2577_v22 = vld [vmem:[%s3255_s30] ss:$0 sm:$0xff] }
  0x18   :  { %325 = vmatmul.bf16.vlgmr.msra.gmra.mxu2 %v2401_v3 }
  0x19   :  { %521 = vmatpush.bf16.msrb.mxu2 %v2532_v5  ;;  %620 = vmatpush.bf16.msrb.mxu3 %v2532_v5 }
  0x1d   :  { %522 = vmatpush.bf16.msrb.mxu2 %v2538_v6  ;;  %621 = vmatpush.bf16.msrb.mxu3 %v2538_v6 }
  0x21   :  { %719 = vmatpush.bf16.msra.mxu2 %v2532_v5 }
  0x22   :  { %2067 = vmatmul.msk.bf16.gmra.mxu0 %vm102_vm0, %v83_v61 }
  0x25   :  { %720 = vmatpush.bf16.msra.mxu2 %v2538_v6 }
  0x8f   :  { %v136_v9 = vpop.f32.mrf.mxu0 }
  0x90   :  { %v137_v11 = vadd.f32 %v2560_v10, %v136_v9 }
  0x92   :  { %v176_v15 = vmax.f32 %v137_v11, 0.0 }
  0x97   :  { %v138_v12 = vpop.f32.mrf.mxu0 }
  0x98   :  { %v139_v14 = vadd.f32 %v2560_v10, %v138_v12 }
  0x9a   :  { %v177_v16 = vmax.f32 %v139_v14, 0.0 }
  0x9b   :  { %v326_v17 = vpop.f32.mrf.mxu2 }
  0x9c   :  { %v327_v18 = vadd.f32 %v2566_v13, %v326_v17  ;;  %v192_v19 = vpack.c.bf16 %v177_v16, %v176_v15 }
  0x9e   :  { %373 = vrot.lane.b32.xlu0 %v327_v18, %s2402_s3  ;;  %2082 = vmatmul.msk.bf16.vlgmr.msra.gmra.mxu1 %vm220_vm1, %v192_v19 }
  0xa3   :  { %v328_v20 = vpop.f32.mrf.mxu2 }
  0xa4   :  { %v329_v21 = vadd.f32 %v2566_v13, %v328_v20  ;;  %v141_v20 = vpop.f32.mrf.mxu0 }
  0xa6   :  { %375 = vrot.lane.b32.xlu0 %v329_v21, %s2402_s3 }
 0x110   :  { %v374_v43 = vpop.permute.xlu0 %373 }
 0x118   :  { %v376_v56 = vpop.permute.xlu0 %375 }
 0x11b   :  { %v254_v23 = vpop.f32.mrf.mxu1 }
 0x11c   :  { %v255_v24 = vadd.f32 %v2577_v22, %v254_v23  ;;  %v143_v23 = vpop.f32.mrf.mxu0 }
 0x11e   :  { %v331_v25 = vadd.f32 %v327_v18, %v255_v24 }
 0x120   :  { %v2098_v26 = vmul.f32 -1.442695, %v331_v25  ;;  %v144_v25 = vadd.f32 %v2560_v10, %v143_v23 }
 0x122   :  { %2272 = vpow2.f32 %v2098_v26  ;;  %v179_v26 = vmax.f32 %v144_v25, 0.0 }
 0x123   :  { %v256_v27 = vpop.f32.mrf.mxu1 }
 0x124   :  { %v257_v28 = vadd.f32 %v2577_v22, %v256_v27 }
 0x126   :  { %v332_v29 = vadd.f32 %v329_v21, %v257_v28  ;;  %v142_v21 = vadd.f32 %v2560_v10, %v141_v20 }
 0x128   :  { %v2273_v30 = vpop.eup %2272  ;;  %v2099_v31 = vmul.f32 -1.442695, %v332_v29 }
 0x129   :  { %v339_v32 = vadd.f32 1.0, %v2273_v30 }
 0x12a   :  { %2274 = vpow2.f32 %v2099_v31 }
 0x12b   :  { %2276 = vrcp.f32 %v339_v32  ;;  %v352_v38 = vand.u32 2147483648, %v339_v32  ;;  %v350_v40 = vand.u32 2147483647, %v339_v32  ;;  %vm346_vm3 = vweird.f32 %v339_v32 }
 0x12d   :  { %v353_v44 = vor.u32 1.1754944e-38, %v352_v38  ;;  %vm351_vm5 = vcmp.eq.f32.partialorder %v350_v40, 8.507059e+37 }
 0x130   :  { %v2275_v33 = vpop.eup %2274 }
 0x131   :  { %v2277_v34 = vpop.eup %2276  ;;  %v340_v35 = vadd.f32 1.0, %v2275_v33 }
 0x132   :  { %v342_v36 = vmul.f32 %v2277_v34, %v339_v32  ;;  %vm347_vm2 = vweird.f32 %v2277_v34 }
 0x133   :  { %2278 = vrcp.f32 %v340_v35  ;;  %vm348_vm4 = vmor %vm346_vm3, %vm347_vm2  ;;  %v367_v50 = vand.u32 2147483648, %v340_v35  ;;  %v365_v52 = vand.u32 2147483647, %v340_v35  ;;  %vm361_vm7 = vweird.f32 %v340_v35 }
 0x134   :  { %v343_v37 = vsub.f32 1.0, %v342_v36 }
 0x135   :  { %v368_v54 = vor.u32 1.1754944e-38, %v367_v50  ;;  %vm366_vm9 = vcmp.eq.f32.partialorder %v365_v52, 8.507059e+37 }
 0x136   :  { %v344_v39 = vmul.f32 %v2277_v34, %v343_v37 }
 0x138   :  { %v345_v41 = vadd.f32 %v2277_v34, %v344_v39 }
 0x139   :  { %v2279_v42 = vpop.eup %2278 }
 0x13a   :  { %v349_v45 = vsel %vm348_vm4, %v2277_v34, %v345_v41  ;;  %v357_v46 = vmul.f32 %v2279_v42, %v340_v35  ;;  %vm362_vm6 = vweird.f32 %v2279_v42 }
 0x13b   :  { %v354_v47 = vsel %vm351_vm5, %v353_v44, %v349_v45  ;;  %vm363_vm8 = vmor %vm361_vm7, %vm362_vm6 }
 0x13c   :  { %v379_v48 = vmul.f32 %v374_v43, %v354_v47  ;;  %v358_v49 = vsub.f32 1.0, %v357_v46  ;;  %v393_v8 = vsub.f32 1.0, %v354_v47  ;;  %v405_v14 = vmul.f32 0.0, %v354_v47 }
 0x13e   :  { %v359_v51 = vmul.f32 %v2279_v42, %v358_v49  ;;  %383 = vrot.lane.b32.xlu1 %v379_v48, %s2402_s3 }
 0x140   :  { %v360_v53 = vadd.f32 %v2279_v42, %v359_v51 }
 0x142   :  { %v364_v55 = vsel %vm363_vm8, %v2279_v42, %v360_v53 }
 0x143   :  { %v369_v57 = vsel %vm366_vm9, %v368_v54, %v364_v55 }
 0x144   :  { %v380_v58 = vmul.f32 %v376_v56, %v369_v57  ;;  %v394_v11 = vsub.f32 1.0, %v369_v57  ;;  %v406_v15 = vmul.f32 0.0, %v369_v57 }
 0x146   :  { %385 = vrot.lane.b32.xlu1 %v380_v58, %s2402_s3 }
 0x1b0   :  { %v384_v62 = vpop.permute.xlu1 %383 }
 0x1b1   :  { %v389_v63 = vadd.f32 %v384_v62, %v255_v24  ;;  %v178_v24 = vmax.f32 %v142_v21, 0.0 }
 0x1b3   :  { %2280 = vtanh.f32 %v389_v63  ;;  %v193_v27 = vpack.c.bf16 %v179_v26, %v178_v24 }
 0x1b5   :  { %2083 = vmatmul.msk.bf16.gmra.mxu1 %vm220_vm1, %v193_v27 }
 0x1b8   :  { %v386_v0 = vpop.permute.xlu1 %385 }
 0x1b9   :  { %v2281_v1 = vpop.eup %2280  ;;  %v390_v2 = vadd.f32 %v386_v0, %v257_v28 }
 0x1ba   :  { %397 = vrot.lane.b32.xlu2 %v2281_v1, %s2403_s24 }
 0x1bb   :  { %2282 = vtanh.f32 %v390_v2 }
 0x1c1   :  { %v2283_v4 = vpop.eup %2282 }
 0x1c2   :  { %399 = vrot.lane.b32.xlu2 %v2283_v4, %s2403_s24 }
 0x214   :  { %v398_v7 = vpop.permute.xlu2 %397 }
 0x215   :  { %v403_v9 = vmul.f32 %v398_v7, %v393_v8  ;;  %v70_v8 = vld [vmem:[%s3251_s17 + $0x20] sm:$0xff] }
 0x217   :  { %v2592_v17 = vadd.f32 %v405_v14, %v403_v9  ;;  %v71_v9 = vld [vmem:[%s3251_s17 + $0x28] sm:$0xff] }
 0x21c   :  { %v400_v12 = vpop.permute.xlu2 %399 }
 0x21d   :  { %v404_v16 = vmul.f32 %v400_v12, %v394_v11  ;;  %v84_v11 = vpack.c.bf16 %v71_v9, %v70_v8 }
 0x21f   :  { %v2594_v18 = vadd.f32 %v406_v15, %v404_v16  ;;  %2068 = vmatmul.msk.bf16.gmra.mxu0 %vm102_vm0, %v84_v11 }
 0x221   :  { %v409_v19 = vpack.c.bf16 %v2594_v18, %v2592_v17 }
 0x223   :  { %411 = vrot.lane.b32.xlu0 %v409_v19, %s2403_s24 }
 0x232   :  { %v259_v33 = vpop.f32.mrf.mxu1 }
 0x233   :  { %v260_v38 = vadd.f32 %v2577_v22, %v259_v33 }
 0x23a   :  { %v261_v34 = vpop.f32.mrf.mxu1 }
 0x23b   :  { %v262_v35 = vadd.f32 %v2577_v22, %v261_v34 }
 0x295   :  { %v412_v28 = vpop.permute.xlu0 %411 }
 0x296   :  { %2100 = vmatmul.msk.bf16.vlgmr.msra.gmra.mxu3 %vm220_vm1, %v412_v28 }
 0x297   :  { %818 = vmatpush.bf16.msra.mxu3 %v2532_v5 }
 0x29b   :  { %819 = vmatpush.bf16.msra.mxu3 %v2538_v6 }
 0x29c   :  { %v146_v24 = vpop.f32.mrf.mxu0 }
 0x29d   :  { %v147_v33 = vadd.f32 %v2560_v10, %v146_v24  ;;  %v73_v24 = vld [vmem:[%s3251_s17 + $0x38] sm:$0xff] }
 0x319   :  { %v425_v29 = vpop.f32.mrf.mxu3 }
 0x31a   :  { %v426_v30 = vadd.f32 %v2566_v13, %v425_v29 }
 0x31c   :  { %472 = vrot.lane.b32.xlu1 %v426_v30, %s2402_s3  ;;  %v430_v40 = vadd.f32 %v426_v30, %v260_v38 }
 0x31e   :  { %v2101_v42 = vmul.f32 -1.442695, %v430_v40 }
 0x321   :  { %v427_v31 = vpop.f32.mrf.mxu3 }
 0x322   :  { %v428_v32 = vadd.f32 %v2566_v13, %v427_v31 }
 0x324   :  { %474 = vrot.lane.b32.xlu2 %v428_v32, %s2402_s3  ;;  %v431_v36 = vadd.f32 %v428_v32, %v262_v35 }
 0x326   :  { %v2102_v37 = vmul.f32 -1.442695, %v431_v36  ;;  %v180_v36 = vmax.f32 %v147_v33, 0.0 }
 0x328   :  { %2284 = vpow2.f32 %v2102_v37 }
 0x32e   :  { %v2285_v39 = vpop.eup %2284 }
 0x32f   :  { %v439_v41 = vadd.f32 1.0, %v2285_v39 }
 0x331   :  { %2286 = vrcp.f32 %v439_v41  ;;  %v466_v51 = vand.u32 2147483648, %v439_v41  ;;  %vm460_vm11 = vweird.f32 %v439_v41  ;;  %v464_v52 = vand.u32 2147483647, %v439_v41 }
 0x332   :  { %2288 = vpow2.f32 %v2101_v42 }
 0x333   :  { %v467_v55 = vor.u32 1.1754944e-38, %v466_v51  ;;  %vm465_vm13 = vcmp.eq.f32.partialorder %v464_v52, 8.507059e+37 }
 0x337   :  { %v2287_v43 = vpop.eup %2286 }
 0x338   :  { %v2289_v44 = vpop.eup %2288  ;;  %v456_v45 = vmul.f32 %v2287_v43, %v439_v41  ;;  %vm461_vm10 = vweird.f32 %v2287_v43 }
 0x339   :  { %v438_v46 = vadd.f32 1.0, %v2289_v44  ;;  %vm462_vm12 = vmor %vm460_vm11, %vm461_vm10 }
 0x33a   :  { %v457_v47 = vsub.f32 1.0, %v456_v45 }
 0x33b   :  { %2290 = vrcp.f32 %v438_v46  ;;  %v451_v62 = vand.u32 2147483648, %v438_v46  ;;  %vm445_vm15 = vweird.f32 %v438_v46  ;;  %v449_v63 = vand.u32 2147483647, %v438_v46 }
 0x33c   :  { %v458_v48 = vmul.f32 %v2287_v43, %v457_v47 }
 0x33d   :  { %v452_v1 = vor.u32 1.1754944e-38, %v451_v62  ;;  %vm450_vm3 = vcmp.eq.f32.partialorder %v449_v63, 8.507059e+37 }
 0x33e   :  { %v459_v49 = vadd.f32 %v2287_v43, %v458_v48 }
 0x340   :  { %v463_v53 = vsel %vm462_vm12, %v2287_v43, %v459_v49 }
 0x341   :  { %v2291_v50 = vpop.eup %2290  ;;  %v468_v57 = vsel %vm465_vm13, %v467_v55, %v463_v53 }
 0x342   :  { %v441_v54 = vmul.f32 %v2291_v50, %v438_v46  ;;  %vm446_vm14 = vweird.f32 %v2291_v50  ;;  %v493_v26 = vsub.f32 1.0, %v468_v57  ;;  %v505_v29 = vmul.f32 %v468_v57, %v2594_v18 }
 0x343   :  { %vm447_vm2 = vmor %vm445_vm15, %vm446_vm14 }
 0x344   :  { %v442_v59 = vsub.f32 1.0, %v441_v54 }
 0x346   :  { %v443_v60 = vmul.f32 %v2291_v50, %v442_v59 }
 0x348   :  { %v444_v61 = vadd.f32 %v2291_v50, %v443_v60 }
 0x34a   :  { %v448_v0 = vsel %vm447_vm2, %v2291_v50, %v444_v61 }
 0x34b   :  { %v453_v4 = vsel %vm450_vm3, %v452_v1, %v448_v0 }
 0x34c   :  { %v492_v23 = vsub.f32 1.0, %v453_v4  ;;  %v504_v28 = vmul.f32 %v453_v4, %v2592_v17 }
 0x37e   :  { %v475_v56 = vpop.permute.xlu2 %474 }
 0x37f   :  { %v479_v58 = vmul.f32 %v475_v56, %v468_v57 }
 0x381   :  { %484 = vrot.lane.b32.xlu1 %v479_v58, %s2402_s3 }
 0x38e   :  { %v473_v2 = vpop.permute.xlu1 %472 }
 0x38f   :  { %v478_v7 = vmul.f32 %v473_v2, %v453_v4 }
 0x391   :  { %482 = vrot.lane.b32.xlu0 %v478_v7, %s2402_s3 }
 0x3f3   :  { %v485_v12 = vpop.permute.xlu1 %484 }
 0x3f4   :  { %v489_v14 = vadd.f32 %v485_v12, %v262_v35  ;;  %v148_v35 = vpop.f32.mrf.mxu0 }
 0x3f5   :  { %v149_v37 = vadd.f32 %v2560_v10, %v148_v35 }
 0x3f6   :  { %2292 = vtanh.f32 %v489_v14 }
 0x3fc   :  { %v2293_v15 = vpop.eup %2292 }
 0x3fd   :  { %498 = vrot.lane.b32.xlu0 %v2293_v15, %s2403_s24 }
 0x403   :  { %v483_v16 = vpop.permute.xlu0 %482 }
 0x404   :  { %v488_v19 = vadd.f32 %v483_v16, %v260_v38  ;;  %v181_v38 = vmax.f32 %v149_v37, 0.0 }
 0x406   :  { %2294 = vtanh.f32 %v488_v19  ;;  %v194_v17 = vpack.c.bf16 %v181_v38, %v180_v36 }
 0x408   :  { %2084 = vmatmul.msk.bf16.gmra.mxu1 %vm220_vm1, %v194_v17 }
 0x40c   :  { %v2295_v20 = vpop.eup %2294 }
 0x40d   :  { %496 = vrot.lane.b32.xlu2 %v2295_v20, %s2403_s24 }
 0x467   :  { %v497_v21 = vpop.permute.xlu2 %496 }
 0x468   :  { %v502_v25 = vmul.f32 %v497_v21, %v492_v23  ;;  %v72_v23 = vld [vmem:[%s3251_s17 + $0x30] sm:$0xff] }
 0x46a   :  { %v2624_v31 = vadd.f32 %v504_v28, %v502_v25  ;;  %v85_v25 = vpack.c.bf16 %v73_v24, %v72_v23 }
 0x46c   :  { %2069 = vmatmul.msk.bf16.gmra.mxu0 %vm102_vm0, %v85_v25 }
 0x46f   :  { %v499_v27 = vpop.permute.xlu0 %498 }
 0x470   :  { %v503_v30 = vmul.f32 %v499_v27, %v493_v26 }
 0x472   :  { %v2626_v32 = vadd.f32 %v505_v29, %v503_v30 }
 0x474   :  { %v508_v34 = vpack.c.bf16 %v2626_v32, %v2624_v31 }
 0x476   :  { %510 = vrot.lane.b32.xlu1 %v508_v34, %s2403_s24 }
 0x485   :  { %v264_v43 = vpop.f32.mrf.mxu1 }
 0x486   :  { %v265_v44 = vadd.f32 %v2577_v22, %v264_v43 }
 0x48d   :  { %v266_v49 = vpop.f32.mrf.mxu1 }
 0x48e   :  { %v267_v51 = vadd.f32 %v2577_v22, %v266_v49 }
 0x4e8   :  { %v511_v18 = vpop.permute.xlu1 %510 }
 0x4e9   :  { %2103 = vmatmul.msk.bf16.vlgmr.msrb.gmra.mxu2 %vm220_vm1, %v511_v18  ;;  %v151_v34 = vpop.f32.mrf.mxu0 }
 0x4ea   :  { %917 = vmatpush.bf16.msrb.mxu2 %v2532_v5  ;;  %v152_v35 = vadd.f32 %v2560_v10, %v151_v34 }
 0x4ec   :  { %v182_v37 = vmax.f32 %v152_v35, 0.0 }
 0x4ee   :  { %918 = vmatpush.bf16.msrb.mxu2 %v2538_v6 }
 0x4f1   :  { %v153_v36 = vpop.f32.mrf.mxu0 }
 0x4f2   :  { %v154_v38 = vadd.f32 %v2560_v10, %v153_v36  ;;  %v74_v36 = vld [vmem:[%s3251_s17 + $0x40] sm:$0xff] }
 0x4f4   :  { %v183_v17 = vmax.f32 %v154_v38, 0.0 }
 0x4f6   :  { %v195_v18 = vpack.c.bf16 %v183_v17, %v182_v37  ;;  %v75_v37 = vld [vmem:[%s3251_s17 + $0x48] sm:$0xff] }
 0x4f7   :  { %v86_v38 = vpack.c.bf16 %v75_v37, %v74_v36 }
 0x4f8   :  { %2085 = vmatmul.msk.bf16.gmra.mxu1 %vm220_vm1, %v195_v18 }
 0x4f9   :  { %2070 = vmatmul.msk.bf16.gmra.mxu0 %vm102_vm0, %v86_v38 }
 0x56c   :  { %v524_v39 = vpop.f32.mrf.mxu2 }
 0x56d   :  { %v525_v40 = vadd.f32 %v2566_v13, %v524_v39 }
 0x56f   :  { %571 = vrot.lane.b32.xlu2 %v525_v40, %s2402_s3  ;;  %v529_v45 = vadd.f32 %v525_v40, %v265_v44 }
 0x571   :  { %v2104_v46 = vmul.f32 -1.442695, %v529_v45 }
 0x573   :  { %2296 = vpow2.f32 %v2104_v46 }
 0x574   :  { %v526_v41 = vpop.f32.mrf.mxu2 }
 0x575   :  { %v527_v42 = vadd.f32 %v2566_v13, %v526_v41 }
 0x577   :  { %573 = vrot.lane.b32.xlu0 %v527_v42, %s2402_s3  ;;  %v530_v53 = vadd.f32 %v527_v42, %v267_v51 }
 0x579   :  { %v2297_v47 = vpop.eup %2296  ;;  %v2105_v55 = vmul.f32 -1.442695, %v530_v53  ;;  %v269_v53 = vpop.f32.mrf.mxu1 }
 0x57a   :  { %v537_v48 = vadd.f32 1.0, %v2297_v47 }
 0x57c   :  { %2298 = vrcp.f32 %v537_v48  ;;  %v550_v58 = vand.u32 2147483648, %v537_v48  ;;  %vm544_vm5 = vweird.f32 %v537_v48  ;;  %v548_v59 = vand.u32 2147483647, %v537_v48 }
 0x57d   :  { %2300 = vpow2.f32 %v2105_v55 }
 0x57e   :  { %v551_v62 = vor.u32 1.1754944e-38, %v550_v58  ;;  %vm549_vm7 = vcmp.eq.f32.partialorder %v548_v59, 8.507059e+37 }
 0x582   :  { %v2299_v50 = vpop.eup %2298 }
 0x583   :  { %v540_v52 = vmul.f32 %v2299_v50, %v537_v48  ;;  %vm545_vm4 = vweird.f32 %v2299_v50  ;;  %v2301_v60 = vpop.eup %2300 }
 0x584   :  { %vm546_vm6 = vmor %vm544_vm5, %vm545_vm4  ;;  %v538_v63 = vadd.f32 1.0, %v2301_v60 }
 0x585   :  { %v541_v54 = vsub.f32 1.0, %v540_v52 }
 0x586   :  { %2302 = vrcp.f32 %v538_v63  ;;  %v565_v12 = vand.u32 2147483648, %v538_v63  ;;  %vm559_vm9 = vweird.f32 %v538_v63  ;;  %v563_v14 = vand.u32 2147483647, %v538_v63 }
 0x587   :  { %v542_v56 = vmul.f32 %v2299_v50, %v541_v54  ;;  %v270_v54 = vadd.f32 %v2577_v22, %v269_v53 }
 0x588   :  { %v566_v16 = vor.u32 1.1754944e-38, %v565_v12  ;;  %vm564_vm11 = vcmp.eq.f32.partialorder %v563_v14, 8.507059e+37 }
 0x589   :  { %v543_v57 = vadd.f32 %v2299_v50, %v542_v56  ;;  %v271_v56 = vpop.f32.mrf.mxu1 }
 0x58b   :  { %v547_v61 = vsel %vm546_vm6, %v2299_v50, %v543_v57 }
 0x58c   :  { %v552_v1 = vsel %vm549_vm7, %v551_v62, %v547_v61  ;;  %v2303_v4 = vpop.eup %2302 }
 0x58d   :  { %v555_v7 = vmul.f32 %v2303_v4, %v538_v63  ;;  %vm560_vm8 = vweird.f32 %v2303_v4  ;;  %v591_v40 = vsub.f32 1.0, %v552_v1 }
 0x58e   :  { %vm561_vm10 = vmor %vm559_vm9, %vm560_vm8 }
 0x58f   :  { %v556_v8 = vsub.f32 1.0, %v555_v7 }
 0x591   :  { %v557_v9 = vmul.f32 %v2303_v4, %v556_v8 }
 0x593   :  { %v558_v11 = vadd.f32 %v2303_v4, %v557_v9 }
 0x595   :  { %v562_v15 = vsel %vm561_vm10, %v2303_v4, %v558_v11 }
 0x596   :  { %v567_v20 = vsel %vm564_vm11, %v566_v16, %v562_v15 }
 0x597   :  { %v592_v42 = vsub.f32 1.0, %v567_v20  ;;  %v604_v45 = vmul.f32 %v567_v20, %v2626_v32 }
 0x5c9   :  { %v572_v0 = vpop.permute.xlu2 %571 }
 0x5ca   :  { %v577_v2 = vmul.f32 %v572_v0, %v552_v1 }
 0x5cc   :  { %581 = vrot.lane.b32.xlu1 %v577_v2, %s2402_s3 }
 0x5e9   :  { %v574_v19 = vpop.permute.xlu0 %573 }
 0x5ea   :  { %v578_v21 = vmul.f32 %v574_v19, %v567_v20 }
 0x5ec   :  { %583 = vrot.lane.b32.xlu2 %v578_v21, %s2402_s3 }
 0x63e   :  { %v582_v26 = vpop.permute.xlu1 %581 }
 0x63f   :  { %v587_v27 = vadd.f32 %v582_v26, %v265_v44  ;;  %v603_v44 = vmul.f32 %v552_v1, %v2624_v31 }
 0x641   :  { %2304 = vtanh.f32 %v587_v27 }
 0x646   :  { %v584_v28 = vpop.permute.xlu2 %583 }
 0x647   :  { %v2305_v29 = vpop.eup %2304  ;;  %v588_v30 = vadd.f32 %v584_v28, %v267_v51 }
 0x648   :  { %595 = vrot.lane.b32.xlu0 %v2305_v29, %s2403_s24 }
 0x649   :  { %2306 = vtanh.f32 %v588_v30 }
 0x64f   :  { %v2307_v33 = vpop.eup %2306 }
 0x650   :  { %597 = vrot.lane.b32.xlu1 %v2307_v33, %s2403_s24 }
 0x6ba   :  { %v596_v39 = vpop.permute.xlu0 %595 }
 0x6bb   :  { %v601_v41 = vmul.f32 %v596_v39, %v591_v40 }
 0x6bd   :  { %v2659_v47 = vadd.f32 %v603_v44, %v601_v41 }
 0x6c2   :  { %v598_v43 = vpop.permute.xlu1 %597 }
 0x6c3   :  { %v602_v46 = vmul.f32 %v598_v43, %v592_v42 }
 0x6c5   :  { %v2661_v48 = vadd.f32 %v604_v45, %v602_v46 }
 0x6c7   :  { %v607_v49 = vpack.c.bf16 %v2661_v48, %v2659_v47 }
 0x6c9   :  { %609 = vrot.lane.b32.xlu2 %v607_v49, %s2403_s24 }
 0x723   :  { %v610_v50 = vpop.permute.xlu2 %609 }
 0x724   :  { %2106 = vmatmul.msk.bf16.vlgmr.msrb.gmra.mxu3 %vm220_vm1, %v610_v50 }
 0x725   :  { %1016 = vmatpush.bf16.msrb.mxu3 %v2532_v5  ;;  %v272_v5 = vadd.f32 %v2577_v22, %v271_v56 }
 0x729   :  { %1017 = vmatpush.bf16.msrb.mxu3 %v2538_v6 }
 0x7a7   :  { %v623_v31 = vpop.f32.mrf.mxu3 }
 0x7a8   :  { %v624_v32 = vadd.f32 %v2566_v13, %v623_v31 }
 0x7aa   :  { %670 = vrot.lane.b32.xlu0 %v624_v32, %s2402_s3  ;;  %v628_v55 = vadd.f32 %v624_v32, %v270_v54 }
 0x7ac   :  { %v2107_v57 = vmul.f32 -1.442695, %v628_v55 }
 0x7ae   :  { %2308 = vpow2.f32 %v2107_v57 }
 0x7af   :  { %v625_v51 = vpop.f32.mrf.mxu3 }
 0x7b0   :  { %v626_v52 = vadd.f32 %v2566_v13, %v625_v51  ;;  %v156_v51 = vpop.f32.mrf.mxu0 }
 0x7b2   :  { %672 = vrot.lane.b32.xlu1 %v626_v52, %s2402_s3  ;;  %v629_v6 = vadd.f32 %v626_v52, %v272_v5  ;;  %v157_v52 = vadd.f32 %v2560_v10, %v156_v51 }
 0x7b4   :  { %v2108_v58 = vmul.f32 -1.442695, %v629_v6  ;;  %v2309_v59 = vpop.eup %2308 }
 0x7b5   :  { %v636_v60 = vadd.f32 1.0, %v2309_v59 }
 0x7b6   :  { %2310 = vpow2.f32 %v2108_v58 }
 0x7b7   :  { %2312 = vrcp.f32 %v636_v60  ;;  %v649_v11 = vand.u32 2147483648, %v636_v60  ;;  %vm643_vm13 = vweird.f32 %v636_v60  ;;  %v647_v12 = vand.u32 2147483647, %v636_v60 }
 0x7b8   :  { %v158_v53 = vpop.f32.mrf.mxu0 }
 0x7b9   :  { %v650_v16 = vor.u32 1.1754944e-38, %v649_v11  ;;  %vm648_vm15 = vcmp.eq.f32.partialorder %v647_v12, 8.507059e+37  ;;  %v159_v55 = vadd.f32 %v2560_v10, %v158_v53 }
 0x7bc   :  { %v2311_v61 = vpop.eup %2310 }
 0x7bd   :  { %v637_v62 = vadd.f32 1.0, %v2311_v61  ;;  %v2313_v63 = vpop.eup %2312 }
 0x7be   :  { %v639_v0 = vmul.f32 %v2313_v63, %v636_v60  ;;  %vm644_vm12 = vweird.f32 %v2313_v63 }
 0x7bf   :  { %2314 = vrcp.f32 %v637_v62  ;;  %vm645_vm14 = vmor %vm643_vm13, %vm644_vm12  ;;  %v664_v24 = vand.u32 2147483648, %v637_v62  ;;  %vm658_vm3 = vweird.f32 %v637_v62  ;;  %v662_v25 = vand.u32 2147483647, %v637_v62 }
 0x7c0   :  { %v640_v1 = vsub.f32 1.0, %v639_v0 }
 0x7c1   :  { %v665_v27 = vor.u32 1.1754944e-38, %v664_v24  ;;  %vm663_vm5 = vcmp.eq.f32.partialorder %v662_v25, 8.507059e+37 }
 0x7c2   :  { %v641_v4 = vmul.f32 %v2313_v63, %v640_v1 }
 0x7c4   :  { %v642_v8 = vadd.f32 %v2313_v63, %v641_v4 }
 0x7c5   :  { %v2315_v2 = vpop.eup %2314 }
 0x7c6   :  { %v654_v7 = vmul.f32 %v2315_v2, %v637_v62  ;;  %v646_v14 = vsel %vm645_vm14, %v2313_v63, %v642_v8  ;;  %vm659_vm2 = vweird.f32 %v2315_v2 }
 0x7c7   :  { %v651_v20 = vsel %vm648_vm15, %v650_v16, %v646_v14  ;;  %vm660_vm4 = vmor %vm658_vm3, %vm659_vm2 }
 0x7c8   :  { %v655_v9 = vsub.f32 1.0, %v654_v7  ;;  %v690_v41 = vsub.f32 1.0, %v651_v20  ;;  %v702_v45 = vmul.f32 %v651_v20, %v2659_v47  ;;  %v185_v47 = vmax.f32 %v159_v55, 0.0 }
 0x7ca   :  { %v656_v15 = vmul.f32 %v2315_v2, %v655_v9 }
 0x7cc   :  { %v657_v23 = vadd.f32 %v2315_v2, %v656_v15 }
 0x7ce   :  { %v661_v26 = vsel %vm660_vm4, %v2315_v2, %v657_v23 }
 0x7cf   :  { %v666_v29 = vsel %vm663_vm5, %v665_v27, %v661_v26 }
 0x7d0   :  { %v691_v43 = vsub.f32 1.0, %v666_v29  ;;  %v703_v46 = vmul.f32 %v666_v29, %v2661_v48 }
 0x81c   :  { %v671_v19 = vpop.permute.xlu0 %670 }
 0x81d   :  { %v676_v21 = vmul.f32 %v671_v19, %v651_v20 }
 0x81f   :  { %680 = vrot.lane.b32.xlu2 %v676_v21, %s2402_s3 }
 0x824   :  { %v673_v28 = vpop.permute.xlu1 %672 }
 0x825   :  { %v677_v30 = vmul.f32 %v673_v28, %v666_v29 }
 0x827   :  { %682 = vrot.lane.b32.xlu0 %v677_v30, %s2402_s3 }
 0x879   :  { %v681_v33 = vpop.permute.xlu2 %680 }
 0x87a   :  { %v686_v34 = vadd.f32 %v681_v33, %v270_v54  ;;  %v184_v54 = vmax.f32 %v157_v52, 0.0 }
 0x87c   :  { %2316 = vtanh.f32 %v686_v34  ;;  %v196_v56 = vpack.c.bf16 %v185_v47, %v184_v54 }
 0x87e   :  { %2086 = vmatmul.msk.bf16.gmra.mxu1 %vm220_vm1, %v196_v56 }
 0x882   :  { %v2317_v35 = vpop.eup %2316 }
 0x883   :  { %694 = vrot.lane.b32.xlu1 %v2317_v35, %s2403_s24 }
 0x899   :  { %v683_v17 = vpop.permute.xlu0 %682 }
 0x89a   :  { %v687_v18 = vadd.f32 %v683_v17, %v272_v5 }
 0x89c   :  { %2318 = vtanh.f32 %v687_v18 }
 0x8a2   :  { %v2319_v39 = vpop.eup %2318 }
 0x8a3   :  { %696 = vrot.lane.b32.xlu2 %v2319_v39, %s2403_s24  ;;  %v76_v39 = vld [vmem:[%s3251_s17 + $0x50] sm:$0xff] }
 0x8f5   :  { %v695_v40 = vpop.permute.xlu1 %694 }
 0x8f6   :  { %v700_v42 = vmul.f32 %v695_v40, %v690_v41  ;;  %v77_v40 = vld [vmem:[%s3251_s17 + $0x58] sm:$0xff] }
 0x8f7   :  { %v87_v41 = vpack.c.bf16 %v77_v40, %v76_v39 }
 0x8f8   :  { %v2688_v50 = vadd.f32 %v702_v45, %v700_v42 }
 0x8f9   :  { %2071 = vmatmul.msk.bf16.gmra.mxu0 %vm102_vm0, %v87_v41 }
 0x8fb   :  { %v274_v59 = vpop.f32.mrf.mxu1 }
 0x8fc   :  { %v275_v0 = vadd.f32 %v2577_v22, %v274_v59 }
 0x8fd   :  { %v697_v44 = vpop.permute.xlu2 %696 }
 0x8fe   :  { %v701_v49 = vmul.f32 %v697_v44, %v691_v43 }
 0x900   :  { %v2690_v31 = vadd.f32 %v703_v46, %v701_v49 }
 0x902   :  { %v706_v32 = vpack.c.bf16 %v2690_v31, %v2688_v50 }
 0x903   :  { %v276_v60 = vpop.f32.mrf.mxu1 }
 0x904   :  { %708 = vrot.lane.b32.xlu0 %v706_v32, %s2403_s24  ;;  %v277_v61 = vadd.f32 %v2577_v22, %v276_v60 }
 0x976   :  { %v709_v48 = vpop.permute.xlu0 %708  ;;  %v161_v52 = vpop.f32.mrf.mxu0 }
 0x977   :  { %2109 = vmatmul.msk.bf16.vlgmr.msra.gmra.mxu2 %vm220_vm1, %v709_v48 }
 0x97e   :  { %v163_v59 = vpop.f32.mrf.mxu0 }
 0x9fa   :  { %v722_v57 = vpop.f32.mrf.mxu2 }
 0x9fb   :  { %v723_v5 = vadd.f32 %v2566_v13, %v722_v57 }
 0x9fd   :  { %769 = vrot.lane.b32.xlu1 %v723_v5, %s2402_s3  ;;  %v727_v2 = vadd.f32 %v723_v5, %v275_v0 }
 0x9ff   :  { %v2110_v7 = vmul.f32 -1.442695, %v727_v2 }
 0xa02   :  { %v724_v6 = vpop.f32.mrf.mxu2 }
 0xa03   :  { %v725_v58 = vadd.f32 %v2566_v13, %v724_v6  ;;  %v162_v6 = vadd.f32 %v2560_v10, %v161_v52 }
 0xa05   :  { %771 = vrot.lane.b32.xlu2 %v725_v58, %s2402_s3  ;;  %v728_v62 = vadd.f32 %v725_v58, %v277_v61  ;;  %v186_v60 = vmax.f32 %v162_v6, 0.0 }
 0xa07   :  { %v2111_v63 = vmul.f32 -1.442695, %v728_v62 }
 0xa09   :  { %2320 = vpow2.f32 %v2111_v63 }
 0xa0f   :  { %v2321_v1 = vpop.eup %2320 }
 0xa10   :  { %v736_v4 = vadd.f32 1.0, %v2321_v1 }
 0xa12   :  { %2322 = vrcp.f32 %v736_v4  ;;  %v763_v20 = vand.u32 2147483648, %v736_v4  ;;  %vm757_vm7 = vweird.f32 %v736_v4  ;;  %v761_v21 = vand.u32 2147483647, %v736_v4 }
 0xa13   :  { %2324 = vpow2.f32 %v2110_v7 }
 0xa14   :  { %v764_v25 = vor.u32 1.1754944e-38, %v763_v20  ;;  %vm762_vm9 = vcmp.eq.f32.partialorder %v761_v21, 8.507059e+37 }
 0xa18   :  { %v2323_v8 = vpop.eup %2322 }
 0xa19   :  { %v2325_v9 = vpop.eup %2324  ;;  %v753_v11 = vmul.f32 %v2323_v8, %v736_v4  ;;  %vm758_vm6 = vweird.f32 %v2323_v8 }
 0xa1a   :  { %v735_v12 = vadd.f32 1.0, %v2325_v9  ;;  %vm759_vm8 = vmor %vm757_vm7, %vm758_vm6 }
 0xa1b   :  { %v754_v14 = vsub.f32 1.0, %v753_v11 }
 0xa1c   :  { %2326 = vrcp.f32 %v735_v12  ;;  %v748_v34 = vand.u32 2147483648, %v735_v12  ;;  %vm742_vm11 = vweird.f32 %v735_v12  ;;  %v746_v35 = vand.u32 2147483647, %v735_v12 }
 0xa1d   :  { %v755_v15 = vmul.f32 %v2323_v8, %v754_v14 }
 0xa1e   :  { %v749_v37 = vor.u32 1.1754944e-38, %v748_v34  ;;  %vm747_vm13 = vcmp.eq.f32.partialorder %v746_v35, 8.507059e+37 }
 0xa1f   :  { %v756_v16 = vadd.f32 %v2323_v8, %v755_v15 }
 0xa21   :  { %v760_v23 = vsel %vm759_vm8, %v2323_v8, %v756_v16 }
 0xa22   :  { %v2327_v19 = vpop.eup %2326  ;;  %v765_v27 = vsel %vm762_vm9, %v764_v25, %v760_v23 }
 0xa23   :  { %v738_v24 = vmul.f32 %v2327_v19, %v735_v12  ;;  %vm743_vm10 = vweird.f32 %v2327_v19  ;;  %v790_v54 = vsub.f32 1.0, %v765_v27  ;;  %v802_v56 = vmul.f32 %v765_v27, %v2690_v31 }
 0xa24   :  { %vm744_vm12 = vmor %vm742_vm11, %vm743_vm10 }
 0xa25   :  { %v739_v29 = vsub.f32 1.0, %v738_v24 }
 0xa27   :  { %v740_v30 = vmul.f32 %v2327_v19, %v739_v29 }
 0xa29   :  { %v741_v33 = vadd.f32 %v2327_v19, %v740_v30 }
 0xa2b   :  { %v745_v36 = vsel %vm744_vm12, %v2327_v19, %v741_v33 }
 0xa2c   :  { %v750_v17 = vsel %vm747_vm13, %v749_v37, %v745_v36 }
 0xa2d   :  { %v789_v51 = vsub.f32 1.0, %v750_v17  ;;  %v801_v47 = vmul.f32 %v750_v17, %v2688_v50 }
 0xa5f   :  { %v772_v26 = vpop.permute.xlu2 %771 }
 0xa60   :  { %v776_v28 = vmul.f32 %v772_v26, %v765_v27 }
 0xa62   :  { %781 = vrot.lane.b32.xlu1 %v776_v28, %s2402_s3 }
 0xa6f   :  { %v770_v38 = vpop.permute.xlu1 %769 }
 0xa70   :  { %v775_v18 = vmul.f32 %v770_v38, %v750_v17 }
 0xa72   :  { %779 = vrot.lane.b32.xlu0 %v775_v18, %s2402_s3 }
 0xad4   :  { %v782_v42 = vpop.permute.xlu1 %781 }
 0xad5   :  { %v786_v43 = vadd.f32 %v782_v42, %v277_v61  ;;  %v164_v61 = vadd.f32 %v2560_v10, %v163_v59 }
 0xad7   :  { %2328 = vtanh.f32 %v786_v43  ;;  %v187_v62 = vmax.f32 %v164_v61, 0.0 }
 0xad9   :  { %v197_v50 = vpack.c.bf16 %v187_v62, %v186_v60 }
 0xadb   :  { %2087 = vmatmul.msk.bf16.gmra.mxu1 %vm220_vm1, %v197_v50 }
 0xadd   :  { %v2329_v44 = vpop.eup %2328 }
 0xade   :  { %795 = vrot.lane.b32.xlu0 %v2329_v44, %s2403_s24  ;;  %v78_v44 = vld [vmem:[%s3251_s17 + $0x60] sm:$0xff] }
 0xae4   :  { %v780_v45 = vpop.permute.xlu0 %779 }
 0xae5   :  { %v785_v46 = vadd.f32 %v780_v45, %v275_v0  ;;  %v79_v45 = vld [vmem:[%s3251_s17 + $0x68] sm:$0xff] }
 0xae7   :  { %2330 = vtanh.f32 %v785_v46  ;;  %v88_v46 = vpack.c.bf16 %v79_v45, %v78_v44 }
 0xae9   :  { %2072 = vmatmul.msk.bf16.gmra.mxu0 %vm102_vm0, %v88_v46 }
 0xaed   :  { %v2331_v49 = vpop.eup %2330 }
 0xaee   :  { %793 = vrot.lane.b32.xlu2 %v2331_v49, %s2403_s24 }
 0xb48   :  { %v794_v32 = vpop.permute.xlu2 %793 }
 0xb49   :  { %v799_v53 = vmul.f32 %v794_v32, %v789_v51 }
 0xb4b   :  { %v2718_v57 = vadd.f32 %v801_v47, %v799_v53  ;;  %v2749_v47 = vld [vmem:[%s3253_s27] ss:$0 sm:$0xff] }
 0xb50   :  { %v796_v55 = vpop.permute.xlu0 %795 }
 0xb51   :  { %v800_v48 = vmul.f32 %v796_v55, %v790_v54 }
 0xb53   :  { %v2720_v5 = vadd.f32 %v802_v56, %v800_v48 }
 0xb55   :  { %v805_v58 = vpack.c.bf16 %v2720_v5, %v2718_v57 }
 0xb57   :  { %807 = vrot.lane.b32.xlu1 %v805_v58, %s2403_s24 }
 0xb58   :  { %v279_v4 = vpop.f32.mrf.mxu1 }
 0xb59   :  { %v280_v10 = vadd.f32 %v2577_v22, %v279_v4 }
 0xb60   :  { %v281_v12 = vpop.f32.mrf.mxu1 }
 0xb61   :  { %v282_v15 = vadd.f32 %v2577_v22, %v281_v12 }
 0xb66   :  { %v166_v55 = vpop.f32.mrf.mxu0 }
 0xb67   :  { %v167_v56 = vadd.f32 %v2749_v47, %v166_v55 }
 0xb69   :  { %v188_v6 = vmax.f32 %v167_v56, 0.0 }
 0xb6e   :  { %v168_v48 = vpop.f32.mrf.mxu0 }
 0xb6f   :  { %v169_v58 = vadd.f32 %v2749_v47, %v168_v48  ;;  %v80_v48 = vld [vmem:[%s3251_s17 + $0x70] sm:$0xff] }
 0xb71   :  { %v189_v59 = vmax.f32 %v169_v58, 0.0 }
 0xb73   :  { %v198_v60 = vpack.c.bf16 %v189_v59, %v188_v6  ;;  %v81_v6 = vld [vmem:[%s3251_s17 + $0x78] sm:$0xff] }
 0xb74   :  { %v89_v58 = vpack.c.bf16 %v81_v6, %v80_v48 }
 0xb75   :  { %2088 = vmatmul.msk.bf16.gmra.mxu1 %vm220_vm1, %v198_v60 }
 0xb76   :  { %2073 = vmatmul.msk.bf16.gmra.mxu0 %vm102_vm0, %v89_v58 }
 0xbc9   :  { %v808_v31 = vpop.permute.xlu1 %807 }
 0xbca   :  { %2112 = vmatmul.msk.bf16.vlgmr.msra.gmra.mxu3 %vm220_vm1, %v808_v31 }
 0xc4d   :  { %v821_v63 = vpop.f32.mrf.mxu3 }
 0xc4e   :  { %v822_v0 = vadd.f32 %v2566_v13, %v821_v63 }
 0xc50   :  { %868 = vrot.lane.b32.xlu2 %v822_v0, %s2402_s3  ;;  %v826_v7 = vadd.f32 %v822_v0, %v280_v10 }
 0xc52   :  { %v2113_v8 = vmul.f32 -1.442695, %v826_v7 }
 0xc54   :  { %2332 = vpow2.f32 %v2113_v8 }
 0xc55   :  { %v823_v1 = vpop.f32.mrf.mxu3 }
 0xc56   :  { %v824_v2 = vadd.f32 %v2566_v13, %v823_v1 }
 0xc58   :  { %870 = vrot.lane.b32.xlu0 %v824_v2, %s2402_s3  ;;  %v827_v19 = vadd.f32 %v824_v2, %v282_v15 }
 0xc5a   :  { %v2333_v9 = vpop.eup %2332  ;;  %v2114_v21 = vmul.f32 -1.442695, %v827_v19 }
 0xc5b   :  { %v834_v11 = vadd.f32 1.0, %v2333_v9 }
 0xc5d   :  { %2334 = vrcp.f32 %v834_v11  ;;  %v847_v24 = vand.u32 2147483648, %v834_v11  ;;  %vm841_vm15 = vweird.f32 %v834_v11  ;;  %v845_v25 = vand.u32 2147483647, %v834_v11 }
 0xc5e   :  { %2336 = vpow2.f32 %v2114_v21 }
 0xc5f   :  { %v848_v28 = vor.u32 1.1754944e-38, %v847_v24  ;;  %vm846_vm3 = vcmp.eq.f32.partialorder %v845_v25, 8.507059e+37 }
 0xc63   :  { %v2335_v14 = vpop.eup %2334 }
 0xc64   :  { %v837_v16 = vmul.f32 %v2335_v14, %v834_v11  ;;  %vm842_vm14 = vweird.f32 %v2335_v14  ;;  %v2337_v26 = vpop.eup %2336 }
 0xc65   :  { %vm843_vm2 = vmor %vm841_vm15, %vm842_vm14  ;;  %v835_v29 = vadd.f32 1.0, %v2337_v26 }
 0xc66   :  { %v838_v20 = vsub.f32 1.0, %v837_v16 }
 0xc67   :  { %2338 = vrcp.f32 %v835_v29  ;;  %v862_v17 = vand.u32 2147483648, %v835_v29  ;;  %vm856_vm5 = vweird.f32 %v835_v29  ;;  %v860_v18 = vand.u32 2147483647, %v835_v29 }
 0xc68   :  { %v839_v13 = vmul.f32 %v2335_v14, %v838_v20 }
 0xc69   :  { %v863_v40 = vor.u32 1.1754944e-38, %v862_v17  ;;  %vm861_vm7 = vcmp.eq.f32.partialorder %v860_v18, 8.507059e+37 }
 0xc6a   :  { %v840_v23 = vadd.f32 %v2335_v14, %v839_v13 }
 0xc6c   :  { %v844_v27 = vsel %vm843_vm2, %v2335_v14, %v840_v23  ;;  %v284_v14 = vpop.f32.mrf.mxu1 }
 0xc6d   :  { %v849_v33 = vsel %vm846_vm3, %v848_v28, %v844_v27  ;;  %v2339_v34 = vpop.eup %2338 }
 0xc6e   :  { %v852_v35 = vmul.f32 %v2339_v34, %v835_v29  ;;  %vm857_vm4 = vweird.f32 %v2339_v34  ;;  %v888_v62 = vsub.f32 1.0, %v849_v33  ;;  %v900_v0 = vmul.f32 %v849_v33, %v2718_v57  ;;  %v2767_v57 = vld [vmem:[%s3254_s29] ss:$0 sm:$0xff] }
 0xc6f   :  { %vm858_vm6 = vmor %vm856_vm5, %vm857_vm4 }
 0xc70   :  { %v853_v36 = vsub.f32 1.0, %v852_v35 }
 0xc72   :  { %v854_v37 = vmul.f32 %v2339_v34, %v853_v36 }
 0xc74   :  { %v855_v38 = vadd.f32 %v2339_v34, %v854_v37  ;;  %v286_v20 = vpop.f32.mrf.mxu1 }
 0xc76   :  { %v859_v39 = vsel %vm858_vm6, %v2339_v34, %v855_v38 }
 0xc77   :  { %v864_v42 = vsel %vm861_vm7, %v863_v40, %v859_v39 }
 0xc78   :  { %v889_v31 = vsub.f32 1.0, %v864_v42  ;;  %v901_v1 = vmul.f32 %v864_v42, %v2720_v5 }
 0xcaa   :  { %v869_v30 = vpop.permute.xlu2 %868 }
 0xcab   :  { %v874_v22 = vmul.f32 %v869_v30, %v849_v33 }
 0xcad   :  { %878 = vrot.lane.b32.xlu1 %v874_v22, %s2402_s3 }
 0xcca   :  { %v871_v41 = vpop.permute.xlu0 %870 }
 0xccb   :  { %v875_v43 = vmul.f32 %v871_v41, %v864_v42 }
 0xccd   :  { %880 = vrot.lane.b32.xlu2 %v875_v43, %s2402_s3 }
 0xd1f   :  { %v879_v49 = vpop.permute.xlu1 %878 }
 0xd20   :  { %v884_v32 = vadd.f32 %v879_v49, %v280_v10 }
 0xd22   :  { %2340 = vtanh.f32 %v884_v32 }
 0xd27   :  { %v881_v51 = vpop.permute.xlu2 %880 }
 0xd28   :  { %v2341_v52 = vpop.eup %2340  ;;  %v885_v53 = vadd.f32 %v881_v51, %v282_v15  ;;  %v2776_v15 = vld [vmem:[%s3255_s30] ss:$0 sm:$0xff] }
 0xd29   :  { %892 = vrot.lane.b32.xlu0 %v2341_v52, %s2403_s24  ;;  %v285_v16 = vadd.f32 %v2776_v15, %v284_v14  ;;  %v287_v13 = vadd.f32 %v2776_v15, %v286_v20 }
 0xd2a   :  { %2342 = vtanh.f32 %v885_v53 }
 0xd30   :  { %v2343_v54 = vpop.eup %2342 }
 0xd31   :  { %894 = vrot.lane.b32.xlu1 %v2343_v54, %s2403_s24 }
 0xd9b   :  { %v893_v61 = vpop.permute.xlu0 %892 }
 0xd9c   :  { %v898_v50 = vmul.f32 %v893_v61, %v888_v62 }
 0xd9e   :  { %v2756_v4 = vadd.f32 %v900_v0, %v898_v50 }
 0xda3   :  { %v895_v63 = vpop.permute.xlu1 %894 }
 0xda4   :  { %v899_v2 = vmul.f32 %v895_v63, %v889_v31 }
 0xda6   :  { %v2758_v10 = vadd.f32 %v901_v1, %v899_v2 }
 0xda8   :  { %v904_v7 = vpack.c.bf16 %v2758_v10, %v2756_v4 }
 0xdaa   :  { %906 = vrot.lane.b32.xlu2 %v904_v7, %s2403_s24 }
 0xe04   :  { %v907_v8 = vpop.permute.xlu2 %906 }
 0xe05   :  { %2115 = vmatmul.msk.bf16.vlgmr.msrb.gmra.mxu2 %vm220_vm1, %v907_v8 }
 0xe88   :  { %v920_v9 = vpop.f32.mrf.mxu2 }
 0xe89   :  { %v921_v5 = vadd.f32 %v2767_v57, %v920_v9 }
 0xe8b   :  { %967 = vrot.lane.b32.xlu0 %v921_v5, %s2402_s3  ;;  %v925_v19 = vadd.f32 %v921_v5, %v285_v16 }
 0xe8d   :  { %v2116_v21 = vmul.f32 -1.442695, %v925_v19 }
 0xe8f   :  { %2344 = vpow2.f32 %v2116_v21 }
 0xe90   :  { %v922_v11 = vpop.f32.mrf.mxu2 }
 0xe91   :  { %v923_v12 = vadd.f32 %v2767_v57, %v922_v11  ;;  %v171_v11 = vpop.f32.mrf.mxu0 }
 0xe93   :  { %969 = vrot.lane.b32.xlu1 %v923_v12, %s2402_s3  ;;  %v926_v23 = vadd.f32 %v923_v12, %v287_v13  ;;  %v172_v12 = vadd.f32 %v2749_v47, %v171_v11 }
 0xe95   :  { %v2117_v24 = vmul.f32 -1.442695, %v926_v23  ;;  %v2345_v25 = vpop.eup %2344 }
 0xe96   :  { %v933_v26 = vadd.f32 1.0, %v2345_v25 }
 0xe97   :  { %2346 = vpow2.f32 %v2117_v24 }
 0xe98   :  { %2348 = vrcp.f32 %v933_v26  ;;  %v946_v38 = vand.u32 2147483648, %v933_v26  ;;  %vm940_vm9 = vweird.f32 %v933_v26  ;;  %v944_v17 = vand.u32 2147483647, %v933_v26 }
 0xe99   :  { %v173_v14 = vpop.f32.mrf.mxu0 }
 0xe9a   :  { %v947_v40 = vor.u32 1.1754944e-38, %v946_v38  ;;  %vm945_vm11 = vcmp.eq.f32.partialorder %v944_v17, 8.507059e+37  ;;  %v174_v19 = vadd.f32 %v2749_v47, %v173_v14  ;;  %v2125_v14 = vld [vmem:[%s3223_s7 + $0x8] sm:$0xf0] }
 0xe9d   :  { %v2347_v27 = vpop.eup %2346 }
 0xe9e   :  { %v934_v28 = vadd.f32 1.0, %v2347_v27  ;;  %v2349_v29 = vpop.eup %2348 }
 0xe9f   :  { %v936_v30 = vmul.f32 %v2349_v29, %v933_v26  ;;  %vm941_vm8 = vweird.f32 %v2349_v29 }
 0xea0   :  { %2350 = vrcp.f32 %v934_v28  ;;  %vm942_vm10 = vmor %vm940_vm9, %vm941_vm8  ;;  %v961_v45 = vand.u32 2147483648, %v934_v28  ;;  %vm955_vm13 = vweird.f32 %v934_v28  ;;  %v959_v46 = vand.u32 2147483647, %v934_v28 }
 0xea1   :  { %v937_v33 = vsub.f32 1.0, %v936_v30 }
 0xea2   :  { %v962_v32 = vor.u32 1.1754944e-38, %v961_v45  ;;  %vm960_vm15 = vcmp.eq.f32.partialorder %v959_v46, 8.507059e+37 }
 0xea3   :  { %v938_v34 = vmul.f32 %v2349_v29, %v937_v33 }
 0xea5   :  { %v939_v36 = vadd.f32 %v2349_v29, %v938_v34 }
 0xea6   :  { %v2351_v22 = vpop.eup %2350 }
 0xea7   :  { %v951_v35 = vmul.f32 %v2351_v22, %v934_v28  ;;  %v943_v18 = vsel %vm942_vm10, %v2349_v29, %v939_v36  ;;  %vm956_vm12 = vweird.f32 %v2351_v22 }
 0xea8   :  { %v948_v42 = vsel %vm945_vm11, %v947_v40, %v943_v18  ;;  %vm957_vm14 = vmor %vm955_vm13, %vm956_vm12 }
 0xea9   :  { %v952_v37 = vsub.f32 1.0, %v951_v35  ;;  %v987_v50 = vsub.f32 1.0, %v948_v42  ;;  %v999_v1 = vmul.f32 %v948_v42, %v2756_v4  ;;  %v191_v4 = vmax.f32 %v174_v19, 0.0 }
 0xeab   :  { %v953_v39 = vmul.f32 %v2351_v22, %v952_v37 }
 0xead   :  { %v954_v44 = vadd.f32 %v2351_v22, %v953_v39 }
 0xeaf   :  { %v958_v49 = vsel %vm957_vm14, %v2351_v22, %v954_v44 }
 0xeb0   :  { %v963_v52 = vsel %vm960_vm15, %v962_v32, %v958_v49 }
 0xeb1   :  { %v988_v63 = vsub.f32 1.0, %v963_v52  ;;  %v1000_v2 = vmul.f32 %v963_v52, %v2758_v10 }
 0xefd   :  { %v968_v41 = vpop.permute.xlu0 %967 }
 0xefe   :  { %v973_v43 = vmul.f32 %v968_v41, %v948_v42 }
 0xf00   :  { %977 = vrot.lane.b32.xlu2 %v973_v43, %s2402_s3 }
 0xf05   :  { %v970_v51 = vpop.permute.xlu1 %969 }
 0xf06   :  { %v974_v53 = vmul.f32 %v970_v51, %v963_v52 }
 0xf08   :  { %979 = vrot.lane.b32.xlu0 %v974_v53, %s2402_s3 }
 0xf5a   :  { %v978_v54 = vpop.permute.xlu2 %977 }
 0xf5b   :  { %v983_v55 = vadd.f32 %v978_v54, %v285_v16  ;;  %v190_v16 = vmax.f32 %v172_v12, 0.0  ;;  %v2213_v12 = vld [vmem:[%s3223_s7 + $0x4] sm:$0xf] }
 0xf5c   :  { %v2128_v19 = vor.u32 %v2213_v12, %v2125_v14  ;;  %v2221_v12 = vld [vmem:[%s3226_s11] sm:$0xff] }
 0xf5d   :  { %2352 = vtanh.f32 %v983_v55  ;;  %v199_v20 = vpack.c.bf16 %v191_v4, %v190_v16 }
 0xf5f   :  { %2089 = vmatmul.msk.bf16.gmra.mxu1 %vm220_vm1, %v199_v20 }
 0xf63   :  { %v2353_v56 = vpop.eup %2352 }
 0xf64   :  { %991 = vrot.lane.b32.xlu1 %v2353_v56, %s2403_s24 }
 0xf7a   :  { %v980_v59 = vpop.permute.xlu0 %979 }
 0xf7b   :  { %v984_v60 = vadd.f32 %v980_v59, %v287_v13 }
 0xf7d   :  { %2354 = vtanh.f32 %v984_v60 }
 0xf83   :  { %v2355_v61 = vpop.eup %2354 }
 0xf84   :  { %993 = vrot.lane.b32.xlu2 %v2355_v61, %s2403_s24 }
 0xfd6   :  { %v992_v62 = vpop.permute.xlu1 %991 }
 0xfd7   :  { %v997_v31 = vmul.f32 %v992_v62, %v987_v50 }
 0xfd9   :  { %v2793_v8 = vadd.f32 %v999_v1, %v997_v31  ;;  %v2131_v31 = vld [vmem:[%s3223_s7 + $0x10] sm:$0xf] }
 0xfdc   :  { %v289_v25 = vpop.f32.mrf.mxu1 }
 0xfdd   :  { %v290_v29 = vadd.f32 %v2776_v15, %v289_v25 }
 0xfde   :  { %v994_v0 = vpop.permute.xlu2 %993 }
 0xfdf   :  { %v998_v7 = vmul.f32 %v994_v0, %v988_v63  ;;  %v2216_v63 = vld [vmem:[%s3223_s7 + $0x14] sm:$0xf0]  ;;  %v2215_v0 = vld [vmem:[%s3223_s7 + $0x14] sm:$0xf] }
 0xfe0   :  { %v2132_v1 = vor.u32 %v2216_v63, %v2131_v31  ;;  %v2223_v31 = vld [vmem:[%s3226_s11 + $0x10] sm:$0xff] }
 0xfe1   :  { %v2795_v9 = vadd.f32 %v1000_v2, %v998_v7  ;;  %v2133_v2 = vld [vmem:[%s3223_s7 + $0x18] sm:$0xf0]  ;;  %v2123_v7 = vld [vmem:[%s3223_s7] sm:$0xf] }
 0xfe2   :  { %v2136_v11 = vor.u32 %v2215_v0, %v2133_v2  ;;  %1145 = vmatpush.bf16.msra.mxu2 %v2132_v1 }
 0xfe3   :  { %v1003_v5 = vpack.c.bf16 %v2795_v9, %v2793_v8 }
 0xfe4   :  { %v291_v26 = vpop.f32.mrf.mxu1  ;;  %1159 = vmatpush.bf16.msra.mxu3 %v2136_v11  ;;  %v2222_v11 = vld [vmem:[%s3226_s11 + $0x8] sm:$0xff] }
 0xfe5   :  { %1005 = vrot.lane.b32.xlu0 %v1003_v5, %s2403_s24  ;;  %v292_v47 = vadd.f32 %v2776_v15, %v291_v26  ;;  %v2214_v5 = vld [vmem:[%s3223_s7 + $0x4] sm:$0xf0]  ;;  %s3256_s7 = sld [smem:[#allocation8_spill]] }
 0xfe6   :  { %v2124_v16 = vor.u32 %v2214_v5, %v2123_v7  ;;  %v2912_v7 = vld [vmem:[%s3229_s14] sm:$0xff]  ;;  %v2921_v5 = vld [vmem:[%s3229_s14 + $0x8] sm:$0xff] }
 0xfe7   :  { %vm1462_vm14 = vcmp.gt.f32.partialorder %v2912_v7, 0.5 }
 0xfe8   :  { %1146 = vmatpush.bf16.msra.mxu2 %v2124_v16  ;;  %1160 = vmatpush.bf16.msra.mxu3 %v2128_v19 }
0x1057   :  { %v1006_v10 = vpop.permute.xlu0 %1005 }
0x1058   :  { %2118 = vmatmul.msk.bf16.vlgmr.msrb.gmra.mxu3 %vm220_vm1, %v1006_v10 }
0x10db   :  { %v1019_v21 = vpop.f32.mrf.mxu3 }
0x10dc   :  { %v1020_v13 = vadd.f32 %v2767_v57, %v1019_v21 }
0x10de   :  { %1066 = vrot.lane.b32.xlu1 %v1020_v13, %s2402_s3  ;;  %v1024_v33 = vadd.f32 %v1020_v13, %v290_v29 }
0x10e0   :  { %v2119_v34 = vmul.f32 -1.442695, %v1024_v33  ;;  %v2141_v33 = vld [vmem:[%s3224_s9] sm:$0xf] }
0x10e3   :  { %v1021_v23 = vpop.f32.mrf.mxu3 }
0x10e4   :  { %v1022_v24 = vadd.f32 %v2767_v57, %v1021_v23 }
0x10e6   :  { %1068 = vrot.lane.b32.xlu2 %v1022_v24, %s2402_s3  ;;  %v1025_v27 = vadd.f32 %v1022_v24, %v292_v47 }
0x10e8   :  { %v2120_v28 = vmul.f32 -1.442695, %v1025_v27 }
0x10ea   :  { %2356 = vpow2.f32 %v2120_v28  ;;  %v2149_v28 = vld [vmem:[%s3224_s9 + $0x10] sm:$0xf] }
0x10f0   :  { %v2357_v30 = vpop.eup %2356 }
0x10f1   :  { %v1033_v22 = vadd.f32 1.0, %v2357_v30 }
0x10f3   :  { %2358 = vrcp.f32 %v1033_v22  ;;  %v1060_v40 = vand.u32 2147483648, %v1033_v22  ;;  %vm1054_vm3 = vweird.f32 %v1033_v22  ;;  %v1058_v41 = vand.u32 2147483647, %v1033_v22 }
0x10f4   :  { %2360 = vpow2.f32 %v2119_v34 }
0x10f5   :  { %v1061_v43 = vor.u32 1.1754944e-38, %v1060_v40  ;;  %vm1059_vm5 = vcmp.eq.f32.partialorder %v1058_v41, 8.507059e+37  ;;  %v2228_v40 = vld [vmem:[%s3226_s11 + $0x38] sm:$0xff]  ;;  %v2230_v41 = vld [vmem:[%s3226_s11 + $0x48] sm:$0xff] }
0x10f6   :  { %1434 = vmatpush.bf16.msrb.mxu0 %v2228_v40  ;;  %1454 = vmatpush.bf16.msrb.mxu1 %v2230_v41  ;;  %v2406_v40 = vmov 3   ;;  %v2407_v41 = vmov 4  }
0x10f9   :  { %v2359_v35 = vpop.eup %2358 }
0x10fa   :  { %v2361_v36 = vpop.eup %2360  ;;  %v1050_v57 = vmul.f32 %v2359_v35, %v1033_v22  ;;  %vm1055_vm2 = vweird.f32 %v2359_v35  ;;  %v2218_v22 = vld [vmem:[%s3224_s9 + $0x4] sm:$0xf0] }
0x10fb   :  { %v1032_v37 = vadd.f32 1.0, %v2361_v36  ;;  %vm1056_vm4 = vmor %vm1054_vm3, %vm1055_vm2  ;;  %v2143_v36 = vld [vmem:[%s3224_s9 + $0x8] sm:$0xf0] }
0x10fc   :  { %v1051_v38 = vsub.f32 1.0, %v1050_v57  ;;  %v2142_v57 = vor.u32 %v2218_v22, %v2141_v33 }
0x10fd   :  { %2362 = vrcp.f32 %v1032_v37  ;;  %v1045_v52 = vand.u32 2147483648, %v1032_v37  ;;  %vm1039_vm7 = vweird.f32 %v1032_v37  ;;  %v1043_v53 = vand.u32 2147483647, %v1032_v37 }
0x10fe   :  { %v1052_v17 = vmul.f32 %v2359_v35, %v1051_v38 }
0x10ff   :  { %v1046_v55 = vor.u32 1.1754944e-38, %v1045_v52  ;;  %vm1044_vm9 = vcmp.eq.f32.partialorder %v1043_v53, 8.507059e+37  ;;  %v1225_v53 = vld [vmem:[%s3227_s13] sm:$0xff] }
0x1100   :  { %v1053_v18 = vadd.f32 %v2359_v35, %v1052_v17 }
0x1102   :  { %v1057_v15 = vsel %vm1056_vm4, %v2359_v35, %v1053_v18  ;;  %v2217_v35 = vld [vmem:[%s3224_s9 + $0x4] sm:$0xf] }
0x1103   :  { %v2363_v39 = vpop.eup %2362  ;;  %v1062_v45 = vsel %vm1059_vm5, %v1061_v43, %v1057_v15 }
0x1104   :  { %v1035_v42 = vmul.f32 %v2363_v39, %v1032_v37  ;;  %vm1040_vm6 = vweird.f32 %v2363_v39  ;;  %v1087_v21 = vsub.f32 1.0, %v1062_v45  ;;  %v1099_v24 = vmul.f32 %v1062_v45, %v2795_v9  ;;  %v2151_v9 = vld [vmem:[%s3224_s9 + $0x18] sm:$0xf0] }
0x1105   :  { %vm1041_vm8 = vmor %vm1039_vm7, %vm1040_vm6  ;;  %v2146_v37 = vor.u32 %v2217_v35, %v2143_v36  ;;  %v2404_v35 = vmov 2   ;;  %v2405_v36 = vmov 1  }
0x1106   :  { %v1036_v49 = vsub.f32 1.0, %v1035_v42  ;;  %2240 = vset.pattern.permute.xlu1 %v2404_v35  ;;  %2239 = vset.pattern.permute.xlu2 %v2405_v36 }
0x1108   :  { %v1037_v32 = vmul.f32 %v2363_v39, %v1036_v49 }
0x110a   :  { %v1038_v51 = vadd.f32 %v2363_v39, %v1037_v32 }
0x110c   :  { %v1042_v54 = vsel %vm1041_vm8, %v2363_v39, %v1038_v51  ;;  %v1107_v39 = vld [vmem:[%s3225_s8] sm:$0x3]  ;;  %s2408_s8 = smov 32  }
0x110d   :  { %v1047_v48 = vsel %vm1044_vm9, %v1046_v55, %v1042_v54  ;;  %v1109_v15 = vperm.slane %v1107_v39, 0  ;;  %v1110_v42 = vperm.slane %v1107_v39, 1  ;;  %v2226_v54 = vld [vmem:[%s3226_s11 + $0x28] sm:$0xff] }
0x110e   :  { %v1086_v20 = vsub.f32 1.0, %v1047_v48  ;;  %v1098_v23 = vmul.f32 %v1047_v48, %v2793_v8  ;;  %v2219_v8 = vld [vmem:[%s3224_s9 + $0x14] sm:$0xf] }
0x110f   :  { %v2154_v34 = vor.u32 %v2219_v8, %v2151_v9 }
0x1111   :  { %1217 = vmatpush.bf16.msrb.mxu3 %v2154_v34 }
0x1115   :  { %1218 = vmatpush.bf16.msrb.mxu3 %v2146_v37 }
0x1140   :  { %v1069_v44 = vpop.permute.xlu2 %1068 }
0x1141   :  { %v1073_v46 = vmul.f32 %v1069_v44, %v1062_v45  ;;  %v2227_v45 = vld [vmem:[%s3226_s11 + $0x30] sm:$0xff] }
0x1142   :  { %1435 = vmatpush.bf16.msrb.mxu0 %v2227_v45 }
0x1143   :  { %1078 = vrot.lane.b32.xlu1 %v1073_v46, %s2402_s3  ;;  %v2229_v46 = vld [vmem:[%s3226_s11 + $0x40] sm:$0xff] }
0x1144   :  { %1455 = vmatpush.bf16.msrb.mxu1 %v2229_v46 }
0x1146   :  { %1436 = vmatpush.bf16.msrb.mxu0 %v2226_v54 }
0x1150   :  { %v1067_v56 = vpop.permute.xlu1 %1066 }
0x1151   :  { %v1072_v6 = vmul.f32 %v1067_v56, %v1047_v48  ;;  %v2225_v48 = vld [vmem:[%s3226_s11 + $0x20] sm:$0xff] }
0x1152   :  { %1437 = vmatpush.bf16.msrb.mxu0 %v2225_v48 }
0x1153   :  { %1076 = vrot.lane.b32.xlu0 %v1072_v6, %s2402_s3  ;;  %v1226_v6 = vld [vmem:[%s3227_s13 + $0x8] sm:$0xff] }
0x11b5   :  { %v1079_v58 = vpop.permute.xlu1 %1078 }
0x11b6   :  { %v1083_v59 = vadd.f32 %v1079_v58, %v292_v47  ;;  %v1171_v58 = vld [vmem:[%s3228_s10] sm:$0x3] }
0x11b8   :  { %2364 = vtanh.f32 %v1083_v59  ;;  %v2224_v59 = vld [vmem:[%s3226_s11 + $0x18] sm:$0xff] }
0x11b9   :  { %1438 = vmatpush.bf16.msrb.mxu0 %v2224_v59 }
0x11bd   :  { %1439 = vmatpush.bf16.msrb.mxu0 %v2223_v31 }
0x11be   :  { %v2365_v60 = vpop.eup %2364 }
0x11bf   :  { %1092 = vrot.lane.b32.xlu0 %v2365_v60, %s2403_s24  ;;  %v1173_v60 = vperm.slane %v1171_v58, 0 }
0x11c1   :  { %1440 = vmatpush.bf16.msrb.mxu0 %v2222_v11 }
0x11c5   :  { %v1077_v61 = vpop.permute.xlu0 %1076  ;;  %1441 = vmatpush.bf16.msrb.mxu0 %v2221_v12 }
0x11c6   :  { %v1082_v62 = vadd.f32 %v1077_v61, %v290_v29  ;;  %v2220_v29 = vld [vmem:[%s3224_s9 + $0x14] sm:$0xf0]  ;;  %v1174_v61 = vperm.slane %v1171_v58, 1 }
0x11c7   :  { %v2150_v30 = vor.u32 %v2220_v29, %v2149_v28 }
0x11c8   :  { %2366 = vtanh.f32 %v1082_v62 }
0x11c9   :  { %1203 = vmatpush.bf16.msrb.mxu2 %v2150_v30 }
0x11cd   :  { %1204 = vmatpush.bf16.msrb.mxu2 %v2142_v57 }
0x11ce   :  { %v2367_v50 = vpop.eup %2366 }
0x11cf   :  { %1090 = vrot.lane.b32.xlu2 %v2367_v50, %s2403_s24 }
0x1229   :  { %v1091_v4 = vpop.permute.xlu2 %1090 }
0x122a   :  { %v1096_v10 = vmul.f32 %v1091_v4, %v1086_v20 }
0x122c   :  { %v1100_v26 = vadd.f32 %v1098_v23, %v1096_v10 }
0x1231   :  { %v1093_v13 = vpop.permute.xlu0 %1092 }
0x1232   :  { %v1097_v25 = vmul.f32 %v1093_v13, %v1087_v21 }
0x1234   :  { %v1101_v47 = vadd.f32 %v1099_v24, %v1097_v25 }
0x1236   :  { %v1102_v27 = vpack.c.bf16 %v1101_v47, %v1100_v26 }
0x1238   :  { %1114 = vrot.lane.b32.xlu1 %v1102_v27, %s2403_s24 }
0x12aa   :  { %v1115_v38 = vpop.permute.xlu1 %1114 }
0x12ab   :  { %2137 = vmatmul.msk.bf16.vlgmr.msra.gmra.mxu2 %vm220_vm1, %v1115_v38  ;;  %2138 = vmatmul.msk.bf16.vlgmr.msra.gmra.mxu3 %vm220_vm1, %v1115_v38 }
0x12bb   :  { %2155 = vmatmul.msk.bf16.vlgmr.msrb.gmra.mxu2 %vm220_vm1, %v1115_v38  ;;  %2156 = vmatmul.msk.bf16.vlgmr.msrb.gmra.mxu3 %vm220_vm1, %v1115_v38 }
0x132e   :  { %v1148_v17 = vpop.f32.mrf.mxu2  ;;  %v1162_v18 = vpop.f32.mrf.mxu3 }
0x132f   :  { %v1149_v51 = vadd.f32 %v1148_v17, %v1109_v15  ;;  %v1163_v52 = vadd.f32 %v1162_v18, %v1110_v42 }
0x1336   :  { %v1150_v43 = vpop.f32.mrf.mxu2  ;;  %v1164_v44 = vpop.f32.mrf.mxu3 }
0x1337   :  { %v1151_v49 = vadd.f32 %v1150_v43, %v1109_v15  ;;  %v1165_v32 = vadd.f32 %v1164_v44, %v1110_v42 }
0x1339   :  { %1249 = vmatpush.msra.mxu2 %v1151_v49  ;;  %1272 = vmatpush.msra.mxu3 %v1165_v32 }
0x133b   :  { %1250 = vmatpush.msra.mxu2 %v1149_v51  ;;  %1273 = vmatpush.msra.mxu3 %v1163_v52 }
0x133c   :  { %2157 = vmatmul.msk.f32.vlgmr.msra.gmra.mxu2 %vm102_vm0, %v1225_v53  ;;  %2159 = vmatmul.msk.f32.vlgmr.msra.gmra.mxu3 %vm102_vm0, %v1225_v53 }
0x133e   :  { %v1206_v55 = vpop.f32.mrf.mxu2  ;;  %v1220_v56 = vpop.f32.mrf.mxu3 }
0x133f   :  { %v1207_v1 = vadd.f32 %v1206_v55, %v1173_v60  ;;  %v1221_v2 = vadd.f32 %v1220_v56, %v1174_v61 }
0x1344   :  { %2158 = vmatmul.msk.f32.gmra.mxu2 %vm102_vm0, %v1226_v6  ;;  %2160 = vmatmul.msk.f32.gmra.mxu3 %vm102_vm0, %v1226_v6 }
0x1346   :  { %v1208_v62 = vpop.f32.mrf.mxu2  ;;  %v1222_v50 = vpop.f32.mrf.mxu3 }
0x1347   :  { %v1209_v63 = vadd.f32 %v1208_v62, %v1173_v60  ;;  %v1223_v0 = vadd.f32 %v1222_v50, %v1174_v61 }
0x1349   :  { %1301 = vmatpush.msrb.mxu2 %v1209_v63  ;;  %1324 = vmatpush.msrb.mxu3 %v1223_v0 }
0x134b   :  { %1302 = vmatpush.msrb.mxu2 %v1207_v1  ;;  %1325 = vmatpush.msrb.mxu3 %v1221_v2 }
0x134c   :  { %2161 = vmatmul.msk.f32.vlgmr.msrb.gmra.mxu2 %vm102_vm0, %v2912_v7  ;;  %2163 = vmatmul.msk.f32.vlgmr.msrb.gmra.mxu3 %vm102_vm0, %v2912_v7 }
0x1354   :  { %2162 = vmatmul.msk.f32.gmra.mxu2 %vm102_vm0, %v2921_v5  ;;  %2164 = vmatmul.msk.f32.gmra.mxu3 %vm102_vm0, %v2921_v5 }
0x13bf   :  { %v2933_v14 = vpop.f32.mrf.mxu2  ;;  %v2935_v16 = vpop.f32.mrf.mxu3 }
0x13c7   :  { %v2937_v19 = vpop.f32.mrf.mxu2  ;;  %v2939_v4 = vpop.f32.mrf.mxu3 }
0x13cf   :  { %v1304_v20 = vpop.f32.mrf.mxu2  ;;  %v1327_v10 = vpop.f32.mrf.mxu3 }
0x13d0   :  { %v1333_v21 = vadd.f32 %v1304_v20, %v2933_v14  ;;  %v1334_v13 = vadd.f32 %v1327_v10, %v2935_v16 }
0x13d2   :  { %v1341_v25 = vmul.f32 0.2, %v1333_v21  ;;  %v1342_v26 = vmul.f32 0.2, %v1334_v13  ;;  %vm1337_vm10 = vcmp.gt.f32.partialorder %v1333_v21, 0.0  ;;  %vm1338_vm11 = vcmp.gt.f32.partialorder %v1334_v13, 0.0 }
0x13d4   :  { %v1346_v8 = vsel %vm1338_vm11, %v1334_v13, %v1342_v26  ;;  %v1345_v9 = vsel %vm1337_vm10, %v1333_v21, %v1341_v25 }
0x13d7   :  { %v1307_v23 = vpop.f32.mrf.mxu2  ;;  %v1330_v24 = vpop.f32.mrf.mxu3 }
0x13d8   :  { %v1335_v47 = vadd.f32 %v1307_v23, %v2937_v19  ;;  %v1336_v27 = vadd.f32 %v1330_v24, %v2939_v4 }
0x13da   :  { %vm1339_vm12 = vcmp.gt.f32.partialorder %v1335_v47, 0.0  ;;  %v1343_v28 = vmul.f32 0.2, %v1335_v47  ;;  %vm1340_vm13 = vcmp.gt.f32.partialorder %v1336_v27, 0.0  ;;  %v1344_v29 = vmul.f32 0.2, %v1336_v27 }
0x13dc   :  { %v1348_v30 = vsel %vm1340_vm13, %v1336_v27, %v1344_v29  ;;  %v1347_v33 = vsel %vm1339_vm12, %v1335_v47, %v1343_v28 }
0x13dd   :  { %v1350_v22 = vpack.c.bf16 %v1348_v30, %v1346_v8  ;;  %v1349_v34 = vpack.c.bf16 %v1347_v33, %v1345_v9 }
0x13df   :  { %1442 = vmatmul.bf16.vlgmr.msrb.gmra.mxu0 %v1349_v34  ;;  %2205 = vmatmul.msk.bf16.vlgmr.msrb.gmra.mxu1 %vm220_vm1, %v1350_v22  ;;  %vm1463_vm1 = vcmp.gt.f32.partialorder %v2921_v5, 0.5 }
0x145c   :  { %v1443_v57 = vpop.f32.mrf.mxu0  ;;  %v1457_v37 = vpop.f32.mrf.mxu1 }
0x145d   :  { %v2948_v38 = vadd.f32 %v1457_v37, %v1443_v57 }
0x145f   :  { %1466 = vperm.xlu0 %2242, %v2948_v38   ;;  %1671 = vperm.xlu1 %2240, %v2948_v38  }
0x1460   :  { %1565 = vperm.xlu2 %2239, %v2948_v38  }
0x1464   :  { %v1445_v17 = vpop.f32.mrf.mxu0  ;;  %v1459_v18 = vpop.f32.mrf.mxu1 }
0x1465   :  { %v2953_v39 = vadd.f32 %v1459_v18, %v1445_v17 }
0x1467   :  { %2243 = vset.pattern.permute.xlu0 %v2405_v36  ;;  %2241 = vset.pattern.permute.xlu1 %v2406_v40 }
0x1468   :  { %2244 = vset.pattern.permute.xlu2 %v2404_v35  ;;  %1777 = vperm.xlu1 %2241, %v2948_v38  }
0x1469   :  { %1675 = vperm.xlu2 %2244, %v2953_v39   ;;  %1569 = vperm.xlu0 %2243, %v2953_v39  }
0x1470   :  { %2247 = vset.pattern.permute.xlu1 %v2401_v3 }
0x1471   :  { %2245 = vset.pattern.permute.xlu2 %v2406_v40  ;;  %1471 = vperm.xlu1 %2247, %v2953_v39  }
0x1472   :  { %1781 = vperm.xlu2 %2245, %v2953_v39   ;;  %2249 = vset.pattern.permute.xlu0 %v2401_v3 }
0x1479   :  { %2248 = vset.pattern.permute.xlu1 %v2407_v41 }
0x147a   :  { %2246 = vset.pattern.permute.xlu2 %v2407_v41  ;;  %1887 = vperm.xlu1 %2248, %v2953_v39  }
0x147b   :  { %1883 = vperm.xlu2 %2246, %v2948_v38  }
0x1482   :  { %2250 = vset.pattern.permute.xlu1 %v2405_v36 }
0x1483   :  { %2251 = vset.pattern.permute.xlu2 %v2405_v36 }
0x14ba   :  { %v1566_v15 = vpop.permute.xlu2 %1565 }
0x14bb   :  { %v1572_v56 = vsel %vm1462_vm14, %v1566_v15, -1e+30 }
0x14bc   :  { %v1574_v31 = vsel %vm102_vm0, %v1572_v56, -inf }
0x14c3   :  { %v1676_v42 = vpop.permute.xlu2 %1675 }
0x14c4   :  { %v1679_v43 = vsel %vm1463_vm1, %v1676_v42, -1e+30 }
0x14c5   :  { %v1681_v49 = vsel %vm102_vm0, %v1679_v43, -inf }
0x14cc   :  { %v1782_v52 = vpop.permute.xlu2 %1781 }
0x14cd   :  { %v1785_v55 = vsel %vm1463_vm1, %v1782_v52, -1e+30 }
0x14ce   :  { %v1787_v60 = vsel %vm102_vm0, %v1785_v55, -inf }
0x14d1   :  { %v1467_v44 = vpop.permute.xlu0 %1466  ;;  %v1672_v45 = vpop.permute.xlu1 %1671 }
0x14d2   :  { %v1678_v46 = vsel %vm1462_vm14, %v1672_v45, -1e+30  ;;  %v1474_v21 = vsel %vm1462_vm14, %v1467_v44, -1e+30 }
0x14d3   :  { %v1680_v32 = vsel %vm102_vm0, %v1678_v46, -inf  ;;  %v1476_v28 = vsel %vm102_vm0, %v1474_v21, -inf }
0x14d4   :  { %v1682_v51 = vmax.f32 %v1680_v32, %v1681_v49 }
0x14d5   :  { %v1884_v33 = vpop.permute.xlu2 %1883 }
0x14d6   :  { %v1683_v53 = vrot.slane %v1682_v51, 4  ;;  %v1890_v37 = vsel %vm1462_vm14, %v1884_v33, -1e+30 }
0x14d7   :  { %v1892_v45 = vsel %vm102_vm0, %v1890_v37, -inf }
0x14d8   :  { %v1684_v54 = vmax.f32 %v1682_v51, %v1683_v53 }
0x14da   :  { %v1685_v48 = vrot.slane %v1684_v54, 2  ;;  %v1778_v6 = vpop.permute.xlu1 %1777 }
0x14db   :  { %v1784_v58 = vsel %vm1462_vm14, %v1778_v6, -1e+30  ;;  %v1570_v59 = vpop.permute.xlu0 %1569 }
0x14dc   :  { %v1786_v61 = vsel %vm102_vm0, %v1784_v58, -inf  ;;  %v1573_v62 = vsel %vm1463_vm1, %v1570_v59, -1e+30  ;;  %v1686_v50 = vmax.f32 %v1684_v54, %v1685_v48 }
0x14dd   :  { %v1788_v63 = vmax.f32 %v1786_v61, %v1787_v60  ;;  %v1575_v0 = vsel %vm102_vm0, %v1573_v62, -inf }
0x14de   :  { %v1576_v1 = vmax.f32 %v1574_v31, %v1575_v0  ;;  %v1687_v2 = vrot.slane %v1686_v50, 1 }
0x14df   :  { %v1789_v11 = vrot.slane %v1788_v63, 4 }
0x14e0   :  { %v1577_v12 = vrot.slane %v1576_v1, 4  ;;  %v1688_v20 = vmax.f32 %v1686_v50, %v1687_v2 }
0x14e1   :  { %v1790_v10 = vmax.f32 %v1788_v63, %v1789_v11 }
0x14e2   :  { %v1578_v13 = vmax.f32 %v1576_v1, %v1577_v12  ;;  %v1689_v23 = vmul.f32 %v1688_v20, %v2912_v7  ;;  %v1690_v6 = vmul.f32 %v1688_v20, %v2921_v5 }
0x14e3   :  { %v1791_v24 = vrot.slane %v1790_v10, 2  ;;  %v1472_v25 = vpop.permute.xlu1 %1471 }
0x14e4   :  { %v1579_v26 = vrot.slane %v1578_v13, 2  ;;  %v1475_v47 = vsel %vm1463_vm1, %v1472_v25, -1e+30  ;;  %v1691_v27 = vsel %vm102_vm0, %v1689_v23, 0.0  ;;  %v1694_v50 = vsel %vm102_vm0, %v1690_v6, 0.0 }
0x14e5   :  { %v1477_v29 = vsel %vm102_vm0, %v1475_v47, -inf  ;;  %1692 = vadd.xlane.f32.xlu1 %v1691_v27  ;;  %v1792_v8 = vmax.f32 %v1790_v10, %v1791_v24 }
0x14e6   :  { %v1478_v30 = vmax.f32 %v1476_v28, %v1477_v29  ;;  %v1580_v9 = vmax.f32 %v1578_v13, %v1579_v26 }
0x14e7   :  { %v1793_v57 = vrot.slane %v1792_v8, 1 }
0x14e8   :  { %v1479_v22 = vrot.slane %v1478_v30, 4  ;;  %v1581_v34 = vrot.slane %v1580_v9, 1 }
0x14e9   :  { %v1794_v49 = vmax.f32 %v1792_v8, %v1793_v57 }
0x14ea   :  { %v1480_v17 = vmax.f32 %v1478_v30, %v1479_v22  ;;  %v1582_v18 = vmax.f32 %v1580_v9, %v1581_v34 }
0x14eb   :  { %v1796_v48 = vmul.f32 %v1794_v49, %v2921_v5  ;;  %v1795_v1 = vmul.f32 %v1794_v49, %v2912_v7 }
0x14ec   :  { %v1481_v15 = vrot.slane %v1480_v17, 2  ;;  %v1888_v42 = vpop.permute.xlu1 %1887  ;;  %v1584_v43 = vmul.f32 %v1582_v18, %v2921_v5  ;;  %v1583_v44 = vmul.f32 %v1582_v18, %v2912_v7 }
0x14ed   :  { %v1891_v46 = vsel %vm1463_vm1, %v1888_v42, -1e+30  ;;  %v1800_v62 = vsel %vm102_vm0, %v1796_v48, 0.0  ;;  %v1797_v12 = vsel %vm102_vm0, %v1795_v1, 0.0 }
0x14ee   :  { %v1893_v32 = vsel %vm102_vm0, %v1891_v46, -inf  ;;  %v1588_v51 = vsel %vm102_vm0, %v1584_v43, 0.0  ;;  %v1585_v52 = vsel %vm102_vm0, %v1583_v44, 0.0  ;;  %v1482_v53 = vmax.f32 %v1480_v17, %v1481_v15 }
0x14ef   :  { %v1894_v54 = vmax.f32 %v1892_v45, %v1893_v32  ;;  %1589 = vadd.xlane.f32.xlu0 %v1588_v51  ;;  %1586 = vadd.xlane.f32.xlu2 %v1585_v52 }
0x14f0   :  { %v1483_v55 = vrot.slane %v1482_v53, 1 }
0x14f1   :  { %v1895_v56 = vrot.slane %v1894_v54, 4 }
0x14f2   :  { %v1484_v58 = vmax.f32 %v1482_v53, %v1483_v55 }
0x14f3   :  { %v1896_v59 = vmax.f32 %v1894_v54, %v1895_v56 }
0x14f4   :  { %v1485_v60 = vmul.f32 %v1484_v58, %v2912_v7  ;;  %v1486_v10 = vmul.f32 %v1484_v58, %v2921_v5 }
0x14f5   :  { %v1897_v61 = vrot.slane %v1896_v59, 2 }
0x14f6   :  { %v1487_v31 = vsel %vm102_vm0, %v1485_v60, 0.0  ;;  %v1490_v21 = vsel %vm102_vm0, %v1486_v10, 0.0 }
0x14f7   :  { %1801 = vadd.xlane.f32.xlu0 %v1800_v62  ;;  %1695 = vadd.xlane.f32.xlu2 %v1694_v50  ;;  %v1898_v63 = vmax.f32 %v1896_v59, %v1897_v61 }
0x14f8   :  { %1488 = vadd.xlane.f32.xlu1 %v1487_v31 }
0x14f9   :  { %v1899_v0 = vrot.slane %v1898_v63, 1 }
0x14fb   :  { %v1900_v2 = vmax.f32 %v1898_v63, %v1899_v0 }
0x14fd   :  { %v1901_v11 = vmul.f32 %v1900_v2, %v2912_v7  ;;  %v1902_v13 = vmul.f32 %v1900_v2, %v2921_v5 }
0x14ff   :  { %1798 = vadd.xlane.f32.xlu2 %v1797_v12  ;;  %v1903_v20 = vsel %vm102_vm0, %v1901_v11, 0.0  ;;  %v1906_v23 = vsel %vm102_vm0, %v1902_v13, 0.0 }
0x1500   :  { %1904 = vadd.xlane.f32.xlu1 %v1903_v20 }
0x1507   :  { %1491 = vadd.xlane.f32.xlu2 %v1490_v21 }
0x150f   :  { %1907 = vadd.xlane.f32.xlu2 %v1906_v23 }
0x1558   :  { %v1693_v26 = vpop.xlane.xlu1 %1692 }
0x1559   :  { %v1697_v42 = vsub.f32 %v2948_v38, %v1693_v26 }
0x155b   :  { %v1699_v32 = vmul.f32 1.442695, %v1697_v42 }
0x1562   :  { %v1590_v24 = vpop.xlane.xlu0 %1589  ;;  %v1587_v25 = vpop.xlane.xlu2 %1586 }
0x1563   :  { %v1592_v47 = vsub.f32 %v2953_v39, %v1590_v24  ;;  %v1591_v27 = vsub.f32 %v2948_v38, %v1587_v25 }
0x1565   :  { %v1595_v28 = vmul.f32 1.442695, %v1592_v47  ;;  %v1593_v29 = vmul.f32 1.442695, %v1591_v27 }
0x1567   :  { %2368 = vpow2.f32 %v1595_v28 }
0x1568   :  { %2370 = vpow2.f32 %v1593_v29 }
0x156a   :  { %v1802_v8 = vpop.xlane.xlu0 %1801  ;;  %v1696_v30 = vpop.xlane.xlu2 %1695 }
0x156b   :  { %v1804_v9 = vsub.f32 %v2953_v39, %v1802_v8  ;;  %v1698_v33 = vsub.f32 %v2953_v39, %v1696_v30  ;;  %v1489_v22 = vpop.xlane.xlu1 %1488 }
0x156c   :  { %v1493_v34 = vsub.f32 %v2948_v38, %v1489_v22 }
0x156d   :  { %v3029_v57 = vpop.eup %2368  ;;  %v1807_v37 = vmul.f32 1.442695, %v1804_v9  ;;  %v1701_v17 = vmul.f32 1.442695, %v1698_v33 }
0x156e   :  { %v3031_v18 = vpop.eup %2370  ;;  %v1495_v15 = vmul.f32 1.442695, %v1493_v34  ;;  %1604 = vperm.xlu2 %2251, %v3029_v57  }
0x156f   :  { %2372 = vpow2.f32 %v1807_v37  ;;  %1599 = vperm.xlu1 %2250, %v3031_v18  }
0x1570   :  { %2374 = vpow2.f32 %v1701_v17 }
0x1571   :  { %2376 = vpow2.f32 %v1495_v15 }
0x1572   :  { %v1799_v43 = vpop.xlane.xlu2 %1798 }
0x1573   :  { %v1905_v44 = vpop.xlane.xlu1 %1904  ;;  %v1803_v54 = vsub.f32 %v2948_v38, %v1799_v43 }
0x1574   :  { %v1909_v45 = vsub.f32 %v2948_v38, %v1905_v44 }
0x1575   :  { %v3037_v46 = vpop.eup %2372  ;;  %v1805_v6 = vmul.f32 1.442695, %v1803_v54 }
0x1576   :  { %v3039_v49 = vpop.eup %2374  ;;  %v1911_v51 = vmul.f32 1.442695, %v1909_v45  ;;  %2255 = vset.pattern.permute.xlu2 %v2406_v40 }
0x1577   :  { %v3042_v52 = vpop.eup %2376  ;;  %2253 = vset.pattern.permute.xlu1 %v2404_v35  ;;  %1816 = vperm.xlu2 %2255, %v3037_v46  }
0x1578   :  { %2378 = vpow2.f32 %v1911_v51  ;;  %1501 = vperm.xlu0 %2249, %v3042_v52   ;;  %1710 = vperm.xlu1 %2253, %v3039_v49  }
0x1579   :  { %2380 = vpow2.f32 %v1699_v32 }
0x157a   :  { %v1492_v53 = vpop.xlane.xlu2 %1491 }
0x157b   :  { %v1494_v55 = vsub.f32 %v2953_v39, %v1492_v53 }
0x157d   :  { %v1497_v56 = vmul.f32 1.442695, %v1494_v55 }
0x157e   :  { %v3050_v48 = vpop.eup %2378 }
0x157f   :  { %2382 = vpow2.f32 %v1497_v56  ;;  %2257 = vset.pattern.permute.xlu2 %v2407_v41  ;;  %v3053_v58 = vpop.eup %2380 }
0x1580   :  { %2252 = vset.pattern.permute.xlu0 %v2404_v35  ;;  %1917 = vperm.xlu2 %2257, %v3050_v48   ;;  %2384 = vpow2.f32 %v1805_v6 }
0x1581   :  { %1705 = vperm.xlu0 %2252, %v3053_v58   ;;  %2256 = vset.pattern.permute.xlu1 %v2401_v3 }
0x1582   :  { %v1908_v38 = vpop.xlane.xlu2 %1907 }
0x1583   :  { %v1910_v59 = vsub.f32 %v2953_v39, %v1908_v38 }
0x1585   :  { %v3060_v60 = vpop.eup %2382  ;;  %v1913_v61 = vmul.f32 1.442695, %v1910_v59 }
0x1586   :  { %1506 = vperm.xlu1 %2256, %v3060_v60   ;;  %v3064_v62 = vpop.eup %2384 }
0x1587   :  { %2386 = vpow2.f32 %v1913_v61 }
0x1588   :  { %2261 = vset.pattern.permute.xlu2 %v2405_v36 }
0x1589   :  { %2254 = vset.pattern.permute.xlu0 %v2406_v40 }
0x158a   :  { %1811 = vperm.xlu0 %2254, %v3064_v62  }
0x158d   :  { %v3068_v50 = vpop.eup %2386 }
0x158e   :  { %2258 = vset.pattern.permute.xlu1 %v2407_v41 }
0x158f   :  { %1922 = vperm.xlu1 %2258, %v3068_v50  }
0x1592   :  { %2260 = vset.pattern.permute.xlu0 %v2405_v36 }
0x1597   :  { %2259 = vset.pattern.permute.xlu1 %v2401_v3 }
0x15c8   :  { %v1605_v39 = vpop.permute.xlu2 %1604 }
0x15c9   :  { %v1608_v31 = vmul.f32 %v1605_v39, %v2921_v5 }
0x15cb   :  { %v1610_v1 = vsel %vm102_vm0, %v1608_v31, 0.0 }
0x15d1   :  { %v1817_v8 = vpop.permute.xlu2 %1816 }
0x15d2   :  { %v1820_v37 = vmul.f32 %v1817_v8, %v2921_v5 }
0x15d4   :  { %v1822_v54 = vsel %vm102_vm0, %v1820_v37, 0.0 }
0x15e1   :  { %v1600_v63 = vpop.permute.xlu1 %1599 }
0x15e2   :  { %v1607_v0 = vmul.f32 %v1600_v63, %v2912_v7 }
0x15e4   :  { %v1609_v2 = vsel %vm102_vm0, %v1607_v0, 0.0 }
0x15e5   :  { %v1611_v11 = vadd.f32 %v1610_v1, %v1609_v2 }
0x15e7   :  { %v1612_v12 = vrot.slane %v1611_v11, 4 }
0x15e9   :  { %v1613_v20 = vadd.f32 %v1612_v12, %v1611_v11 }
0x15ea   :  { %v1502_v10 = vpop.permute.xlu0 %1501  ;;  %v1711_v36 = vpop.permute.xlu1 %1710 }
0x15eb   :  { %v1614_v21 = vrot.slane %v1613_v20, 2  ;;  %v1714_v25 = vmul.f32 %v1711_v36, %v2921_v5  ;;  %v1509_v30 = vmul.f32 %v1502_v10, %v2912_v7 }
0x15ed   :  { %v1615_v13 = vadd.f32 %v1614_v21, %v1613_v20  ;;  %v1716_v28 = vsel %vm102_vm0, %v1714_v25, 0.0  ;;  %v1511_v15 = vsel %vm102_vm0, %v1509_v30, 0.0 }
0x15ef   :  { %v1616_v23 = vrot.slane %v1615_v13, 1 }
0x15f1   :  { %v1617_v24 = vadd.f32 %v1616_v23, %v1615_v13 }
0x15f3   :  { %vm1618_vm15 = vcmp.gt.f32.partialorder %v1617_v24, 0.0  ;;  %v1706_v26 = vpop.permute.xlu0 %1705 }
0x15f4   :  { %v1619_v47 = vsel %vm1618_vm15, %v1617_v24, 1.0  ;;  %v1713_v27 = vmul.f32 %v1706_v26, %v2912_v7 }
0x15f5   :  { %2388 = vrcp.f32 %v1619_v47  ;;  %v1629_v59 = vand.u32 2147483647, %v1619_v47  ;;  %v1631_v61 = vand.u32 2147483648, %v1619_v47  ;;  %vm1625_vm3 = vweird.f32 %v1619_v47 }
0x15f6   :  { %v1715_v29 = vsel %vm102_vm0, %v1713_v27, 0.0 }
0x15f7   :  { %v1717_v9 = vadd.f32 %v1716_v28, %v1715_v29  ;;  %v1632_v20 = vor.u32 1.1754944e-38, %v1631_v61  ;;  %vm1630_vm5 = vcmp.eq.f32.partialorder %v1629_v59, 8.507059e+37 }
0x15f8   :  { %v1507_v33 = vpop.permute.xlu1 %1506 }
0x15f9   :  { %v1718_v22 = vrot.slane %v1717_v9, 4  ;;  %v1510_v34 = vmul.f32 %v1507_v33, %v2921_v5 }
0x15fb   :  { %v2389_v17 = vpop.eup %2388  ;;  %v1719_v42 = vadd.f32 %v1718_v22, %v1717_v9  ;;  %v1512_v43 = vsel %vm102_vm0, %v1510_v34, 0.0 }
0x15fc   :  { %v1513_v44 = vadd.f32 %v1512_v43, %v1511_v15  ;;  %v1812_v45 = vpop.permute.xlu0 %1811  ;;  %v1621_v32 = vmul.f32 %v2389_v17, %v1619_v47  ;;  %vm1626_vm2 = vweird.f32 %v2389_v17 }
0x15fd   :  { %v1720_v51 = vrot.slane %v1719_v42, 2  ;;  %v1819_v53 = vmul.f32 %v1812_v45, %v2912_v7  ;;  %vm1627_vm4 = vmor %vm1625_vm3, %vm1626_vm2 }
0x15fe   :  { %v1514_v55 = vrot.slane %v1513_v44, 4  ;;  %v1622_v56 = vsub.f32 1.0, %v1621_v32 }
0x15ff   :  { %v1721_v6 = vadd.f32 %v1720_v51, %v1719_v42  ;;  %v1821_v38 = vsel %vm102_vm0, %v1819_v53, 0.0 }
0x1600   :  { %v1515_v39 = vadd.f32 %v1514_v55, %v1513_v44  ;;  %v1823_v31 = vadd.f32 %v1822_v54, %v1821_v38  ;;  %v1623_v63 = vmul.f32 %v2389_v17, %v1622_v56 }
0x1601   :  { %v1722_v0 = vrot.slane %v1721_v6, 1 }
0x1602   :  { %v1516_v1 = vrot.slane %v1515_v39, 2  ;;  %v1824_v2 = vrot.slane %v1823_v31, 4  ;;  %v1624_v11 = vadd.f32 %v2389_v17, %v1623_v63 }
0x1603   :  { %v1723_v12 = vadd.f32 %v1722_v0, %v1721_v6 }
0x1604   :  { %v1517_v10 = vadd.f32 %v1516_v1, %v1515_v39  ;;  %v1825_v21 = vadd.f32 %v1824_v2, %v1823_v31  ;;  %v1628_v13 = vsel %vm1627_vm4, %v2389_v17, %v1624_v11 }
0x1605   :  { %vm1724_vm6 = vcmp.gt.f32.partialorder %v1723_v12, 0.0  ;;  %v1633_v23 = vsel %vm1630_vm5, %v1632_v20, %v1628_v13 }
0x1606   :  { %v1725_v36 = vsel %vm1724_vm6, %v1723_v12, 1.0  ;;  %v1518_v24 = vrot.slane %v1517_v10, 1  ;;  %v1826_v25 = vrot.slane %v1825_v21, 2  ;;  %v1636_v26 = vmul.f32 %v1633_v23, %v2921_v5 }
0x1607   :  { %2390 = vrcp.f32 %v1725_v36  ;;  %v1635_v27 = vmul.f32 %v1633_v23, %v2912_v7  ;;  %v1737_v15 = vand.u32 2147483648, %v1725_v36  ;;  %v1735_v44 = vand.u32 2147483647, %v1725_v36 }
0x1608   :  { %v1519_v28 = vadd.f32 %v1518_v24, %v1517_v10  ;;  %v1827_v29 = vadd.f32 %v1826_v25, %v1825_v21  ;;  %v1640_v47 = vsel %vm102_vm0, %v1636_v26, 0.0  ;;  %vm1731_vm10 = vweird.f32 %v1725_v36 }
0x1609   :  { %1641 = vadd.xlane.f32.xlu0 %v1640_v47  ;;  %v1637_v8 = vsel %vm102_vm0, %v1635_v27, 0.0  ;;  %v1738_v51 = vor.u32 1.1754944e-38, %v1737_v15  ;;  %vm1736_vm12 = vcmp.eq.f32.partialorder %v1735_v44, 8.507059e+37 }
0x160a   :  { %vm1520_vm7 = vcmp.gt.f32.partialorder %v1519_v28, 0.0  ;;  %v1828_v30 = vrot.slane %v1827_v29, 1  ;;  %1638 = vadd.xlane.f32.xlu2 %v1637_v8 }
0x160b   :  { %v1521_v9 = vsel %vm1520_vm7, %v1519_v28, 1.0  ;;  %vm1547_vm7 = vcmask 7168  }
0x160c   :  { %2392 = vrcp.f32 %v1521_v9  ;;  %v1829_v33 = vadd.f32 %v1828_v30, %v1827_v29  ;;  %v1531_v54 = vand.u32 2147483647, %v1521_v9  ;;  %v1533_v6 = vand.u32 2147483648, %v1521_v9 }
0x160d   :  { %v2391_v22 = vpop.eup %2390  ;;  %vm1527_vm1 = vweird.f32 %v1521_v9 }
0x160e   :  { %vm1830_vm8 = vcmp.gt.f32.partialorder %v1829_v33, 0.0  ;;  %v1727_v34 = vmul.f32 %v2391_v22, %v1725_v36  ;;  %vm1732_vm9 = vweird.f32 %v2391_v22  ;;  %vm1532_vm14 = vcmp.eq.f32.partialorder %v1531_v54, 8.507059e+37 }
0x160f   :  { %v1831_v37 = vsel %vm1830_vm8, %v1829_v33, 1.0  ;;  %vm1733_vm11 = vmor %vm1731_vm10, %vm1732_vm9  ;;  %v1534_v11 = vor.u32 1.1754944e-38, %v1533_v6  ;;  %v1923_v33 = vpop.permute.xlu1 %1922  ;;  %vm1645_vm8 = vcmask 15368   ;;  %vm1751_vm9 = vcmask 23568  }
0x1610   :  { %2394 = vrcp.f32 %v1831_v37  ;;  %v1728_v17 = vsub.f32 1.0, %v1727_v34  ;;  %v1843_v12 = vand.u32 2147483648, %v1831_v37  ;;  %v1841_v21 = vand.u32 2147483647, %v1831_v37 }
0x1611   :  { %vm1837_vm3 = vweird.f32 %v1831_v37  ;;  %v1926_v34 = vmul.f32 %v1923_v33, %v2921_v5  ;;  %vm1857_vm10 = vcmask 31768  }
0x1612   :  { %v2393_v42 = vpop.eup %2392  ;;  %v1729_v43 = vmul.f32 %v2391_v22, %v1728_v17  ;;  %v1844_v24 = vor.u32 1.1754944e-38, %v1843_v12  ;;  %vm1842_vm5 = vcmp.eq.f32.partialorder %v1841_v21, 8.507059e+37 }
0x1613   :  { %v1523_v45 = vmul.f32 %v2393_v42, %v1521_v9  ;;  %vm1528_vm13 = vweird.f32 %v2393_v42  ;;  %v1928_v17 = vsel %vm102_vm0, %v1926_v34, 0.0 }
0x1614   :  { %v1730_v32 = vadd.f32 %v2391_v22, %v1729_v43  ;;  %vm1529_vm15 = vmor %vm1527_vm1, %vm1528_vm13 }
0x1615   :  { %v1524_v53 = vsub.f32 1.0, %v1523_v45 }
0x1616   :  { %v2395_v55 = vpop.eup %2394  ;;  %v1734_v56 = vsel %vm1733_vm11, %v2391_v22, %v1730_v32  ;;  %v1918_v22 = vpop.permute.xlu2 %1917 }
0x1617   :  { %v1739_v38 = vsel %vm1736_vm12, %v1738_v51, %v1734_v56  ;;  %v1525_v59 = vmul.f32 %v2393_v42, %v1524_v53  ;;  %v1833_v61 = vmul.f32 %v2395_v55, %v1831_v37  ;;  %vm1838_vm2 = vweird.f32 %v2395_v55 }
0x1618   :  { %v1742_v39 = vmul.f32 %v1739_v38, %v2921_v5  ;;  %v1741_v31 = vmul.f32 %v1739_v38, %v2912_v7  ;;  %vm1839_vm4 = vmor %vm1837_vm3, %vm1838_vm2  ;;  %v1925_v37 = vmul.f32 %v1918_v22, %v2912_v7  ;;  %vm2027_vm2 = vcmask 293888  }
0x1619   :  { %v1526_v63 = vadd.f32 %v2393_v42, %v1525_v59  ;;  %v1834_v0 = vsub.f32 1.0, %v1833_v61  ;;  %vm2010_vm3 = vcmask 254976  }
0x161a   :  { %v1746_v1 = vsel %vm102_vm0, %v1742_v39, 0.0  ;;  %v1743_v2 = vsel %vm102_vm0, %v1741_v31, 0.0  ;;  %v1927_v15 = vsel %vm102_vm0, %v1925_v37, 0.0 }
0x161b   :  { %1747 = vadd.xlane.f32.xlu1 %v1746_v1  ;;  %1744 = vadd.xlane.f32.xlu0 %v1743_v2  ;;  %v1530_v20 = vsel %vm1529_vm15, %v2393_v42, %v1526_v63  ;;  %v1835_v10 = vmul.f32 %v2395_v55, %v1834_v0  ;;  %v1929_v42 = vadd.f32 %v1928_v17, %v1927_v15  ;;  %vm2031_vm15 = vcmask 1041408   ;;  %v2015_v17 = vld [vmem:[%s3231_s16 + $0x10] sm:$0xff]  ;;  %v2016_v15 = vld [vmem:[%s3231_s16 + $0x18] sm:$0xff] }
0x161c   :  { %v1535_v13 = vsel %vm1532_vm14, %v1534_v11, %v1530_v20  ;;  %vm1963_vm14 = vcmask 39968  }
0x161d   :  { %v1836_v23 = vadd.f32 %v2395_v55, %v1835_v10  ;;  %v1537_v36 = vmul.f32 %v1535_v13, %v2912_v7  ;;  %v1538_v30 = vmul.f32 %v1535_v13, %v2921_v5  ;;  %v1930_v43 = vrot.slane %v1929_v42, 4 }
0x161f   :  { %v1840_v25 = vsel %vm1839_vm4, %v2395_v55, %v1836_v23  ;;  %v1539_v29 = vsel %vm102_vm0, %v1537_v36, 0.0  ;;  %v1542_v9 = vsel %vm102_vm0, %v1538_v30, 0.0  ;;  %v1931_v44 = vadd.f32 %v1930_v43, %v1929_v42  ;;  %v2013_v43 = vld [vmem:[%s3231_s16] sm:$0xff] }
0x1620   :  { %v1845_v26 = vsel %vm1842_vm5, %v1844_v24, %v1840_v25  ;;  %v2019_v42 = vpack.c.bf16 %v2016_v15, %v2015_v17 }
0x1621   :  { %v1848_v27 = vmul.f32 %v1845_v26, %v2921_v5  ;;  %v1847_v28 = vmul.f32 %v1845_v26, %v2912_v7  ;;  %v1932_v45 = vrot.slane %v1931_v44, 2 }
0x1623   :  { %1540 = vadd.xlane.f32.xlu0 %v1539_v29  ;;  %v1852_v47 = vsel %vm102_vm0, %v1848_v27, 0.0  ;;  %v1849_v8 = vsel %vm102_vm0, %v1847_v28, 0.0  ;;  %v1933_v32 = vadd.f32 %v1932_v45, %v1931_v44  ;;  %v2014_v44 = vld [vmem:[%s3231_s16 + $0x8] sm:$0xff] }
0x1624   :  { %1853 = vadd.xlane.f32.xlu2 %v1852_v47  ;;  %1850 = vadd.xlane.f32.xlu1 %v1849_v8 }
0x1625   :  { %v1934_v51 = vrot.slane %v1933_v32, 1 }
0x1627   :  { %v1935_v53 = vadd.f32 %v1934_v51, %v1933_v32  ;;  %v2018_v32 = vpack.c.bf16 %v2014_v44, %v2013_v43  ;;  %v2012_v51 = vld [vmem:[%s3256_s7] sm:$0xf] }
0x1629   :  { %vm1936_vm6 = vcmp.gt.f32.partialorder %v1935_v53, 0.0 }
0x162a   :  { %v1937_v38 = vsel %vm1936_vm6, %v1935_v53, 1.0 }
0x162b   :  { %2396 = vrcp.f32 %v1937_v38  ;;  %vm1943_vm12 = vweird.f32 %v1937_v38  ;;  %v1947_v20 = vand.u32 2147483647, %v1937_v38 }
0x162c   :  { %1543 = vadd.xlane.f32.xlu2 %v1542_v9 }
0x162d   :  { %vm1948_vm1 = vcmp.eq.f32.partialorder %v1947_v20, 8.507059e+37 }
0x1631   :  { %v2397_v59 = vpop.eup %2396 }
0x1632   :  { %v1939_v31 = vmul.f32 %v2397_v59, %v1937_v38  ;;  %vm1944_vm11 = vweird.f32 %v2397_v59 }
0x1633   :  { %vm1945_vm13 = vmor %vm1943_vm12, %vm1944_vm11 }
0x1634   :  { %v1940_v63 = vsub.f32 1.0, %v1939_v31 }
0x167c   :  { %v1642_v54 = vpop.xlane.xlu0 %1641 }
0x167d   :  { %v1644_v55 = vmul.f32 %v3029_v57, %v1642_v54  ;;  %v1639_v56 = vpop.xlane.xlu2 %1638  ;;  %v1941_v57 = vmul.f32 %v2397_v59, %v1940_v63 }
0x167e   :  { %v1643_v6 = vmul.f32 %v3031_v18, %v1639_v56 }
0x167f   :  { %1655 = vperm.xlu0 %2260, %v1644_v55  }
0x1680   :  { %1650 = vperm.xlu2 %2261, %v1643_v6  }
0x1687   :  { %2267 = vset.pattern.permute.xlu0 %v2401_v3 }
0x1688   :  { %2266 = vset.pattern.permute.xlu2 %v2401_v3 }
0x168e   :  { %v1748_v61 = vpop.xlane.xlu1 %1747  ;;  %v1745_v39 = vpop.xlane.xlu0 %1744 }
0x168f   :  { %v1749_v11 = vmul.f32 %v3053_v58, %v1745_v39  ;;  %v1949_v58 = vand.u32 2147483648, %v1937_v38 }
0x1691   :  { %v1950_v13 = vor.u32 1.1754944e-38, %v1949_v58 }
0x1696   :  { %v1541_v0 = vpop.xlane.xlu0 %1540 }
0x1697   :  { %v1545_v18 = vmul.f32 %v3042_v52, %v1541_v0  ;;  %v1851_v1 = vpop.xlane.xlu1 %1850  ;;  %v1854_v2 = vpop.xlane.xlu2 %1853  ;;  %v1942_v52 = vadd.f32 %v2397_v59, %v1941_v57 }
0x1698   :  { %v1855_v12 = vmul.f32 %v3064_v62, %v1851_v1  ;;  %v1750_v62 = vmul.f32 %v3039_v49, %v1748_v61  ;;  %v1856_v24 = vmul.f32 %v3037_v46, %v1854_v2 }
0x1699   :  { %1548 = vst.msk [vmem:[%s3230_s20] sm:$0xff] %vm1547_vm7, %v1545_v18  ;;  %1552 = vperm.xlu1 %2259, %v1545_v18   ;;  %v1946_v10 = vsel %vm1945_vm13, %v2397_v59, %v1942_v52 }
0x169a   :  { %1646 = vst.msk [vmem:[%s3230_s20] sm:$0xff] %vm1645_vm8, %v1643_v6  ;;  %v1951_v36 = vsel %vm1948_vm1, %v1950_v13, %v1946_v10 }
0x169b   :  { %1752 = vst.msk [vmem:[%s3230_s20] sm:$0xff] %vm1751_vm9, %v1749_v11  ;;  %v1953_v49 = vmul.f32 %v1951_v36, %v2912_v7 }
0x169c   :  { %1858 = vst.msk [vmem:[%s3230_s20] sm:$0xff] %vm1857_vm10, %v1855_v12 }
0x169f   :  { %v1544_v21 = vpop.xlane.xlu2 %1543 }
0x16a0   :  { %v1546_v23 = vmul.f32 %v3060_v60, %v1544_v21  ;;  %v1955_v60 = vsel %vm102_vm0, %v1953_v49, 0.0 }
0x16a1   :  { %2262 = vset.pattern.permute.xlu1 %v2404_v35  ;;  %v1954_v35 = vmul.f32 %v1951_v36, %v2921_v5 }
0x16a2   :  { %1549 = vst.msk [vmem:[%s3230_s20 + $0x8] sm:$0xff] %vm1547_vm7, %v1546_v23  ;;  %1761 = vperm.xlu1 %2262, %v1750_v62  }
0x16a3   :  { %1647 = vst.msk [vmem:[%s3230_s20 + $0x8] sm:$0xff] %vm1645_vm8, %v1644_v55  ;;  %v1958_v46 = vsel %vm102_vm0, %v1954_v35, 0.0  ;;  %v2021_v55 = vld [vmem:[%s3233_s18] sm:$0xff] }
0x16a4   :  { %1753 = vst.msk [vmem:[%s3230_s20 + $0x8] sm:$0xff] %vm1751_vm9, %v1750_v62 }
0x16a5   :  { %1859 = vst.msk [vmem:[%s3230_s20 + $0x8] sm:$0xff] %vm1857_vm10, %v1856_v24 }
0x16a9   :  { %1959 = vadd.xlane.f32.xlu2 %v1958_v46  ;;  %1956 = vadd.xlane.f32.xlu0 %v1955_v60 }
0x16aa   :  { %1756 = vperm.xlu1 %2262, %v1749_v11  }
0x16b2   :  { %2263 = vset.pattern.permute.xlu1 %v2406_v40 }
0x16b3   :  { %1867 = vperm.xlu1 %2263, %v1856_v24  }
0x16bb   :  { %1862 = vperm.xlu1 %2263, %v1855_v12  }
0x16c3   :  { %2264 = vset.pattern.permute.xlu1 %v2401_v3 }
0x16c4   :  { %1557 = vperm.xlu1 %2264, %v1546_v23  }
0x16cc   :  { %2265 = vset.pattern.permute.xlu1 %v2407_v41 }
0x16da   :  { %v1651_v7 = vpop.permute.xlu2 %1650 }
0x16db   :  { %v1658_v5 = vmul.f32 %v1651_v7, %v2933_v14 }
0x16dd   :  { %1662 = vrot.lane.b32.xlu2 %v1658_v5, %s2403_s24 }
0x16f1   :  { %v1656_v25 = vpop.permute.xlu0 %1655 }
0x16f2   :  { %v1659_v26 = vmul.f32 %v1656_v25, %v2937_v19 }
0x16f4   :  { %1664 = vrot.lane.b32.xlu1 %v1659_v26, %s2403_s24 }
0x170b   :  { %v1553_v27 = vpop.permute.xlu1 %1552 }
0x170c   :  { %v1560_v31 = vmul.f32 %v1553_v27, %v2933_v14 }
0x1714   :  { %v1762_v28 = vpop.permute.xlu1 %1761 }
0x1715   :  { %v1765_v40 = vmul.f32 %v1762_v28, %v2937_v19 }
0x1717   :  { %1770 = vrot.lane.b32.xlu1 %v1765_v40, %s2402_s3 }
0x171c   :  { %v1960_v3 = vpop.xlane.xlu2 %1959  ;;  %v1757_v29 = vpop.permute.xlu1 %1756 }
0x171d   :  { %v1962_v41 = vmul.f32 %v3068_v50, %v1960_v3  ;;  %v1764_v47 = vmul.f32 %v1757_v29, %v2933_v14  ;;  %v1957_v8 = vpop.xlane.xlu0 %1956 }
0x171e   :  { %v1961_v30 = vmul.f32 %v3050_v48, %v1957_v8  ;;  %v2017_v48 = vld [vmem:[%s3231_s16 + $0x20] sm:$0xf] }
0x171f   :  { %1965 = vst.msk [vmem:[%s3230_s20 + $0x8] sm:$0xff] %vm1963_vm14, %v1962_v41  ;;  %1768 = vrot.lane.b32.xlu1 %v1764_v47, %s2402_s3  ;;  %v2020_v34 = vpack.c.bf16 %v2017_v48, %v2017_v48 }
0x1720   :  { %1964 = vst.msk [vmem:[%s3230_s20] sm:$0xff] %vm1963_vm14, %v1961_v30 }
0x1721   :  { %v2033_v37 = vsel %vm2031_vm15, %v2020_v34, 0 }
0x1722   :  { %2040 = vmatpush.bf16.msra.mxu3 %v2033_v37 }
0x1725   :  { %v1868_v9 = vpop.permute.xlu1 %1867 }
0x1726   :  { %v1871_v33 = vmul.f32 %v1868_v9, %v2937_v19  ;;  %2041 = vmatpush.bf16.msra.mxu3 %v2019_v42 }
0x1727   :  { %1973 = vperm.xlu1 %2265, %v1962_v41  }
0x1728   :  { %1876 = vrot.lane.b32.xlu0 %v1871_v33, %s2408_s8 }
0x172a   :  { %2042 = vmatpush.bf16.msra.mxu3 %v2018_v32 }
0x172d   :  { %v1863_v50 = vpop.permute.xlu1 %1862  ;;  %2207 = vmatmul.msk.bf16.vlgmr.msra.gmra.mxu3 %vm2027_vm2, %v2012_v51 }
0x172e   :  { %v1870_v22 = vmul.f32 %v1863_v50, %v2933_v14  ;;  %v1982_v14 = vld [vmem:[%s3235_s15] sm:$0x3] }
0x172f   :  { %1968 = vperm.xlu1 %2265, %v1961_v30  }
0x1730   :  { %1874 = vrot.lane.b32.xlu2 %v1870_v22, %s2408_s8 }
0x1736   :  { %v1558_v45 = vpop.permute.xlu1 %1557 }
0x1737   :  { %v1561_v6 = vmul.f32 %v1558_v45, %v2937_v19  ;;  %v1663_v59 = vpop.permute.xlu2 %1662 }
0x1738   :  { %2024 = vperm.xlu2 %2266, %v2021_v55   ;;  %v1668_v18 = vadd.f32 %v1663_v59, %v1560_v31 }
0x1766   :  { %v1665_v53 = vpop.permute.xlu1 %1664 }
0x1767   :  { %v1669_v38 = vadd.f32 %v1665_v53, %v1561_v6 }
0x1789   :  { %v1771_v54 = vpop.permute.xlu1 %1770 }
0x178a   :  { %v1775_v61 = vadd.f32 %v1771_v54, %v1669_v38  ;;  %v1875_v12 = vpop.permute.xlu2 %1874 }
0x1791   :  { %v1769_v56 = vpop.permute.xlu1 %1768 }
0x1792   :  { %v1774_v2 = vadd.f32 %v1769_v56, %v1668_v18 }
0x1794   :  { %v1880_v58 = vadd.f32 %v1875_v12, %v1774_v2 }
0x1799   :  { %v1974_v39 = vpop.permute.xlu1 %1973 }
0x179a   :  { %v1977_v63 = vmul.f32 %v1974_v39, %v2939_v4  ;;  %v1877_v0 = vpop.permute.xlu0 %1876  ;;  %v2025_v4 = vpop.permute.xlu2 %2024 }
0x179b   :  { %v1881_v57 = vadd.f32 %v1877_v0, %v1775_v61 }
0x179d   :  { %v1979_v1 = vadd.f32 %v1977_v63, %v1881_v57 }
0x179f   :  { %v1981_v11 = vmul.f32 0.2, %v1979_v1 }
0x17a1   :  { %2004 = vmatpush.msra.mxu2 %v1981_v11  ;;  %v1969_v52 = vpop.permute.xlu1 %1968 }
0x17a2   :  { %v1976_v19 = vmul.f32 %v1969_v52, %v2935_v16  ;;  %v2271_v16 = vld [vmem:[%s3234_s12] ss:$0 sm:$0xff] }
0x17a4   :  { %v1978_v20 = vadd.f32 %v1976_v19, %v1880_v58 }
0x17a6   :  { %v1980_v10 = vmul.f32 0.2, %v1978_v20 }
0x17a8   :  { %2005 = vmatpush.msra.mxu2 %v1980_v10 }
0x17a9   :  { %2206 = vmatmul.msk.f32.vlgmr.msra.gmra.mxu2 %vm102_vm0, %v1982_v14 }
0x17b0   :  { %v2044_v21 = vpop.f32.mrf.mxu3 }
0x17b1   :  { %v2045_v13 = vadd.f32 %v2044_v21, %v2025_v4 }
0x17b3   :  { %v2048_v62 = vmax.f32 %v2045_v13, 0.0 }
0x17b5   :  { %2049 = vst [vmem:[%s3236_s21] sm:$0xff] %v2048_v62 }
0x17b8   :  { %v2046_v23 = vpop.f32.mrf.mxu3 }
0x182c   :  { %v2007_v36 = vpop.f32.mrf.mxu2 }
0x182d   :  { %v2008_v24 = vadd.f32 %v2271_v16, %v2007_v36 }
0x182f   :  { %2011 = vst.msk [vmem:[%s3237_s19] sm:$0x3] %vm2010_vm3, %v2008_v24 }

</bundles_post_ra>
